<compile_context>
chip_gen: v7x
topology: tpu7x:2x2x1
jax: 0.10.0
libtpu: 0.0.40
codegen_flags: <defaults>
</compile_context>

<pallas_src>
import jax
import jax.numpy as jnp
from jax.experimental import pallas as pl
from jax.experimental.pallas import tpu as pltpu

# ---- small-but-consistent hyperparameters (module defaults scaled down) ----
SAMPLE_RATE = 16000
N_FFT = 128          # n_fft
HOP = 32             # hop_length
WIN = 128            # win_length (== n_fft, module default win_length=None)
N_MELS = 16          # n_mels
F_MIN = 0.0
F_MAX = None
FLOOR = 1e-5         # floor_level

FREQS = N_FFT // 2 + 1   # 65 rfft bins
FP = 128                 # freq dim padded to lane width (extra cols are zero)
MELP = 128               # mel dim padded to lane width (extra cols are zero)
TM = 512                 # frames per signal per grid step (sublane tile)


# ------------------------- parameter construction --------------------------
def hann_window(n):
    i = jnp.arange(n, dtype=jnp.float32)
    return 0.5 - 0.5 * jnp.cos(2.0 * jnp.pi * i / n)   # torch.hann_window (periodic)


def dft_matrices(n_fft, n_freqs):
    n = jnp.arange(n_fft, dtype=jnp.float32)[:, None]
    k = jnp.arange(n_freqs, dtype=jnp.float32)[None, :]
    ang = 2.0 * jnp.pi * n * k / n_fft
    return jnp.cos(ang), jnp.sin(ang)                  # each (n_fft, n_freqs)


def mel_filterbank(n_freqs, n_mels, sample_rate, f_min, f_max):
    # torchaudio melscale_fbanks, mel_scale="htk", norm=None
    f_max = float(sample_rate // 2) if f_max is None else f_max
    all_freqs = jnp.linspace(0.0, sample_rate // 2, n_freqs)

    def hz_to_mel(f):
        return 2595.0 * jnp.log10(1.0 + f / 700.0)

    def mel_to_hz(m):
        return 700.0 * (10.0 ** (m / 2595.0) - 1.0)

    m_pts = jnp.linspace(hz_to_mel(jnp.asarray(f_min)),
                         hz_to_mel(jnp.asarray(f_max)), n_mels + 2)
    f_pts = mel_to_hz(m_pts)
    f_diff = f_pts[1:] - f_pts[:-1]                    # (n_mels+1,)
    slopes = f_pts[None, :] - all_freqs[:, None]       # (n_freqs, n_mels+2)
    down = -slopes[:, :-2] / f_diff[:-1]
    up = slopes[:, 2:] / f_diff[1:]
    fb = jnp.maximum(0.0, jnp.minimum(down, up))       # (n_freqs, n_mels)
    return fb.astype(jnp.float32)


# ------------------------------- glue (JAX) --------------------------------
def frame_signal(x):
    """x: (B, T) float32 -> frames (B*n_frames, N_FFT), n_frames."""
    B, T = x.shape
    p = (N_FFT - HOP) // 2
    x = jnp.pad(x, ((0, 0), (p, p)), mode="reflect")           # F.pad(..., 'reflect')
    length = x.shape[-1]
    n_frames = (length + HOP - 1) // HOP                        # pad_for_conv1d
    desired = (n_frames - 1) * HOP + N_FFT
    pad = max(0, desired - length)
    if pad > 0:
        x = jnp.pad(x, ((0, 0), (0, pad)))
    n_stft = (x.shape[-1] - N_FFT) // HOP + 1                   # STFT, center=False
    idx = jnp.arange(n_stft)[:, None] * HOP + jnp.arange(N_FFT)[None, :]
    frames = x[:, idx]                                          # (B, n_stft, N_FFT)
    return frames.reshape(B * n_stft, N_FFT), n_stft
    # TODO(synk): for large T, frame inside the kernel from the padded waveform
    # to avoid the 4x HBM inflation of materialized overlapping frames.


# ------------------------------ Pallas kernel ------------------------------
def mel_l1_kernel(fxy_ref, dft_ref, fb_ref, out_ref):
    # fxy_ref: (2*TM, N_FFT) f32 — rows [0,TM) are x frames, [TM,2TM) y frames.
    # dft_ref: (N_FFT, 2*FP) bf16 — [win*cos | win*sin], window pre-folded.
    # fb_ref:  (FP, MELP)   bf16 — zero-padded mel filterbank.
    fw = fxy_ref[...].astype(jnp.bfloat16)                         # MXU fast path
    spec = jnp.dot(fw, dft_ref[...], preferred_element_type=jnp.float32)
    re = spec[:, :FP]                                              # lane-aligned split
    im = spec[:, FP:]
    power = re * re + im * im                                      # |rfft|^2, f32 VPU
    mel = jnp.dot(power.astype(jnp.bfloat16), fb_ref[...],
                  preferred_element_type=jnp.float32)              # (2*TM, MELP)
    logm = jnp.log10(FLOOR + mel)                                  # f32 EUP
    # padded frame rows / padded mel cols are identical for x and y -> diff 0,
    # so the partial sums are exact.
    absdiff = jnp.abs(logm[:TM] - logm[TM:])                       # (TM, MELP)
    # Independent (8,128) partial sum per grid step (pure VPU adds, no XLU,
    # no scalar read-modify-write; keeps the grid axis parallelizable).
    out_ref[...] = jnp.sum(absdiff.reshape(TM // 8, 8, MELP), axis=0)


def mel_l1_loss(x, y):
    fx, n_frames = frame_signal(x)
    fy, _ = frame_signal(y)
    M = fx.shape[0]
    Mp = ((M + TM - 1) // TM) * TM
    fx = jnp.pad(fx, ((0, Mp - M), (0, 0)))
    fy = jnp.pad(fy, ((0, Mp - M), (0, 0)))
    nblocks = Mp // TM

    # Interleave x/y tiles along sublanes: block i = [x tile i ; y tile i].
    fxy = jnp.concatenate(
        [fx.reshape(nblocks, TM, N_FFT), fy.reshape(nblocks, TM, N_FFT)],
        axis=1).reshape(nblocks * 2 * TM, N_FFT)                   # (2*Mp, N_FFT)

    # Fold Hann window into the DFT matrices; concat cos|sin into one RHS.
    win = hann_window(WIN)
    cosm, sinm = dft_matrices(N_FFT, FREQS)
    wcos = jnp.pad(win[:, None] * cosm, ((0, 0), (0, FP - FREQS)))
    wsin = jnp.pad(win[:, None] * sinm, ((0, 0), (0, FP - FREQS)))
    dftm = jnp.concatenate([wcos, wsin], axis=1).astype(jnp.bfloat16)  # (N_FFT, 2*FP)
    fb = mel_filterbank(FREQS, N_MELS, SAMPLE_RATE, F_MIN, F_MAX)
    fb = jnp.pad(fb, ((0, FP - FREQS), (0, MELP - N_MELS))).astype(jnp.bfloat16)

    partials = pl.pallas_call(
        mel_l1_kernel,
        out_shape=jax.ShapeDtypeStruct((nblocks * 8, MELP), jnp.float32),
        grid_spec=pltpu.PrefetchScalarGridSpec(
            num_scalar_prefetch=0,
            grid=(nblocks,),
            in_specs=[
                pl.BlockSpec((2 * TM, N_FFT), lambda i: (i, 0)),   # x|y frame tiles
                pl.BlockSpec((N_FFT, 2 * FP), lambda i: (0, 0)),   # windowed DFT
                pl.BlockSpec((FP, MELP), lambda i: (0, 0)),        # mel filterbank
            ],
            out_specs=pl.BlockSpec((8, MELP), lambda i: (i, 0)),   # per-block partials
        ),
        compiler_params=pltpu.CompilerParams(
            dimension_semantics=("parallel",)),
    )(fxy, dftm, fb)

    B = x.shape[0]
    count = B * 1 * N_MELS * n_frames       # elements of (B, C*n_mels, frames)
    return jnp.sum(partials) / count        # L1Loss reduction='mean'


# ----------------------------------- main -----------------------------------
if __name__ == "__main__":
    key = jax.random.PRNGKey(0)
    kx, ky = jax.random.split(key)
    B, T = 2, 1024
    x = jax.random.normal(kx, (B, T), dtype=jnp.float32)
    y = jax.random.normal(ky, (B, T), dtype=jnp.float32)

    loss = mel_l1_loss(x, y)
    jax.block_until_ready(loss)
    print("KERNEL_OK")
</pallas_src>

<mosaic_0001>
module attributes {stable_mosaic.version = 11 : i64} {
  func.func @mel_l1_kernel(%arg0: i32, %arg1: memref<1024x128xf32, #tpu.memory_space<vmem>>, %arg2: memref<128x256xbf16, #tpu.memory_space<vmem>>, %arg3: memref<128x128xbf16, #tpu.memory_space<vmem>>, %arg4: memref<8x128xf32, #tpu.memory_space<vmem>>) attributes {dimension_semantics = [#tpu.dimension_semantics<parallel>], iteration_bounds = array<i64: 1>, scalar_prefetch = 0 : i64, scratch_operands = 0 : i64, tpu.core_type = #tpu.core_type<tc>, window_params = [{transform_indices = @transform_0, window_bounds = array<i64: 1024, 128>}, {pipeline_mode = #tpu.pipeline_mode<synchronous>, transform_indices = @transform_1, window_bounds = array<i64: 128, 256>}, {pipeline_mode = #tpu.pipeline_mode<synchronous>, transform_indices = @transform_2, window_bounds = array<i64: 128, 128>}, {transform_indices = @transform_3, window_bounds = array<i64: 8, 128>}]} {
    %c0 = arith.constant 0 : index
    %c0_0 = arith.constant 0 : index
    %0 = vector.load %arg1[%c0, %c0_0] : memref<1024x128xf32, #tpu.memory_space<vmem>>, vector<1024x128xf32>
    %1 = arith.truncf %0 : vector<1024x128xf32> to vector<1024x128xbf16>
    %c0_1 = arith.constant 0 : index
    %c0_2 = arith.constant 0 : index
    %2 = vector.load %arg2[%c0_1, %c0_2] : memref<128x256xbf16, #tpu.memory_space<vmem>>, vector<128x256xbf16>
    %cst = arith.constant dense<0.000000e+00> : vector<1024x256xf32>
    %3 = tpu.matmul %1, %2, %cst {dimension_numbers = #tpu.dot_dimension_numbers<[1], [0], [0], [1], [0, 0, 1, 1], [], []>} : vector<1024x128xbf16>, vector<128x256xbf16>, vector<1024x256xf32> -> vector<1024x256xf32>
    %4 = vector.extract_strided_slice %3 {offsets = [0, 0], sizes = [1024, 128], strides = [1, 1]} : vector<1024x256xf32> to vector<1024x128xf32>
    %5 = vector.extract_strided_slice %3 {offsets = [0, 128], sizes = [1024, 128], strides = [1, 1]} : vector<1024x256xf32> to vector<1024x128xf32>
    %6 = arith.mulf %4, %4 : vector<1024x128xf32>
    %7 = arith.mulf %5, %5 : vector<1024x128xf32>
    %8 = arith.addf %6, %7 : vector<1024x128xf32>
    %9 = arith.truncf %8 : vector<1024x128xf32> to vector<1024x128xbf16>
    %c0_3 = arith.constant 0 : index
    %c0_4 = arith.constant 0 : index
    %10 = vector.load %arg3[%c0_3, %c0_4] : memref<128x128xbf16, #tpu.memory_space<vmem>>, vector<128x128xbf16>
    %cst_5 = arith.constant dense<0.000000e+00> : vector<1024x128xf32>
    %11 = tpu.matmul %9, %10, %cst_5 {dimension_numbers = #tpu.dot_dimension_numbers<[1], [0], [0], [1], [0, 0, 1, 1], [], []>} : vector<1024x128xbf16>, vector<128x128xbf16>, vector<1024x128xf32> -> vector<1024x128xf32>
    %cst_6 = arith.constant 9.99999974E-6 : f32
    %12 = vector.broadcast %cst_6 : f32 to vector<1024x128xf32>
    %13 = arith.addf %12, %11 : vector<1024x128xf32>
    %14 = math.log %13 : vector<1024x128xf32>
    %cst_7 = arith.constant 0.434294492 : f32
    %15 = vector.broadcast %cst_7 : f32 to vector<1024x128xf32>
    %16 = arith.mulf %14, %15 : vector<1024x128xf32>
    %17 = vector.extract_strided_slice %16 {offsets = [0, 0], sizes = [512, 128], strides = [1, 1]} : vector<1024x128xf32> to vector<512x128xf32>
    %18 = vector.extract_strided_slice %16 {offsets = [512, 0], sizes = [512, 128], strides = [1, 1]} : vector<1024x128xf32> to vector<512x128xf32>
    %19 = arith.subf %17, %18 : vector<512x128xf32>
    %20 = math.absf %19 : vector<512x128xf32>
    %21 = vector.shape_cast %20 : vector<512x128xf32> to vector<64x8x128xf32>
    %cst_8 = arith.constant dense<0.000000e+00> : vector<8x128xf32>
    %22 = vector.multi_reduction <add>, %21, %cst_8 [0] : vector<64x8x128xf32> to vector<8x128xf32>
    %c0_9 = arith.constant 0 : index
    %c0_10 = arith.constant 0 : index
    %23 = vector.load %arg4[%c0_9, %c0_10] : memref<8x128xf32, #tpu.memory_space<vmem>>, vector<8x128xf32>
    tpu.vector_store %arg4[%c0_9, %c0_10], %22 {strides = array<i32>} : memref<8x128xf32, #tpu.memory_space<vmem>>, vector<8x128xf32>,
    return
  }
  func.func @transform_0(%arg0: i32) -> (i32, i32) {
    %c0_i32 = arith.constant 0 : i32
    %c0_i32_0 = arith.constant 0 : i32
    return %arg0, %c0_i32 : i32, i32
  }
  func.func @transform_1(%arg0: i32) -> (i32, i32) {
    %c0_i32 = arith.constant 0 : i32
    %c0_i32_0 = arith.constant 0 : i32
    %c0_i32_1 = arith.constant 0 : i32
    return %c0_i32, %c0_i32_0 : i32, i32
  }
  func.func @transform_2(%arg0: i32) -> (i32, i32) {
    %c0_i32 = arith.constant 0 : i32
    %c0_i32_0 = arith.constant 0 : i32
    %c0_i32_1 = arith.constant 0 : i32
    return %c0_i32, %c0_i32_0 : i32, i32
  }
  func.func @transform_3(%arg0: i32) -> (i32, i32) {
    %c0_i32 = arith.constant 0 : i32
    %c0_i32_0 = arith.constant 0 : i32
    return %arg0, %c0_i32 : i32, i32
  }
}

</mosaic_0001>

<bundles_post_ra>
// kernel: tpu_custom_call.1
= control target key start
LH: loop header
LB: loop body
LE: loop exit
PB: predicated region body
PF: predicated region fallthrough
CT: control target
= control target key end

     0   :  { %8 = vsyncpa [#allocation3], 0  ;;  %s3951_s0 = inlined_call_operand.hbm [shape: f32[1024,128], index: 0, kind: input, shape index: {}]   ;;  %s3952_s1 = inlined_call_operand.hbm [shape: bf16[128,256], index: 1, kind: input, shape index: {}]   ;;  %s3953_s2 = inlined_call_operand.hbm [shape: bf16[128,128], index: 2, kind: input, shape index: {}]   ;;  %s3954_s3 = inlined_call_operand.hbm [shape: f32[8,128], index: 3, kind: output, shape index: {}]  }
   0x1   :  { %9 = vsyncpa [#allocation6], 0 }
   0x2   :  { %10 = vsyncpa [#allocation4], 0  ;;  %s3314_s12 = smov [#allocation5]   ;;  %s3315_s14 = smov [#allocation2]  }
   0x3   :  { %s28_s13 = sshll.u32 %s3314_s12, 4  ;;  %s16_s15 = sshll.u32 %s3315_s14, 4  ;;  %s29_s13 = int_to_ptr.vmem [resolvable:$true] %s28_s13  ;;  %s3343_s15 = int_to_ptr.vmem [resolvable:$true] %s16_s15 }
   0x4   :  { %s3220_s18 = scalar_lea.hbm %s3952_s1, 2048 }
   0x5   :  { %p3221_p0 = scmp.ne.s32.totalorder %s3952_s1, %s3220_s18  ;;  %p3224_p1 = scmp.lt.u32.totalorder %s3220_s18, %s3952_s1 }
   0x7   :  { %p3226_p2 = pnand %p3224_p1, %p3221_p0 }
   0x9   :  { %3229 = shalt.err (!%p3226_p2)
}
   0xa   :  { %s3230_s23 = scalar_lea.vmem %s29_s13, 2048  ;;  %p3235_p4 = scmp.lt.s32.totalorder %s29_s13, %s29_s13 }
   0xb   :  { %p3231_p3 = scmp.ne.s32.totalorder %s29_s13, %s3230_s23  ;;  %p3236_p5 = scmp.lt.s32.totalorder %s3230_s23, %s3230_s23 }
   0xd   :  { %p3237_p6 = por %p3236_p5, %p3235_p4 }
   0xf   :  { %p3238_p7 = pnand %p3237_p6, %p3231_p3 }
  0x11   :  { %3241 = shalt.err (!%p3238_p7)
}
  0x12   :  { %s3316_s24 = smov 128   ;;  %s3317_s25 = smov 8  }
  0x13   :  { %34 = dma.hbm_to_vmem [thread:$0]  %s3952_s1, 2048, %s29_s13, [#allocation6], %s3316_s24, %s3316_s24, %s3317_s25  }
  0x14   :  { %s3242_s30 = scalar_lea.hbm %s3951_s0, 16384 }
  0x15   :  { %p3243_p8 = scmp.ne.s32.totalorder %s3951_s0, %s3242_s30  ;;  %p3246_p9 = scmp.lt.u32.totalorder %s3242_s30, %s3951_s0 }
  0x17   :  { %p3248_p10 = pnand %p3246_p9, %p3243_p8 }
  0x19   :  { %3251 = shalt.err (!%p3248_p10)
}
  0x1a   :  { %s3252_s8 = scalar_lea.vmem %s3343_s15, 16384  ;;  %p3257_p12 = scmp.lt.s32.totalorder %s3343_s15, %s3343_s15 }
  0x1b   :  { %p3253_p11 = scmp.ne.s32.totalorder %s3343_s15, %s3252_s8  ;;  %p3258_p13 = scmp.lt.s32.totalorder %s3252_s8, %s3252_s8 }
  0x1d   :  { %p3259_p0 = por %p3258_p13, %p3257_p12 }
  0x1f   :  { %p3260_p1 = pnand %p3259_p0, %p3253_p11 }
  0x21   :  { %3263 = shalt.err (!%p3260_p1)
}
  0x22   :  { %22 = dma.hbm_to_vmem [thread:$0]  %s3951_s0, 16384, %s3343_s15, [#allocation3], %s3316_s24, %s3316_s24, %s3317_s25  }
  0x23   :  { %s3318_s10 = smov [#allocation7]   ;;  %s3264_s14 = scalar_lea.hbm %s3953_s2, 1024 }
  0x24   :  { %s40_s11 = sshll.u32 %s3318_s10, 4  ;;  %p3265_p2 = scmp.ne.s32.totalorder %s3953_s2, %s3264_s14  ;;  %s41_s11 = int_to_ptr.vmem [resolvable:$true] %s40_s11 }
  0x25   :  { %p3268_p3 = scmp.lt.u32.totalorder %s3264_s14, %s3953_s2 }
  0x27   :  { %p3270_p4 = pnand %p3268_p3, %p3265_p2 }
  0x29   :  { %3273 = shalt.err (!%p3270_p4)
}
  0x2a   :  { %s3274_s20 = scalar_lea.vmem %s41_s11, 1024  ;;  %p3279_p6 = scmp.lt.s32.totalorder %s41_s11, %s41_s11 }
  0x2b   :  { %p3275_p5 = scmp.ne.s32.totalorder %s41_s11, %s3274_s20  ;;  %p3280_p7 = scmp.lt.s32.totalorder %s3274_s20, %s3274_s20 }
  0x2d   :  { %p3281_p8 = por %p3280_p7, %p3279_p6 }
  0x2f   :  { %p3282_p9 = pnand %p3281_p8, %p3275_p5 }
  0x31   :  { %3285 = shalt.err (!%p3282_p9)
}
  0x32   :  { %s3319_s0 = smov 64   ;;  %s3320_s15 = smov 4  }
  0x33   :  { %46 = dma.hbm_to_vmem [thread:$0]  %s3953_s2, 1024, %s41_s11, [#allocation6], %s3319_s0, %s3319_s0, %s3320_s15  }
  0x34   :  { %3308 = dma.done.wait [#allocation3], 16384  }
  0x35   :  { %3309 = vsyncadd [#allocation3], 4294950912 }
  0x36   :  { %3310 = dma.done.wait [#allocation6], 3072  }
  0x37   :  { %3311 = vsyncadd [#allocation6], 4294964224  ;;  %v3321_v0 = vmov 0   ;;  %v2932_v1 = vld [vmem:[#allocation5 + $0x4] ss:$8 sps:$4 sm:$0xff]   ;;  %v59_v23 = vld [vmem:[#allocation2 + $0x10] sm:$0xff] }
  0x38   :  { %377 = vmatprep.mubr.bf16.mxu0 %v3321_v0  ;;  %857 = vmatprep.mubr.bf16.mxu1 %v3321_v0  ;;  %v2934_v2 = vld [vmem:[#allocation5] ss:$8 sps:$4 sm:$0xff]   ;;  %v2935_v3 = vld [vmem:[#allocation5 + $0x14] ss:$8 sps:$4 sm:$0xff]   ;;  %v2937_v4 = vld [vmem:[#allocation5 + $0x10] ss:$8 sps:$4 sm:$0xff]  }
  0x39   :  { %345 = vmatprep.subr.bf16.mxu0 %v2932_v1  ;;  %2907 = vmatprep.subr.bf16.mxu1 %v2932_v1  ;;  %v2938_v5 = vld [vmem:[#allocation5 + $0x24] ss:$8 sps:$4 sm:$0xff]   ;;  %v2940_v6 = vld [vmem:[#allocation5 + $0x20] ss:$8 sps:$4 sm:$0xff]   ;;  %v2941_v7 = vld [vmem:[#allocation5 + $0x34] ss:$8 sps:$4 sm:$0xff]  }
  0x3a   :  { %346 = vmatpush1.bf16.msra.mxu0 %v2934_v2  ;;  %2915 = vmatpush1.bf16.msra.mxu1 %v2934_v2  ;;  %v2943_v8 = vld [vmem:[#allocation5 + $0x30] ss:$8 sps:$4 sm:$0xff]   ;;  %v2944_v9 = vld [vmem:[#allocation5 + $0x44] ss:$8 sps:$4 sm:$0xff]   ;;  %v2946_v10 = vld [vmem:[#allocation5 + $0x40] ss:$8 sps:$4 sm:$0xff]  }
  0x3b   :  { %347 = vmatprep.subr.bf16.mxu0 %v2935_v3  ;;  %2908 = vmatprep.subr.bf16.mxu1 %v2935_v3  ;;  %v2947_v11 = vld [vmem:[#allocation5 + $0x54] ss:$8 sps:$4 sm:$0xff]   ;;  %v2949_v12 = vld [vmem:[#allocation5 + $0x50] ss:$8 sps:$4 sm:$0xff]   ;;  %v2950_v13 = vld [vmem:[#allocation5 + $0x64] ss:$8 sps:$4 sm:$0xff]  }
  0x3c   :  { %v2952_v14 = vld [vmem:[#allocation5 + $0x60] ss:$8 sps:$4 sm:$0xff]   ;;  %v2953_v15 = vld [vmem:[#allocation5 + $0x74] ss:$8 sps:$4 sm:$0xff]   ;;  %v2955_v16 = vld [vmem:[#allocation5 + $0x70] ss:$8 sps:$4 sm:$0xff]  }
  0x3d   :  { %v57_v17 = vld [vmem:[#allocation2] sm:$0xff]  ;;  %v58_v18 = vld [vmem:[#allocation2 + $0x8] sm:$0xff]  ;;  %v60_v24 = vld [vmem:[#allocation2 + $0x18] sm:$0xff]  ;;  %s3322_s2 = smov [#allocation8]  }
  0x3e   :  { %348 = vmatpush1.bf16.msra.mxu0 %v2937_v4  ;;  %2916 = vmatpush1.bf16.msra.mxu1 %v2937_v4  ;;  %v153_v19 = vld [vmem:[#allocation2 + $0x300] sm:$0xff]  ;;  %v154_v20 = vld [vmem:[#allocation2 + $0x308] sm:$0xff]  ;;  %v185_v21 = vpack.c.bf16 %v58_v18, %v57_v17  ;;  %v155_v25 = vld [vmem:[#allocation2 + $0x310] sm:$0xff]  ;;  %v186_v27 = vpack.c.bf16 %v60_v24, %v59_v23  ;;  %s2657_s23 = sshll.u32 %s3322_s2, 4  ;;  %s2658_s23 = int_to_ptr.vmem [resolvable:$true] %s2657_s23 }
  0x3f   :  { %349 = vmatprep.subr.bf16.mxu0 %v2938_v5  ;;  %2909 = vmatprep.subr.bf16.mxu1 %v2938_v5  ;;  %v233_v22 = vpack.c.bf16 %v154_v20, %v153_v19  ;;  %v156_v26 = vld [vmem:[#allocation2 + $0x318] sm:$0xff]  ;;  %v61_v29 = vld [vmem:[#allocation2 + $0x20] sm:$0xff]  ;;  %v62_v30 = vld [vmem:[#allocation2 + $0x28] sm:$0xff]  ;;  %s3286_s24 = scalar_lea.vmem %s2658_s23, 128  ;;  %p3291_p11 = scmp.lt.s32.totalorder %s2658_s23, %s2658_s23 }
  0x40   :  { %v234_v28 = vpack.c.bf16 %v156_v26, %v155_v25  ;;  %v157_v31 = vld [vmem:[#allocation2 + $0x320] sm:$0xff]  ;;  %v158_v32 = vld [vmem:[#allocation2 + $0x328] sm:$0xff]  ;;  %v187_v33 = vpack.c.bf16 %v62_v30, %v61_v29  ;;  %v63_v35 = vld [vmem:[#allocation2 + $0x30] sm:$0xff]  ;;  %p3287_p10 = scmp.ne.s32.totalorder %s2658_s23, %s3286_s24  ;;  %p3292_p12 = scmp.lt.s32.totalorder %s3286_s24, %s3286_s24 }
  0x41   :  { %v235_v34 = vpack.c.bf16 %v158_v32, %v157_v31  ;;  %v64_v36 = vld [vmem:[#allocation2 + $0x38] sm:$0xff]  ;;  %v159_v37 = vld [vmem:[#allocation2 + $0x330] sm:$0xff]  ;;  %v65_v41 = vld [vmem:[#allocation2 + $0x40] sm:$0xff] }
  0x42   :  { %350 = vmatpush1.bf16.msra.mxu0 %v2940_v6  ;;  %2917 = vmatpush1.bf16.msra.mxu1 %v2940_v6  ;;  %v160_v38 = vld [vmem:[#allocation2 + $0x338] sm:$0xff]  ;;  %v188_v39 = vpack.c.bf16 %v64_v36, %v63_v35  ;;  %v66_v42 = vld [vmem:[#allocation2 + $0x48] sm:$0xff]  ;;  %v161_v43 = vld [vmem:[#allocation2 + $0x340] sm:$0xff]  ;;  %p3293_p13 = por %p3292_p12, %p3291_p11 }
  0x43   :  { %351 = vmatprep.subr.bf16.mxu0 %v2941_v7  ;;  %2910 = vmatprep.subr.bf16.mxu1 %v2941_v7  ;;  %v236_v40 = vpack.c.bf16 %v160_v38, %v159_v37  ;;  %v162_v44 = vld [vmem:[#allocation2 + $0x348] sm:$0xff]  ;;  %v189_v45 = vpack.c.bf16 %v66_v42, %v65_v41  ;;  %v67_v47 = vld [vmem:[#allocation2 + $0x50] sm:$0xff]  ;;  %v68_v48 = vld [vmem:[#allocation2 + $0x58] sm:$0xff] }
  0x44   :  { %v237_v46 = vpack.c.bf16 %v162_v44, %v161_v43  ;;  %v163_v49 = vld [vmem:[#allocation2 + $0x350] sm:$0xff]  ;;  %v164_v50 = vld [vmem:[#allocation2 + $0x358] sm:$0xff]  ;;  %v190_v51 = vpack.c.bf16 %v68_v48, %v67_v47  ;;  %v69_v53 = vld [vmem:[#allocation2 + $0x60] sm:$0xff]  ;;  %p3294_p0 = pnand %p3293_p13, %p3287_p10 }
  0x45   :  { %v238_v52 = vpack.c.bf16 %v164_v50, %v163_v49  ;;  %v70_v54 = vld [vmem:[#allocation2 + $0x68] sm:$0xff]  ;;  %v165_v55 = vld [vmem:[#allocation2 + $0x360] sm:$0xff]  ;;  %v71_v59 = vld [vmem:[#allocation2 + $0x70] sm:$0xff] }
  0x46   :  { %352 = vmatpush1.bf16.msra.mxu0 %v2943_v8  ;;  %2918 = vmatpush1.bf16.msra.mxu1 %v2943_v8  ;;  %v166_v56 = vld [vmem:[#allocation2 + $0x368] sm:$0xff]  ;;  %v191_v57 = vpack.c.bf16 %v70_v54, %v69_v53  ;;  %v72_v60 = vld [vmem:[#allocation2 + $0x78] sm:$0xff]  ;;  %v167_v61 = vld [vmem:[#allocation2 + $0x370] sm:$0xff] }
  0x47   :  { %353 = vmatprep.subr.bf16.mxu0 %v2944_v9  ;;  %2911 = vmatprep.subr.bf16.mxu1 %v2944_v9  ;;  %v239_v58 = vpack.c.bf16 %v166_v56, %v165_v55  ;;  %v168_v62 = vld [vmem:[#allocation2 + $0x378] sm:$0xff]  ;;  %v192_v63 = vpack.c.bf16 %v72_v60, %v71_v59  ;;  %v73_v2 = vld [vmem:[#allocation2 + $0x80] sm:$0xff]  ;;  %v74_v3 = vld [vmem:[#allocation2 + $0x88] sm:$0xff] }
  0x48   :  { %v240_v1 = vpack.c.bf16 %v168_v62, %v167_v61  ;;  %v169_v4 = vld [vmem:[#allocation2 + $0x380] sm:$0xff]  ;;  %v170_v5 = vld [vmem:[#allocation2 + $0x388] sm:$0xff]  ;;  %v193_v6 = vpack.c.bf16 %v74_v3, %v73_v2  ;;  %v75_v8 = vld [vmem:[#allocation2 + $0x90] sm:$0xff] }
  0x49   :  { %v241_v7 = vpack.c.bf16 %v170_v5, %v169_v4  ;;  %v2956_v9 = vld [vmem:[#allocation7] sm:$0xff]   ;;  %v2958_v17 = vld [vmem:[#allocation7 + $0x10] sm:$0xff]   ;;  %v78_v18 = vld [vmem:[#allocation2 + $0xa8] sm:$0xff] }
  0x4a   :  { %354 = vmatpush1.bf16.msra.mxu0 %v2946_v10  ;;  %2919 = vmatpush1.bf16.msra.mxu1 %v2946_v10  ;;  %v76_v10 = vld [vmem:[#allocation2 + $0x98] sm:$0xff]  ;;  %v173_v19 = vld [vmem:[#allocation2 + $0x3a0] sm:$0xff]  ;;  %v174_v20 = vld [vmem:[#allocation2 + $0x3a8] sm:$0xff] }
  0x4b   :  { %355 = vmatprep.subr.bf16.mxu0 %v2947_v11  ;;  %2912 = vmatprep.subr.bf16.mxu1 %v2947_v11  ;;  %v171_v11 = vld [vmem:[#allocation2 + $0x390] sm:$0xff]  ;;  %v2959_v23 = vld [vmem:[#allocation7 + $0x18] sm:$0xff]   ;;  %v2961_v31 = vld [vmem:[#allocation7 + $0x28] sm:$0xff]  }
  0x4c   :  { %v79_v24 = vld [vmem:[#allocation2 + $0xb0] sm:$0xff]  ;;  %v80_v25 = vld [vmem:[#allocation2 + $0xb8] sm:$0xff]  ;;  %v81_v32 = vld [vmem:[#allocation2 + $0xc0] sm:$0xff] }
  0x4d   :  { %v175_v26 = vld [vmem:[#allocation2 + $0x3b0] sm:$0xff]  ;;  %v196_v29 = vpack.c.bf16 %v80_v25, %v79_v24  ;;  %v178_v35 = vld [vmem:[#allocation2 + $0x3c8] sm:$0xff]  ;;  %v84_v41 = vld [vmem:[#allocation2 + $0xd8] sm:$0xff] }
  0x4e   :  { %356 = vmatpush1.bf16.msra.mxu0 %v2949_v12  ;;  %2920 = vmatpush1.bf16.msra.mxu1 %v2949_v12  ;;  %v172_v12 = vld [vmem:[#allocation2 + $0x398] sm:$0xff]  ;;  %v2962_v36 = vld [vmem:[#allocation7 + $0x30] sm:$0xff]   ;;  %v86_v47 = vld [vmem:[#allocation2 + $0xe8] sm:$0xff] }
  0x4f   :  { %357 = vmatprep.subr.bf16.mxu0 %v2950_v13  ;;  %2913 = vmatprep.subr.bf16.mxu1 %v2950_v13  ;;  %v194_v13 = vpack.c.bf16 %v76_v10, %v75_v8  ;;  %v179_v42 = vld [vmem:[#allocation2 + $0x3d0] sm:$0xff]  ;;  %v180_v43 = vld [vmem:[#allocation2 + $0x3d8] sm:$0xff]  ;;  %v181_v48 = vld [vmem:[#allocation2 + $0x3e0] sm:$0xff] }
  0x50   :  { %v182_v49 = vld [vmem:[#allocation2 + $0x3e8] sm:$0xff]  ;;  %v88_v53 = vld [vmem:[#allocation2 + $0xf8] sm:$0xff]  ;;  %v183_v54 = vld [vmem:[#allocation2 + $0x3f0] sm:$0xff] }
  0x51   :  { %v184_v55 = vld [vmem:[#allocation2 + $0x3f8] sm:$0xff]  ;;  %v90_v59 = vld [vmem:[#allocation2 + $0x108] sm:$0xff]  ;;  %v91_v61 = vld [vmem:[#allocation2 + $0x110] sm:$0xff] }
  0x52   :  { %358 = vmatpush1.bf16.msra.mxu0 %v2952_v14  ;;  %2921 = vmatpush1.bf16.msra.mxu1 %v2952_v14  ;;  %v242_v14 = vpack.c.bf16 %v172_v12, %v171_v11  ;;  %v92_v62 = vld [vmem:[#allocation2 + $0x118] sm:$0xff]  ;;  %v94_v2 = vld [vmem:[#allocation2 + $0x128] sm:$0xff]  ;;  %v95_v4 = vld [vmem:[#allocation2 + $0x130] sm:$0xff] }
  0x53   :  { %359 = vmatprep.subr.bf16.mxu0 %v2953_v15  ;;  %2914 = vmatprep.subr.bf16.mxu1 %v2953_v15  ;;  %v2957_v15 = vld [vmem:[#allocation7 + $0x8] sm:$0xff]   ;;  %v96_v5 = vld [vmem:[#allocation2 + $0x138] sm:$0xff]  ;;  %v99_v10 = vld [vmem:[#allocation2 + $0x150] sm:$0xff] }
  0x54   :  { %v98_v8 = vld [vmem:[#allocation2 + $0x148] sm:$0xff]  ;;  %v100_v11 = vld [vmem:[#allocation2 + $0x158] sm:$0xff]  ;;  %v109_v25 = vld [vmem:[#allocation2 + $0x1a0] sm:$0xff] }
  0x55   :  { %v206_v12 = vpack.c.bf16 %v100_v11, %v99_v10 }
  0x56   :  { %360 = vmatpush1.bf16.msra.mxu0 %v2955_v16  ;;  %2922 = vmatpush1.bf16.msra.mxu1 %v2955_v16  ;;  %v77_v16 = vld [vmem:[#allocation2 + $0xa0] sm:$0xff] }
  0x57   :  { %2763 = vmatprep.subr.bf16.mxu1 %v2956_v9 }
  0x59   :  { %378 = vmatmul.mubr.bf16.vlgmr.msra.gmra.mrb[0].mxu0 %v185_v21  ;;  %858 = vmatmul.mubr.bf16.vlgmr.msra.gmra.mrb[0].mxu1 %v233_v22  ;;  %v195_v21 = vpack.c.bf16 %v78_v18, %v77_v16  ;;  %v243_v22 = vpack.c.bf16 %v174_v20, %v173_v19  ;;  %v103_v16 = vld [vmem:[#allocation2 + $0x170] sm:$0xff]  ;;  %v105_v19 = vld [vmem:[#allocation2 + $0x180] sm:$0xff]  ;;  %v106_v20 = vld [vmem:[#allocation2 + $0x188] sm:$0xff] }
  0x5a   :  { %387 = vmatprep.mubr.bf16.mxu0 %v3321_v0  ;;  %867 = vmatprep.mubr.bf16.mxu1 %v3321_v0 }
  0x5b   :  { %2764 = vmatpush3.bf16.msra.mxu1 %v2956_v9 }
  0x5c   :  { %2765 = vmatprep.subr.bf16.mxu1 %v2957_v15 }
  0x5f   :  { %2766 = vmatpush3.bf16.msra.mxu1 %v2957_v15 }
  0x60   :  { %2767 = vmatprep.subr.bf16.mxu1 %v2958_v17 }
  0x61   :  { %388 = vmatmul.mubr.bf16.gmra.mrb[4].mxu0 %v186_v27  ;;  %868 = vmatmul.mubr.bf16.gmra.mrb[4].mxu1 %v234_v28  ;;  %v176_v27 = vld [vmem:[#allocation2 + $0x3b8] sm:$0xff]  ;;  %v2960_v28 = vld [vmem:[#allocation7 + $0x20] sm:$0xff]  }
  0x62   :  { %397 = vmatprep.mubr.bf16.mxu0 %v3321_v0  ;;  %877 = vmatprep.mubr.bf16.mxu1 %v3321_v0  ;;  %v244_v30 = vpack.c.bf16 %v176_v27, %v175_v26  ;;  %v110_v26 = vld [vmem:[#allocation2 + $0x1a8] sm:$0xff] }
  0x63   :  { %2768 = vmatpush3.bf16.msra.mxu1 %v2958_v17  ;;  %v104_v17 = vld [vmem:[#allocation2 + $0x178] sm:$0xff]  ;;  %v211_v27 = vpack.c.bf16 %v110_v26, %v109_v25 }
  0x64   :  { %2769 = vmatprep.subr.bf16.mxu1 %v2959_v23  ;;  %v208_v18 = vpack.c.bf16 %v104_v17, %v103_v16 }
  0x67   :  { %2770 = vmatpush3.bf16.msra.mxu1 %v2959_v23  ;;  %v108_v23 = vld [vmem:[#allocation2 + $0x198] sm:$0xff] }
  0x68   :  { %2771 = vmatprep.subr.bf16.mxu1 %v2960_v28 }
  0x69   :  { %398 = vmatmul.mubr.bf16.gmra.mrb[8].mxu0 %v187_v33  ;;  %878 = vmatmul.mubr.bf16.gmra.mrb[8].mxu1 %v235_v34  ;;  %v82_v33 = vld [vmem:[#allocation2 + $0xc8] sm:$0xff]  ;;  %v177_v34 = vld [vmem:[#allocation2 + $0x3c0] sm:$0xff] }
  0x6a   :  { %407 = vmatprep.mubr.bf16.mxu0 %v3321_v0  ;;  %887 = vmatprep.mubr.bf16.mxu1 %v3321_v0  ;;  %v197_v37 = vpack.c.bf16 %v82_v33, %v81_v32  ;;  %v245_v38 = vpack.c.bf16 %v178_v35, %v177_v34 }
  0x6b   :  { %2772 = vmatpush3.bf16.msra.mxu1 %v2960_v28  ;;  %v111_v28 = vld [vmem:[#allocation2 + $0x1b0] sm:$0xff] }
  0x6c   :  { %2773 = vmatprep.subr.bf16.mxu1 %v2961_v31 }
  0x6f   :  { %2774 = vmatpush3.bf16.msra.mxu1 %v2961_v31 }
  0x70   :  { %2775 = vmatprep.subr.bf16.mxu1 %v2962_v36 }
  0x71   :  { %408 = vmatmul.mubr.bf16.gmra.mrb[12].mxu0 %v188_v39  ;;  %888 = vmatmul.mubr.bf16.gmra.mrb[12].mxu1 %v236_v40  ;;  %v2963_v39 = vld [vmem:[#allocation7 + $0x38] sm:$0xff]   ;;  %v83_v40 = vld [vmem:[#allocation2 + $0xd0] sm:$0xff] }
  0x72   :  { %417 = vmatprep.mubr.bf16.mxu0 %v3321_v0  ;;  %897 = vmatprep.mubr.bf16.mxu1 %v3321_v0  ;;  %v198_v44 = vpack.c.bf16 %v84_v41, %v83_v40  ;;  %v113_v41 = vld [vmem:[#allocation2 + $0x1c0] sm:$0xff] }
  0x73   :  { %2776 = vmatpush3.bf16.msra.mxu1 %v2962_v36 }
  0x74   :  { %2777 = vmatprep.subr.bf16.mxu1 %v2963_v39 }
  0x77   :  { %2778 = vmatpush3.bf16.msra.mxu1 %v2963_v39 }
  0x79   :  { %418 = vmatmul.mubr.bf16.gmra.mrb[16].mxu0 %v189_v45  ;;  %898 = vmatmul.mubr.bf16.gmra.mrb[16].mxu1 %v237_v46  ;;  %v246_v45 = vpack.c.bf16 %v180_v43, %v179_v42  ;;  %v85_v46 = vld [vmem:[#allocation2 + $0xe0] sm:$0xff]  ;;  %v114_v42 = vld [vmem:[#allocation2 + $0x1c8] sm:$0xff] }
  0x7a   :  { %427 = vmatprep.mubr.bf16.mxu0 %v3321_v0  ;;  %907 = vmatprep.mubr.bf16.mxu1 %v3321_v0  ;;  %v199_v50 = vpack.c.bf16 %v86_v47, %v85_v46  ;;  %v213_v47 = vpack.c.bf16 %v114_v42, %v113_v41 }
  0x81   :  { %428 = vmatmul.mubr.bf16.gmra.mrb[20].mxu0 %v190_v51  ;;  %908 = vmatmul.mubr.bf16.gmra.mrb[20].mxu1 %v238_v52  ;;  %v247_v51 = vpack.c.bf16 %v182_v49, %v181_v48  ;;  %v87_v52 = vld [vmem:[#allocation2 + $0xf0] sm:$0xff] }
  0x82   :  { %437 = vmatprep.mubr.bf16.mxu0 %v3321_v0  ;;  %917 = vmatprep.mubr.bf16.mxu1 %v3321_v0  ;;  %v200_v56 = vpack.c.bf16 %v88_v53, %v87_v52 }
  0x89   :  { %438 = vmatmul.mubr.bf16.gmra.mrb[24].mxu0 %v191_v57  ;;  %918 = vmatmul.mubr.bf16.gmra.mrb[24].mxu1 %v239_v58  ;;  %v248_v57 = vpack.c.bf16 %v184_v55, %v183_v54  ;;  %v89_v58 = vld [vmem:[#allocation2 + $0x100] sm:$0xff]  ;;  %v115_v55 = vld [vmem:[#allocation2 + $0x1d0] sm:$0xff] }
  0x8a   :  { %447 = vmatprep.mubr.bf16.mxu0 %v3321_v0  ;;  %927 = vmatprep.mubr.bf16.mxu1 %v3321_v0  ;;  %v201_v60 = vpack.c.bf16 %v90_v59, %v89_v58 }
  0x91   :  { %448 = vmatmul.mubr.bf16.gmra.mrb[28].mxu0 %v192_v63  ;;  %928 = vmatmul.mubr.bf16.gmra.mrb[28].mxu1 %v240_v1  ;;  %v202_v63 = vpack.c.bf16 %v92_v62, %v91_v61  ;;  %v93_v1 = vld [vmem:[#allocation2 + $0x120] sm:$0xff] }
  0x92   :  { %457 = vmatprep.mubr.bf16.mxu0 %v3321_v0  ;;  %937 = vmatprep.mubr.bf16.mxu1 %v3321_v0  ;;  %v203_v3 = vpack.c.bf16 %v94_v2, %v93_v1 }
  0x99   :  { %458 = vmatmul.mubr.bf16.gmra.mrb[32].mxu0 %v193_v6  ;;  %938 = vmatmul.mubr.bf16.gmra.mrb[32].mxu1 %v241_v7  ;;  %v204_v6 = vpack.c.bf16 %v96_v5, %v95_v4  ;;  %v97_v7 = vld [vmem:[#allocation2 + $0x140] sm:$0xff] }
  0x9a   :  { %467 = vmatprep.mubr.bf16.mxu0 %v3321_v0  ;;  %947 = vmatprep.mubr.bf16.mxu1 %v3321_v0  ;;  %v205_v9 = vpack.c.bf16 %v98_v8, %v97_v7  ;;  %v118_v7 = vld [vmem:[#allocation2 + $0x1e8] sm:$0xff] }
  0xa1   :  { %468 = vmatmul.mubr.bf16.gmra.mrb[36].mxu0 %v194_v13  ;;  %948 = vmatmul.mubr.bf16.gmra.mrb[36].mxu1 %v242_v14  ;;  %v101_v13 = vld [vmem:[#allocation2 + $0x160] sm:$0xff]  ;;  %v102_v14 = vld [vmem:[#allocation2 + $0x168] sm:$0xff] }
  0xa2   :  { %477 = vmatprep.mubr.bf16.mxu0 %v3321_v0  ;;  %957 = vmatprep.mubr.bf16.mxu1 %v3321_v0  ;;  %v207_v15 = vpack.c.bf16 %v102_v14, %v101_v13 }
  0xa9   :  { %478 = vmatmul.mubr.bf16.gmra.mrb[40].mxu0 %v195_v21  ;;  %958 = vmatmul.mubr.bf16.gmra.mrb[40].mxu1 %v243_v22  ;;  %v209_v21 = vpack.c.bf16 %v106_v20, %v105_v19  ;;  %v107_v22 = vld [vmem:[#allocation2 + $0x190] sm:$0xff] }
  0xaa   :  { %487 = vmatprep.mubr.bf16.mxu0 %v3321_v0  ;;  %967 = vmatprep.mubr.bf16.mxu1 %v3321_v0  ;;  %v210_v24 = vpack.c.bf16 %v108_v23, %v107_v22  ;;  %v119_v20 = vld [vmem:[#allocation2 + $0x1f0] sm:$0xff] }
  0xb1   :  { %488 = vmatmul.mubr.bf16.gmra.mrb[44].mxu0 %v196_v29  ;;  %968 = vmatmul.mubr.bf16.gmra.mrb[44].mxu1 %v244_v30  ;;  %v112_v29 = vld [vmem:[#allocation2 + $0x1b8] sm:$0xff] }
  0xb2   :  { %497 = vmatprep.mubr.bf16.mxu0 %v3321_v0  ;;  %977 = vmatprep.mubr.bf16.mxu1 %v3321_v0  ;;  %v212_v33 = vpack.c.bf16 %v112_v29, %v111_v28 }
  0xb9   :  { %498 = vmatmul.mubr.bf16.gmra.mrb[48].mxu0 %v197_v37  ;;  %978 = vmatmul.mubr.bf16.gmra.mrb[48].mxu1 %v245_v38 }
  0xba   :  { %507 = vmatprep.mubr.bf16.mxu0 %v3321_v0  ;;  %987 = vmatprep.mubr.bf16.mxu1 %v3321_v0 }
  0xc1   :  { %508 = vmatmul.mubr.bf16.gmra.mrb[52].mxu0 %v198_v44  ;;  %988 = vmatmul.mubr.bf16.gmra.mrb[52].mxu1 %v246_v45 }
  0xc2   :  { %517 = vmatprep.mubr.bf16.mxu0 %v3321_v0  ;;  %997 = vmatprep.mubr.bf16.mxu1 %v3321_v0 }
  0xc9   :  { %518 = vmatmul.mubr.bf16.gmra.mrb[56].mxu0 %v199_v50  ;;  %998 = vmatmul.mubr.bf16.gmra.mrb[56].mxu1 %v247_v51 }
  0xca   :  { %527 = vmatprep.mubr.bf16.mxu0 %v3321_v0  ;;  %1007 = vmatprep.mubr.bf16.mxu1 %v3321_v0 }
  0xd1   :  { %528 = vmatmul.mubr.bf16.gmra.mrb[60].mxu0 %v200_v56  ;;  %1008 = vmatmul.mubr.bf16.gmra.mrb[60].mxu1 %v248_v57  ;;  %v116_v56 = vld [vmem:[#allocation2 + $0x1d8] sm:$0xff] }
  0xd2   :  { %537 = vmatprep.mubr.bf16.mxu0 %v3321_v0  ;;  %v214_v61 = vpack.c.bf16 %v116_v56, %v115_v55 }
  0xd9   :  { %538 = vmatmul.mubr.bf16.gmra.mrb[64].mxu0 %v201_v60 }
  0xda   :  { %547 = vmatprep.mubr.bf16.mxu0 %v3321_v0 }
  0xe1   :  { %548 = vmatmul.mubr.bf16.gmra.mrb[68].mxu0 %v202_v63 }
  0xe2   :  { %557 = vmatprep.mubr.bf16.mxu0 %v3321_v0 }
  0xe9   :  { %558 = vmatmul.mubr.bf16.gmra.mrb[72].mxu0 %v203_v3 }
  0xea   :  { %567 = vmatprep.mubr.bf16.mxu0 %v3321_v0 }
  0xf1   :  { %568 = vmatmul.mubr.bf16.gmra.mrb[76].mxu0 %v204_v6  ;;  %v117_v6 = vld [vmem:[#allocation2 + $0x1e0] sm:$0xff] }
  0xf2   :  { %577 = vmatprep.mubr.bf16.mxu0 %v3321_v0 }
  0xf9   :  { %578 = vmatmul.mubr.bf16.gmra.mrb[80].mxu0 %v205_v9 }
  0xfa   :  { %587 = vmatprep.mubr.bf16.mxu0 %v3321_v0 }
 0x101   :  { %588 = vmatmul.mubr.bf16.gmra.mrb[84].mxu0 %v206_v12  ;;  %v215_v12 = vpack.c.bf16 %v118_v7, %v117_v6 }
 0x102   :  { %597 = vmatprep.mubr.bf16.mxu0 %v3321_v0 }
 0x109   :  { %598 = vmatmul.mubr.bf16.gmra.mrb[88].mxu0 %v207_v15 }
 0x10a   :  { %607 = vmatprep.mubr.bf16.mxu0 %v3321_v0 }
 0x111   :  { %608 = vmatmul.mubr.bf16.gmra.mrb[92].mxu0 %v208_v18 }
 0x112   :  { %617 = vmatprep.mubr.bf16.mxu0 %v3321_v0 }
 0x119   :  { %618 = vmatmul.mubr.bf16.gmra.mrb[96].mxu0 %v209_v21  ;;  %v120_v21 = vld [vmem:[#allocation2 + $0x1f8] sm:$0xff] }
 0x11a   :  { %627 = vmatprep.mubr.bf16.mxu0 %v3321_v0  ;;  %v216_v26 = vpack.c.bf16 %v120_v21, %v119_v20 }
 0x121   :  { %628 = vmatmul.mubr.bf16.gmra.mrb[100].mxu0 %v210_v24 }
 0x122   :  { %637 = vmatprep.mubr.bf16.mxu0 %v3321_v0 }
 0x129   :  { %638 = vmatmul.mubr.bf16.gmra.mrb[104].mxu0 %v211_v27 }
 0x12a   :  { %647 = vmatprep.mubr.bf16.mxu0 %v3321_v0 }
 0x12c   :  { %v379_v30 = vpop.f32.mrb[0].mxu0 }
 0x12d   :  { %v1018_v31 = vmul.f32 %v379_v30, %v379_v30  ;;  %v381_v32 = vpop.f32.mrb[1].mxu0 }
 0x12e   :  { %v1146_v34 = vmul.f32 %v381_v32, %v381_v32  ;;  %v383_v35 = vpop.f32.mrb[2].mxu0 }
 0x12f   :  { %v1019_v36 = vmul.f32 %v383_v35, %v383_v35  ;;  %v385_v37 = vpop.f32.mrb[3].mxu0  ;;  %v121_v35 = vld [vmem:[#allocation2 + $0x200] sm:$0xff] }
 0x130   :  { %v1274_v38 = vadd.f32 %v1146_v34, %v1018_v31  ;;  %v1147_v39 = vmul.f32 %v385_v37, %v385_v37 }
 0x131   :  { %648 = vmatmul.mubr.bf16.gmra.mrb[108].mxu0 %v212_v33  ;;  %v859_v33 = vpop.f32.mrb[0].mxu1 }
 0x132   :  { %v1275_v40 = vadd.f32 %v1147_v39, %v1019_v36  ;;  %657 = vmatprep.mubr.bf16.mxu0 %v3321_v0  ;;  %v122_v36 = vld [vmem:[#allocation2 + $0x208] sm:$0xff]  ;;  %v1114_v37 = vmul.f32 %v859_v33, %v859_v33 }
 0x134   :  { %v389_v43 = vpop.f32.mrb[4].mxu0  ;;  %v1402_v44 = vpack.c.bf16 %v1275_v40, %v1274_v38  ;;  %v861_v38 = vpop.f32.mrb[1].mxu1 }
 0x135   :  { %v1020_v45 = vmul.f32 %v389_v43, %v389_v43  ;;  %v391_v46 = vpop.f32.mrb[5].mxu0  ;;  %v1242_v39 = vmul.f32 %v861_v38, %v861_v38  ;;  %v863_v40 = vpop.f32.mrb[2].mxu1 }
 0x136   :  { %v1148_v48 = vmul.f32 %v391_v46, %v391_v46  ;;  %v393_v49 = vpop.f32.mrb[6].mxu0  ;;  %2779 = vmatprep.mubr.bf16.mxu1 %v1402_v44  ;;  %v1115_v43 = vmul.f32 %v863_v40, %v863_v40  ;;  %v865_v44 = vpop.f32.mrb[3].mxu1 }
 0x137   :  { %v1021_v50 = vmul.f32 %v393_v49, %v393_v49  ;;  %v395_v51 = vpop.f32.mrb[7].mxu0  ;;  %v1243_v49 = vmul.f32 %v865_v44, %v865_v44 }
 0x138   :  { %v1276_v52 = vadd.f32 %v1148_v48, %v1020_v45  ;;  %v1149_v53 = vmul.f32 %v395_v51, %v395_v51  ;;  %v3435_v48 = vadd.f32 %v1242_v39, %v1114_v37  ;;  %v126_v37 = vld [vmem:[#allocation2 + $0x228] sm:$0xff] }
 0x139   :  { %658 = vmatmul.mubr.bf16.gmra.mrb[112].mxu0 %v213_v47  ;;  %v217_v47 = vpack.c.bf16 %v122_v36, %v121_v35  ;;  %v3437_v56 = vadd.f32 %v1243_v49, %v1115_v43  ;;  %v125_v36 = vld [vmem:[#allocation2 + $0x220] sm:$0xff] }
 0x13a   :  { %v1277_v54 = vadd.f32 %v1149_v53, %v1021_v50  ;;  %667 = vmatprep.mubr.bf16.mxu0 %v3321_v0  ;;  %v869_v50 = vpop.f32.mrb[4].mxu1 }
 0x13b   :  { %v871_v53 = vpop.f32.mrb[5].mxu1 }
 0x13c   :  { %v1403_v57 = vpack.c.bf16 %v1277_v54, %v1276_v52  ;;  %v399_v58 = vpop.f32.mrb[8].mxu0 }
 0x13d   :  { %v1022_v59 = vmul.f32 %v399_v58, %v399_v58  ;;  %v401_v60 = vpop.f32.mrb[9].mxu0 }
 0x13e   :  { %v1150_v62 = vmul.f32 %v401_v60, %v401_v60  ;;  %v403_v63 = vpop.f32.mrb[10].mxu0  ;;  %2780 = vmatmul.mubr.bf16.vlgmr.msra.gmra.mrb[64].mxu1 %v1403_v57  ;;  %v873_v57 = vpop.f32.mrb[6].mxu1  ;;  %v1116_v60 = vmul.f32 %v869_v50, %v869_v50 }
 0x13f   :  { %v1023_v1 = vmul.f32 %v403_v63, %v403_v63  ;;  %v405_v2 = vpop.f32.mrb[11].mxu0 }
 0x140   :  { %v1278_v3 = vadd.f32 %v1150_v62, %v1022_v59  ;;  %v1151_v4 = vmul.f32 %v405_v2, %v405_v2  ;;  %v875_v62 = vpop.f32.mrb[7].mxu1  ;;  %v123_v2 = vld [vmem:[#allocation2 + $0x210] sm:$0xff] }
 0x141   :  { %668 = vmatmul.mubr.bf16.gmra.mrb[116].mxu0 %v214_v61  ;;  %v1244_v61 = vmul.f32 %v871_v53, %v871_v53  ;;  %v879_v63 = vpop.f32.mrb[8].mxu1  ;;  %v1245_v6 = vmul.f32 %v875_v62, %v875_v62  ;;  %v219_v53 = vpack.c.bf16 %v126_v37, %v125_v36 }
 0x142   :  { %v1279_v5 = vadd.f32 %v1151_v4, %v1023_v1  ;;  %677 = vmatprep.mubr.bf16.mxu0 %v3321_v0  ;;  %v881_v7 = vpop.f32.mrb[9].mxu1 }
 0x143   :  { %v3440_v4 = vadd.f32 %v1244_v61, %v1116_v60 }
 0x144   :  { %v409_v8 = vpop.f32.mrb[12].mxu0  ;;  %v1404_v9 = vpack.c.bf16 %v1279_v5, %v1278_v3  ;;  %v124_v3 = vld [vmem:[#allocation2 + $0x218] sm:$0xff]  ;;  %v1117_v5 = vmul.f32 %v873_v57, %v873_v57 }
 0x145   :  { %v1024_v10 = vmul.f32 %v409_v8, %v409_v8  ;;  %v411_v11 = vpop.f32.mrb[13].mxu0  ;;  %v1118_v8 = vmul.f32 %v879_v63, %v879_v63 }
 0x146   :  { %v1152_v13 = vmul.f32 %v411_v11, %v411_v11  ;;  %v413_v14 = vpop.f32.mrb[14].mxu0  ;;  %2783 = vmatprep.mubr.bf16.mxu1 %v1404_v9  ;;  %v1246_v9 = vmul.f32 %v881_v7, %v881_v7 }
 0x147   :  { %v1025_v15 = vmul.f32 %v413_v14, %v413_v14  ;;  %v415_v16 = vpop.f32.mrb[15].mxu0 }
 0x148   :  { %v1280_v17 = vadd.f32 %v1152_v13, %v1024_v10  ;;  %v1153_v18 = vmul.f32 %v415_v16, %v415_v16  ;;  %v883_v10 = vpop.f32.mrb[10].mxu1  ;;  %v3442_v13 = vadd.f32 %v1245_v6, %v1117_v5 }
 0x149   :  { %678 = vmatmul.mubr.bf16.gmra.mrb[120].mxu0 %v215_v12  ;;  %v1119_v14 = vmul.f32 %v883_v10, %v883_v10  ;;  %v127_v10 = vld [vmem:[#allocation2 + $0x230] sm:$0xff] }
 0x14a   :  { %v1281_v19 = vadd.f32 %v1153_v18, %v1025_v15  ;;  %687 = vmatprep.mubr.bf16.mxu0 %v3321_v0  ;;  %v885_v15 = vpop.f32.mrb[11].mxu1  ;;  %v218_v18 = vpack.c.bf16 %v124_v3, %v123_v2 }
 0x14b   :  { %v1247_v20 = vmul.f32 %v885_v15, %v885_v15  ;;  %v889_v21 = vpop.f32.mrb[12].mxu1 }
 0x14c   :  { %v419_v22 = vpop.f32.mrb[16].mxu0  ;;  %v1405_v23 = vpack.c.bf16 %v1281_v19, %v1280_v17  ;;  %v3444_v19 = vadd.f32 %v1246_v9, %v1118_v8 }
 0x14d   :  { %v1026_v24 = vmul.f32 %v419_v22, %v419_v22  ;;  %v421_v25 = vpop.f32.mrb[17].mxu0 }
 0x14e   :  { %v1154_v27 = vmul.f32 %v421_v25, %v421_v25  ;;  %v423_v28 = vpop.f32.mrb[18].mxu0  ;;  %2784 = vmatmul.mubr.bf16.gmra.mrb[68].mxu1 %v1405_v23 }
 0x14f   :  { %v1027_v29 = vmul.f32 %v423_v28, %v423_v28  ;;  %v425_v30 = vpop.f32.mrb[19].mxu0 }
 0x150   :  { %v1282_v31 = vadd.f32 %v1154_v27, %v1026_v24  ;;  %v1155_v32 = vmul.f32 %v425_v30, %v425_v30  ;;  %v891_v24 = vpop.f32.mrb[13].mxu1  ;;  %v3446_v27 = vadd.f32 %v1247_v20, %v1119_v14 }
 0x151   :  { %688 = vmatmul.mubr.bf16.gmra.mrb[124].mxu0 %v216_v26  ;;  %v893_v28 = vpop.f32.mrb[14].mxu1 }
 0x152   :  { %v1283_v34 = vadd.f32 %v1155_v32, %v1027_v29  ;;  %697 = vmatprep.mubr.bf16.mxu0 %v3321_v0  ;;  %v1248_v32 = vmul.f32 %v891_v24, %v891_v24  ;;  %v895_v33 = vpop.f32.mrb[15].mxu1  ;;  %v1121_v39 = vmul.f32 %v893_v28, %v893_v28 }
 0x153   :  { %v1249_v40 = vmul.f32 %v895_v33, %v895_v33 }
 0x154   :  { %v429_v41 = vpop.f32.mrb[20].mxu0  ;;  %v1406_v42 = vpack.c.bf16 %v1283_v34, %v1282_v31  ;;  %v1120_v31 = vmul.f32 %v889_v21, %v889_v21  ;;  %v899_v34 = vpop.f32.mrb[16].mxu1 }
 0x155   :  { %v1028_v45 = vmul.f32 %v429_v41, %v429_v41  ;;  %v431_v46 = vpop.f32.mrb[21].mxu0  ;;  %v901_v41 = vpop.f32.mrb[17].mxu1 }
 0x156   :  { %v1156_v51 = vmul.f32 %v431_v46, %v431_v46  ;;  %v433_v52 = vpop.f32.mrb[22].mxu0  ;;  %2787 = vmatprep.mubr.bf16.mxu1 %v1406_v42  ;;  %v3449_v38 = vadd.f32 %v1248_v32, %v1120_v31  ;;  %v1122_v42 = vmul.f32 %v899_v34, %v899_v34  ;;  %v1250_v43 = vmul.f32 %v901_v41, %v901_v41  ;;  %v903_v44 = vpop.f32.mrb[18].mxu1 }
 0x157   :  { %v1029_v54 = vmul.f32 %v433_v52, %v433_v52  ;;  %v435_v55 = vpop.f32.mrb[23].mxu0  ;;  %v1123_v49 = vmul.f32 %v903_v44, %v903_v44  ;;  %v905_v50 = vpop.f32.mrb[19].mxu1 }
 0x158   :  { %v1284_v58 = vadd.f32 %v1156_v51, %v1028_v45  ;;  %v1157_v59 = vmul.f32 %v435_v55, %v435_v55  ;;  %v1251_v55 = vmul.f32 %v905_v50, %v905_v50  ;;  %v909_v57 = vpop.f32.mrb[20].mxu1  ;;  %v129_v50 = vld [vmem:[#allocation2 + $0x240] sm:$0xff] }
 0x159   :  { %698 = vmatmul.mubr.bf16.gmra.mrb[128].mxu0 %v217_v47  ;;  %v3451_v47 = vadd.f32 %v1249_v40, %v1121_v39  ;;  %v911_v60 = vpop.f32.mrb[21].mxu1  ;;  %v1124_v5 = vmul.f32 %v909_v57, %v909_v57 }
 0x15a   :  { %v1285_v1 = vadd.f32 %v1157_v59, %v1029_v54  ;;  %707 = vmatprep.mubr.bf16.mxu0 %v3321_v0  ;;  %v3453_v54 = vadd.f32 %v1250_v43, %v1122_v42  ;;  %v3455_v63 = vadd.f32 %v1251_v55, %v1123_v49  ;;  %v1252_v6 = vmul.f32 %v911_v60, %v911_v60 }
 0x15c   :  { %v439_v11 = vpop.f32.mrb[24].mxu0  ;;  %v1407_v12 = vpack.c.bf16 %v1285_v1, %v1284_v58  ;;  %v913_v1 = vpop.f32.mrb[22].mxu1 }
 0x15d   :  { %v1030_v16 = vmul.f32 %v439_v11, %v439_v11  ;;  %v441_v17 = vpop.f32.mrb[25].mxu0  ;;  %v915_v7 = vpop.f32.mrb[23].mxu1  ;;  %v128_v11 = vld [vmem:[#allocation2 + $0x238] sm:$0xff]  ;;  %v1125_v14 = vmul.f32 %v913_v1, %v913_v1 }
 0x15e   :  { %v1158_v22 = vmul.f32 %v441_v17, %v441_v17  ;;  %v443_v23 = vpop.f32.mrb[26].mxu0  ;;  %2788 = vmatmul.mubr.bf16.gmra.mrb[72].mxu1 %v1407_v12  ;;  %v919_v8 = vpop.f32.mrb[24].mxu1  ;;  %v3458_v12 = vadd.f32 %v1252_v6, %v1124_v5  ;;  %v1253_v15 = vmul.f32 %v915_v7, %v915_v7 }
 0x15f   :  { %v1031_v25 = vmul.f32 %v443_v23, %v443_v23  ;;  %v445_v26 = vpop.f32.mrb[27].mxu0  ;;  %v1126_v17 = vmul.f32 %v919_v8, %v919_v8 }
 0x160   :  { %v1286_v29 = vadd.f32 %v1158_v22, %v1030_v16  ;;  %v1159_v30 = vmul.f32 %v445_v26, %v445_v26  ;;  %v921_v16 = vpop.f32.mrb[25].mxu1  ;;  %v3460_v23 = vadd.f32 %v1253_v15, %v1125_v14 }
 0x161   :  { %708 = vmatmul.mubr.bf16.gmra.mrb[132].mxu0 %v218_v18  ;;  %v1254_v18 = vmul.f32 %v921_v16, %v921_v16  ;;  %v923_v20 = vpop.f32.mrb[26].mxu1 }
 0x162   :  { %v1287_v35 = vadd.f32 %v1159_v30, %v1031_v25  ;;  %717 = vmatprep.mubr.bf16.mxu0 %v3321_v0  ;;  %v1127_v24 = vmul.f32 %v923_v20, %v923_v20  ;;  %v925_v25 = vpop.f32.mrb[27].mxu1 }
 0x163   :  { %v3462_v30 = vadd.f32 %v1254_v18, %v1126_v17  ;;  %v1255_v31 = vmul.f32 %v925_v25, %v925_v25 }
 0x164   :  { %v449_v45 = vpop.f32.mrb[28].mxu0  ;;  %v1408_v46 = vpack.c.bf16 %v1287_v35, %v1286_v29  ;;  %v220_v29 = vpack.c.bf16 %v128_v11, %v127_v10  ;;  %v929_v32 = vpop.f32.mrb[28].mxu1 }
 0x165   :  { %v1032_v51 = vmul.f32 %v449_v45, %v449_v45  ;;  %v451_v52 = vpop.f32.mrb[29].mxu0  ;;  %v931_v35 = vpop.f32.mrb[29].mxu1  ;;  %v3464_v39 = vadd.f32 %v1255_v31, %v1127_v24  ;;  %v1128_v43 = vmul.f32 %v929_v32, %v929_v32  ;;  %v132_v31 = vld [vmem:[#allocation2 + $0x258] sm:$0xff] }
 0x166   :  { %v1160_v58 = vmul.f32 %v451_v52, %v451_v52  ;;  %v453_v59 = vpop.f32.mrb[30].mxu0  ;;  %2791 = vmatprep.mubr.bf16.mxu1 %v1408_v46  ;;  %v933_v40 = vpop.f32.mrb[30].mxu1  ;;  %v1256_v44 = vmul.f32 %v931_v35, %v931_v35 }
 0x167   :  { %v1033_v61 = vmul.f32 %v453_v59, %v453_v59  ;;  %v455_v62 = vpop.f32.mrb[31].mxu0  ;;  %v935_v45 = vpop.f32.mrb[31].mxu1 }
 0x168   :  { %v1288_v2 = vadd.f32 %v1160_v58, %v1032_v51  ;;  %v1161_v3 = vmul.f32 %v455_v62, %v455_v62  ;;  %v130_v51 = vld [vmem:[#allocation2 + $0x248] sm:$0xff]  ;;  %v3467_v52 = vadd.f32 %v1256_v44, %v1128_v43  ;;  %v1257_v55 = vmul.f32 %v935_v45, %v935_v45 }
 0x169   :  { %718 = vmatmul.mubr.bf16.gmra.mrb[136].mxu0 %v219_v53  ;;  %v1129_v53 = vmul.f32 %v933_v40, %v933_v40  ;;  %v221_v7 = vpack.c.bf16 %v130_v51, %v129_v50 }
 0x16a   :  { %v1289_v9 = vadd.f32 %v1161_v3, %v1033_v61  ;;  %727 = vmatprep.mubr.bf16.mxu0 %v3321_v0 }
 0x16b   :  { %v3469_v1 = vadd.f32 %v1257_v55, %v1129_v53 }
 0x16c   :  { %v459_v21 = vpop.f32.mrb[32].mxu0  ;;  %v1409_v22 = vpack.c.bf16 %v1289_v9, %v1288_v2  ;;  %v939_v46 = vpop.f32.mrb[32].mxu1 }
 0x16d   :  { %v1034_v26 = vmul.f32 %v459_v21, %v459_v21  ;;  %v461_v28 = vpop.f32.mrb[33].mxu0  ;;  %v941_v57 = vpop.f32.mrb[33].mxu1  ;;  %v1130_v58 = vmul.f32 %v939_v46, %v939_v46 }
 0x16e   :  { %v1162_v33 = vmul.f32 %v461_v28, %v461_v28  ;;  %v463_v34 = vpop.f32.mrb[34].mxu0  ;;  %2792 = vmatmul.mubr.bf16.gmra.mrb[76].mxu1 %v1409_v22  ;;  %v1258_v59 = vmul.f32 %v941_v57, %v941_v57  ;;  %v943_v60 = vpop.f32.mrb[34].mxu1 }
 0x16f   :  { %v1035_v36 = vmul.f32 %v463_v34, %v463_v34  ;;  %v465_v37 = vpop.f32.mrb[35].mxu0  ;;  %v1131_v2 = vmul.f32 %v943_v60, %v943_v60  ;;  %v945_v3 = vpop.f32.mrb[35].mxu1 }
 0x170   :  { %v1290_v41 = vadd.f32 %v1162_v33, %v1034_v26  ;;  %v1163_v42 = vmul.f32 %v465_v37, %v465_v37  ;;  %v3471_v8 = vadd.f32 %v1258_v59, %v1130_v58  ;;  %v1259_v9 = vmul.f32 %v945_v3, %v945_v3  ;;  %v133_v3 = vld [vmem:[#allocation2 + $0x260] sm:$0xff] }
 0x171   :  { %728 = vmatmul.mubr.bf16.gmra.mrb[140].mxu0 %v220_v29  ;;  %v131_v29 = vld [vmem:[#allocation2 + $0x250] sm:$0xff] }
 0x172   :  { %v1291_v49 = vadd.f32 %v1163_v42, %v1035_v36  ;;  %737 = vmatprep.mubr.bf16.mxu0 %v3321_v0  ;;  %v3473_v18 = vadd.f32 %v1259_v9, %v1131_v2  ;;  %v222_v43 = vpack.c.bf16 %v132_v31, %v131_v29 }
 0x174   :  { %v469_v61 = vpop.f32.mrb[36].mxu0  ;;  %v1410_v62 = vpack.c.bf16 %v1291_v49, %v1290_v41  ;;  %v949_v10 = vpop.f32.mrb[36].mxu1 }
 0x175   :  { %v1036_v5 = vmul.f32 %v469_v61, %v469_v61  ;;  %v471_v6 = vpop.f32.mrb[37].mxu0  ;;  %v951_v15 = vpop.f32.mrb[37].mxu1  ;;  %v1132_v24 = vmul.f32 %v949_v10, %v949_v10 }
 0x176   :  { %v1164_v11 = vmul.f32 %v471_v6, %v471_v6  ;;  %v473_v14 = vpop.f32.mrb[38].mxu0  ;;  %2795 = vmatprep.mubr.bf16.mxu1 %v1410_v62  ;;  %v953_v20 = vpop.f32.mrb[38].mxu1  ;;  %v1260_v25 = vmul.f32 %v951_v15, %v951_v15 }
 0x177   :  { %v1037_v16 = vmul.f32 %v473_v14, %v473_v14  ;;  %v475_v17 = vpop.f32.mrb[39].mxu0  ;;  %v955_v26 = vpop.f32.mrb[39].mxu1  ;;  %v1133_v33 = vmul.f32 %v953_v20, %v953_v20 }
 0x178   :  { %v1292_v21 = vadd.f32 %v1164_v11, %v1036_v5  ;;  %v1165_v22 = vmul.f32 %v475_v17, %v475_v17  ;;  %v3476_v32 = vadd.f32 %v1260_v25, %v1132_v24  ;;  %v1261_v34 = vmul.f32 %v955_v26, %v955_v26  ;;  %v134_v5 = vld [vmem:[#allocation2 + $0x268] sm:$0xff] }
 0x179   :  { %738 = vmatmul.mubr.bf16.gmra.mrb[144].mxu0 %v221_v7  ;;  %v223_v15 = vpack.c.bf16 %v134_v5, %v133_v3 }
 0x17a   :  { %v1293_v28 = vadd.f32 %v1165_v22, %v1037_v16  ;;  %747 = vmatprep.mubr.bf16.mxu0 %v3321_v0  ;;  %v3478_v37 = vadd.f32 %v1261_v34, %v1133_v33 }
 0x17c   :  { %v479_v35 = vpop.f32.mrb[40].mxu0  ;;  %v1411_v36 = vpack.c.bf16 %v1293_v28, %v1292_v21  ;;  %v959_v40 = vpop.f32.mrb[40].mxu1 }
 0x17d   :  { %v1038_v41 = vmul.f32 %v479_v35, %v479_v35  ;;  %v481_v42 = vpop.f32.mrb[41].mxu0  ;;  %v1134_v44 = vmul.f32 %v959_v40, %v959_v40  ;;  %v961_v45 = vpop.f32.mrb[41].mxu1  ;;  %v135_v40 = vld [vmem:[#allocation2 + $0x270] sm:$0xff] }
 0x17e   :  { %v1166_v46 = vmul.f32 %v481_v42, %v481_v42  ;;  %v483_v49 = vpop.f32.mrb[42].mxu0  ;;  %2796 = vmatmul.mubr.bf16.gmra.mrb[80].mxu1 %v1411_v36  ;;  %v1262_v50 = vmul.f32 %v961_v45, %v961_v45  ;;  %v963_v51 = vpop.f32.mrb[42].mxu1 }
 0x17f   :  { %v1039_v53 = vmul.f32 %v483_v49, %v483_v49  ;;  %v485_v55 = vpop.f32.mrb[43].mxu0  ;;  %v1135_v57 = vmul.f32 %v963_v51, %v963_v51  ;;  %v965_v58 = vpop.f32.mrb[43].mxu1 }
 0x180   :  { %v1294_v59 = vadd.f32 %v1166_v46, %v1038_v41  ;;  %v1167_v60 = vmul.f32 %v485_v55, %v485_v55  ;;  %v3480_v61 = vadd.f32 %v1262_v50, %v1134_v44  ;;  %v1263_v62 = vmul.f32 %v965_v58, %v965_v58  ;;  %v136_v41 = vld [vmem:[#allocation2 + $0x278] sm:$0xff] }
 0x181   :  { %748 = vmatmul.mubr.bf16.gmra.mrb[148].mxu0 %v222_v43  ;;  %v224_v50 = vpack.c.bf16 %v136_v41, %v135_v40 }
 0x182   :  { %v1295_v2 = vadd.f32 %v1167_v60, %v1039_v53  ;;  %757 = vmatprep.mubr.bf16.mxu0 %v3321_v0  ;;  %v3483_v6 = vadd.f32 %v1263_v62, %v1135_v57 }
 0x184   :  { %v489_v7 = vpop.f32.mrb[44].mxu0  ;;  %v1412_v9 = vpack.c.bf16 %v1295_v2, %v1294_v59  ;;  %v969_v10 = vpop.f32.mrb[44].mxu1 }
 0x185   :  { %v1040_v11 = vmul.f32 %v489_v7, %v489_v7  ;;  %v491_v14 = vpop.f32.mrb[45].mxu0  ;;  %v1136_v16 = vmul.f32 %v969_v10, %v969_v10  ;;  %v971_v17 = vpop.f32.mrb[45].mxu1 }
 0x186   :  { %v1168_v20 = vmul.f32 %v491_v14, %v491_v14  ;;  %v493_v21 = vpop.f32.mrb[46].mxu0  ;;  %2799 = vmatprep.mubr.bf16.mxu1 %v1412_v9  ;;  %v1264_v22 = vmul.f32 %v971_v17, %v971_v17  ;;  %v973_v24 = vpop.f32.mrb[46].mxu1  ;;  %v137_v14 = vld [vmem:[#allocation2 + $0x280] sm:$0xff] }
 0x187   :  { %v1041_v25 = vmul.f32 %v493_v21, %v493_v21  ;;  %v495_v26 = vpop.f32.mrb[47].mxu0  ;;  %v1137_v28 = vmul.f32 %v973_v24, %v973_v24  ;;  %v975_v29 = vpop.f32.mrb[47].mxu1 }
 0x188   :  { %v1296_v31 = vadd.f32 %v1168_v20, %v1040_v11  ;;  %v1169_v33 = vmul.f32 %v495_v26, %v495_v26  ;;  %v3485_v34 = vadd.f32 %v1264_v22, %v1136_v16  ;;  %v1265_v35 = vmul.f32 %v975_v29, %v975_v29 }
 0x189   :  { %758 = vmatmul.mubr.bf16.gmra.mrb[152].mxu0 %v223_v15  ;;  %v138_v15 = vld [vmem:[#allocation2 + $0x288] sm:$0xff] }
 0x18a   :  { %v1297_v36 = vadd.f32 %v1169_v33, %v1041_v25  ;;  %767 = vmatprep.mubr.bf16.mxu0 %v3321_v0  ;;  %v3488_v42 = vadd.f32 %v1265_v35, %v1137_v28  ;;  %v225_v25 = vpack.c.bf16 %v138_v15, %v137_v14 }
 0x18c   :  { %v499_v43 = vpop.f32.mrb[48].mxu0  ;;  %v1413_v44 = vpack.c.bf16 %v1297_v36, %v1296_v31  ;;  %v979_v45 = vpop.f32.mrb[48].mxu1 }
 0x18d   :  { %v1042_v46 = vmul.f32 %v499_v43, %v499_v43  ;;  %v501_v49 = vpop.f32.mrb[49].mxu0  ;;  %v1138_v51 = vmul.f32 %v979_v45, %v979_v45  ;;  %v981_v53 = vpop.f32.mrb[49].mxu1 }
 0x18e   :  { %v1170_v55 = vmul.f32 %v501_v49, %v501_v49  ;;  %v503_v57 = vpop.f32.mrb[50].mxu0  ;;  %2800 = vmatmul.mubr.bf16.gmra.mrb[84].mxu1 %v1413_v44  ;;  %v1266_v58 = vmul.f32 %v981_v53, %v981_v53  ;;  %v983_v59 = vpop.f32.mrb[50].mxu1  ;;  %v140_v53 = vld [vmem:[#allocation2 + $0x298] sm:$0xff] }
 0x18f   :  { %v1043_v60 = vmul.f32 %v503_v57, %v503_v57  ;;  %v505_v62 = vpop.f32.mrb[51].mxu0  ;;  %v1139_v2 = vmul.f32 %v983_v59, %v983_v59  ;;  %v985_v3 = vpop.f32.mrb[51].mxu1 }
 0x190   :  { %v1298_v5 = vadd.f32 %v1170_v55, %v1042_v46  ;;  %v1171_v7 = vmul.f32 %v505_v62, %v505_v62  ;;  %v3490_v9 = vadd.f32 %v1266_v58, %v1138_v51  ;;  %v1267_v10 = vmul.f32 %v985_v3, %v985_v3  ;;  %v139_v51 = vld [vmem:[#allocation2 + $0x290] sm:$0xff] }
 0x191   :  { %768 = vmatmul.mubr.bf16.gmra.mrb[156].mxu0 %v224_v50 }
 0x192   :  { %v1299_v11 = vadd.f32 %v1171_v7, %v1043_v60  ;;  %777 = vmatprep.mubr.bf16.mxu0 %v3321_v0  ;;  %v3493_v16 = vadd.f32 %v1267_v10, %v1139_v2  ;;  %v226_v2 = vpack.c.bf16 %v140_v53, %v139_v51 }
 0x194   :  { %v509_v17 = vpop.f32.mrb[52].mxu0  ;;  %v1414_v20 = vpack.c.bf16 %v1299_v11, %v1298_v5  ;;  %v989_v21 = vpop.f32.mrb[52].mxu1 }
 0x195   :  { %v1044_v22 = vmul.f32 %v509_v17, %v509_v17  ;;  %v511_v24 = vpop.f32.mrb[53].mxu0  ;;  %v1140_v26 = vmul.f32 %v989_v21, %v989_v21  ;;  %v991_v28 = vpop.f32.mrb[53].mxu1 }
 0x196   :  { %v1172_v29 = vmul.f32 %v511_v24, %v511_v24  ;;  %v513_v31 = vpop.f32.mrb[54].mxu0  ;;  %2803 = vmatprep.mubr.bf16.mxu1 %v1414_v20  ;;  %v1268_v33 = vmul.f32 %v991_v28, %v991_v28  ;;  %v993_v35 = vpop.f32.mrb[54].mxu1 }
 0x197   :  { %v1045_v36 = vmul.f32 %v513_v31, %v513_v31  ;;  %v515_v40 = vpop.f32.mrb[55].mxu0  ;;  %v1141_v41 = vmul.f32 %v993_v35, %v993_v35  ;;  %v995_v43 = vpop.f32.mrb[55].mxu1  ;;  %v142_v31 = vld [vmem:[#allocation2 + $0x2a8] sm:$0xff] }
 0x198   :  { %v1300_v44 = vadd.f32 %v1172_v29, %v1044_v22  ;;  %v1173_v45 = vmul.f32 %v515_v40, %v515_v40  ;;  %v3495_v46 = vadd.f32 %v1268_v33, %v1140_v26  ;;  %v1269_v49 = vmul.f32 %v995_v43, %v995_v43  ;;  %v141_v29 = vld [vmem:[#allocation2 + $0x2a0] sm:$0xff] }
 0x199   :  { %778 = vmatmul.mubr.bf16.gmra.mrb[160].mxu0 %v225_v25 }
 0x19a   :  { %v1301_v50 = vadd.f32 %v1173_v45, %v1045_v36  ;;  %787 = vmatprep.mubr.bf16.mxu0 %v3321_v0  ;;  %v3498_v55 = vadd.f32 %v1269_v49, %v1141_v41 }
 0x19c   :  { %v519_v57 = vpop.f32.mrb[56].mxu0  ;;  %v1415_v58 = vpack.c.bf16 %v1301_v50, %v1300_v44  ;;  %v999_v59 = vpop.f32.mrb[56].mxu1  ;;  %v227_v44 = vpack.c.bf16 %v142_v31, %v141_v29 }
 0x19d   :  { %v1046_v60 = vmul.f32 %v519_v57, %v519_v57  ;;  %v521_v62 = vpop.f32.mrb[57].mxu0  ;;  %v1142_v3 = vmul.f32 %v999_v59, %v999_v59  ;;  %v1001_v5 = vpop.f32.mrb[57].mxu1 }
 0x19e   :  { %v1174_v7 = vmul.f32 %v521_v62, %v521_v62  ;;  %v523_v10 = vpop.f32.mrb[58].mxu0  ;;  %2804 = vmatmul.mubr.bf16.gmra.mrb[88].mxu1 %v1415_v58  ;;  %v1270_v11 = vmul.f32 %v1001_v5, %v1001_v5  ;;  %v1003_v14 = vpop.f32.mrb[58].mxu1 }
 0x19f   :  { %v1047_v15 = vmul.f32 %v523_v10, %v523_v10  ;;  %v525_v17 = vpop.f32.mrb[59].mxu0  ;;  %v1143_v20 = vmul.f32 %v1003_v14, %v1003_v14  ;;  %v1005_v21 = vpop.f32.mrb[59].mxu1  ;;  %v144_v14 = vld [vmem:[#allocation2 + $0x2b8] sm:$0xff] }
 0x1a0   :  { %v1302_v22 = vadd.f32 %v1174_v7, %v1046_v60  ;;  %v1175_v24 = vmul.f32 %v525_v17, %v525_v17  ;;  %v3500_v25 = vadd.f32 %v1270_v11, %v1142_v3  ;;  %v1271_v26 = vmul.f32 %v1005_v21, %v1005_v21  ;;  %v143_v11 = vld [vmem:[#allocation2 + $0x2b0] sm:$0xff] }
 0x1a1   :  { %788 = vmatmul.mubr.bf16.gmra.mrb[164].mxu0 %v226_v2 }
 0x1a2   :  { %v1303_v28 = vadd.f32 %v1175_v24, %v1047_v15  ;;  %797 = vmatprep.mubr.bf16.mxu0 %v3321_v0  ;;  %v3503_v33 = vadd.f32 %v1271_v26, %v1143_v20  ;;  %v228_v24 = vpack.c.bf16 %v144_v14, %v143_v11 }
 0x1a4   :  { %v529_v35 = vpop.f32.mrb[60].mxu0  ;;  %v1416_v36 = vpack.c.bf16 %v1303_v28, %v1302_v22  ;;  %v1009_v40 = vpop.f32.mrb[60].mxu1 }
 0x1a5   :  { %v1048_v41 = vmul.f32 %v529_v35, %v529_v35  ;;  %v531_v43 = vpop.f32.mrb[61].mxu0  ;;  %v1144_v45 = vmul.f32 %v1009_v40, %v1009_v40  ;;  %v1011_v49 = vpop.f32.mrb[61].mxu1 }
 0x1a6   :  { %v1176_v50 = vmul.f32 %v531_v43, %v531_v43  ;;  %v533_v51 = vpop.f32.mrb[62].mxu0  ;;  %2807 = vmatprep.mubr.bf16.mxu1 %v1416_v36  ;;  %v1272_v53 = vmul.f32 %v1011_v49, %v1011_v49  ;;  %v1013_v57 = vpop.f32.mrb[62].mxu1  ;;  %v146_v43 = vld [vmem:[#allocation2 + $0x2c8] sm:$0xff] }
 0x1a7   :  { %v1049_v58 = vmul.f32 %v533_v51, %v533_v51  ;;  %v535_v59 = vpop.f32.mrb[63].mxu0  ;;  %v1145_v60 = vmul.f32 %v1013_v57, %v1013_v57  ;;  %v1015_v62 = vpop.f32.mrb[63].mxu1 }
 0x1a8   :  { %v1304_v2 = vadd.f32 %v1176_v50, %v1048_v41  ;;  %v1177_v3 = vmul.f32 %v535_v59, %v535_v59  ;;  %v3505_v5 = vadd.f32 %v1272_v53, %v1144_v45  ;;  %v1273_v7 = vmul.f32 %v1015_v62, %v1015_v62  ;;  %v145_v41 = vld [vmem:[#allocation2 + $0x2c0] sm:$0xff] }
 0x1a9   :  { %798 = vmatmul.mubr.bf16.gmra.mrb[168].mxu0 %v227_v44  ;;  %v229_v51 = vpack.c.bf16 %v146_v43, %v145_v41 }
 0x1aa   :  { %v1305_v10 = vadd.f32 %v1177_v3, %v1049_v58  ;;  %807 = vmatprep.mubr.bf16.mxu0 %v3321_v0  ;;  %v3508_v15 = vadd.f32 %v1273_v7, %v1145_v60  ;;  %v147_v3 = vld [vmem:[#allocation2 + $0x2d0] sm:$0xff]  ;;  %v148_v7 = vld [vmem:[#allocation2 + $0x2d8] sm:$0xff] }
 0x1ac   :  { %v539_v17 = vpop.f32.mrb[64].mxu0  ;;  %v1417_v20 = vpack.c.bf16 %v1305_v10, %v1304_v2 }
 0x1ad   :  { %v1050_v21 = vmul.f32 %v539_v17, %v539_v17  ;;  %v541_v22 = vpop.f32.mrb[65].mxu0 }
 0x1ae   :  { %v1178_v26 = vmul.f32 %v541_v22, %v541_v22  ;;  %v543_v28 = vpop.f32.mrb[66].mxu0  ;;  %2808 = vmatmul.mubr.bf16.gmra.mrb[92].mxu1 %v1417_v20  ;;  %v230_v20 = vpack.c.bf16 %v148_v7, %v147_v3 }
 0x1af   :  { %v1051_v29 = vmul.f32 %v543_v28, %v543_v28  ;;  %v545_v31 = vpop.f32.mrb[67].mxu0 }
 0x1b0   :  { %v1306_v35 = vadd.f32 %v1178_v26, %v1050_v21  ;;  %v1179_v36 = vmul.f32 %v545_v31, %v545_v31 }
 0x1b1   :  { %808 = vmatmul.mubr.bf16.gmra.mrb[172].mxu0 %v228_v24 }
 0x1b2   :  { %v1307_v40 = vadd.f32 %v1179_v36, %v1051_v29  ;;  %817 = vmatprep.mubr.bf16.mxu0 %v3321_v0  ;;  %v150_v36 = vld [vmem:[#allocation2 + $0x2e8] sm:$0xff] }
 0x1b4   :  { %v549_v44 = vpop.f32.mrb[68].mxu0  ;;  %v1418_v45 = vpack.c.bf16 %v1307_v40, %v1306_v35  ;;  %v149_v35 = vld [vmem:[#allocation2 + $0x2e0] sm:$0xff] }
 0x1b5   :  { %v1052_v49 = vmul.f32 %v549_v44, %v549_v44  ;;  %v551_v50 = vpop.f32.mrb[69].mxu0 }
 0x1b6   :  { %v1180_v53 = vmul.f32 %v551_v50, %v551_v50  ;;  %v553_v57 = vpop.f32.mrb[70].mxu0  ;;  %2811 = vmatprep.mubr.bf16.mxu1 %v1418_v45  ;;  %v231_v45 = vpack.c.bf16 %v150_v36, %v149_v35 }
 0x1b7   :  { %v1053_v58 = vmul.f32 %v553_v57, %v553_v57  ;;  %v555_v59 = vpop.f32.mrb[71].mxu0 }
 0x1b8   :  { %v1308_v60 = vadd.f32 %v1180_v53, %v1052_v49  ;;  %v1181_v62 = vmul.f32 %v555_v59, %v555_v59 }
 0x1b9   :  { %818 = vmatmul.mubr.bf16.gmra.mrb[176].mxu0 %v229_v51 }
 0x1ba   :  { %v1309_v2 = vadd.f32 %v1181_v62, %v1053_v58  ;;  %827 = vmatprep.mubr.bf16.mxu0 %v3321_v0  ;;  %v152_v62 = vld [vmem:[#allocation2 + $0x2f8] sm:$0xff] }
 0x1bc   :  { %v559_v10 = vpop.f32.mrb[72].mxu0  ;;  %v1419_v11 = vpack.c.bf16 %v1309_v2, %v1308_v60  ;;  %v151_v60 = vld [vmem:[#allocation2 + $0x2f0] sm:$0xff] }
 0x1bd   :  { %v1054_v14 = vmul.f32 %v559_v10, %v559_v10  ;;  %v561_v17 = vpop.f32.mrb[73].mxu0 }
 0x1be   :  { %v1182_v21 = vmul.f32 %v561_v17, %v561_v17  ;;  %v563_v22 = vpop.f32.mrb[74].mxu0  ;;  %2812 = vmatmul.mubr.bf16.gmra.mrb[96].mxu1 %v1419_v11  ;;  %v232_v11 = vpack.c.bf16 %v152_v62, %v151_v60 }
 0x1bf   :  { %v1055_v24 = vmul.f32 %v563_v22, %v563_v22  ;;  %v565_v26 = vpop.f32.mrb[75].mxu0 }
 0x1c0   :  { %v1310_v28 = vadd.f32 %v1182_v21, %v1054_v14  ;;  %v1183_v29 = vmul.f32 %v565_v26, %v565_v26 }
 0x1c1   :  { %828 = vmatmul.mubr.bf16.gmra.mrb[180].mxu0 %v230_v20 }
 0x1c2   :  { %v1311_v31 = vadd.f32 %v1183_v29, %v1055_v24  ;;  %837 = vmatprep.mubr.bf16.mxu0 %v3321_v0 }
 0x1c4   :  { %v569_v40 = vpop.f32.mrb[76].mxu0  ;;  %v1420_v41 = vpack.c.bf16 %v1311_v31, %v1310_v28 }
 0x1c5   :  { %v1056_v43 = vmul.f32 %v569_v40, %v569_v40  ;;  %v571_v44 = vpop.f32.mrb[77].mxu0 }
 0x1c6   :  { %v1184_v49 = vmul.f32 %v571_v44, %v571_v44  ;;  %v573_v50 = vpop.f32.mrb[78].mxu0  ;;  %2815 = vmatprep.mubr.bf16.mxu1 %v1420_v41 }
 0x1c7   :  { %v1057_v51 = vmul.f32 %v573_v50, %v573_v50  ;;  %v575_v53 = vpop.f32.mrb[79].mxu0 }
 0x1c8   :  { %v1312_v57 = vadd.f32 %v1184_v49, %v1056_v43  ;;  %v1185_v58 = vmul.f32 %v575_v53, %v575_v53 }
 0x1c9   :  { %838 = vmatmul.mubr.bf16.gmra.mrb[184].mxu0 %v231_v45 }
 0x1ca   :  { %v1313_v59 = vadd.f32 %v1185_v58, %v1057_v51  ;;  %847 = vmatprep.mubr.bf16.mxu0 %v3321_v0 }
 0x1cc   :  { %v579_v2 = vpop.f32.mrb[80].mxu0  ;;  %v1421_v3 = vpack.c.bf16 %v1313_v59, %v1312_v57 }
 0x1cd   :  { %v1058_v7 = vmul.f32 %v579_v2, %v579_v2  ;;  %v581_v10 = vpop.f32.mrb[81].mxu0 }
 0x1ce   :  { %v1186_v14 = vmul.f32 %v581_v10, %v581_v10  ;;  %v583_v17 = vpop.f32.mrb[82].mxu0  ;;  %2816 = vmatmul.mubr.bf16.gmra.mrb[100].mxu1 %v1421_v3 }
 0x1cf   :  { %v1059_v20 = vmul.f32 %v583_v17, %v583_v17  ;;  %v585_v21 = vpop.f32.mrb[83].mxu0 }
 0x1d0   :  { %v1314_v24 = vadd.f32 %v1186_v14, %v1058_v7  ;;  %v1187_v26 = vmul.f32 %v585_v21, %v585_v21 }
 0x1d1   :  { %848 = vmatmul.mubr.bf16.gmra.mrb[188].mxu0 %v232_v11 }
 0x1d2   :  { %v1315_v28 = vadd.f32 %v1187_v26, %v1059_v20 }
 0x1d4   :  { %v589_v0 = vpop.f32.mrb[84].mxu0  ;;  %v1422_v29 = vpack.c.bf16 %v1315_v28, %v1314_v24 }
 0x1d5   :  { %v1060_v31 = vmul.f32 %v589_v0, %v589_v0  ;;  %v591_v35 = vpop.f32.mrb[85].mxu0 }
 0x1d6   :  { %v1188_v36 = vmul.f32 %v591_v35, %v591_v35  ;;  %v593_v40 = vpop.f32.mrb[86].mxu0  ;;  %2819 = vmatprep.mubr.bf16.mxu1 %v1422_v29 }
 0x1d7   :  { %v1061_v41 = vmul.f32 %v593_v40, %v593_v40  ;;  %v595_v43 = vpop.f32.mrb[87].mxu0 }
 0x1d8   :  { %v1316_v45 = vadd.f32 %v1188_v36, %v1060_v31  ;;  %v1189_v49 = vmul.f32 %v595_v43, %v595_v43 }
 0x1da   :  { %v1317_v50 = vadd.f32 %v1189_v49, %v1061_v41 }
 0x1dc   :  { %v599_v51 = vpop.f32.mrb[88].mxu0  ;;  %v1423_v53 = vpack.c.bf16 %v1317_v50, %v1316_v45 }
 0x1dd   :  { %v1062_v57 = vmul.f32 %v599_v51, %v599_v51  ;;  %v601_v58 = vpop.f32.mrb[89].mxu0 }
 0x1de   :  { %v1190_v59 = vmul.f32 %v601_v58, %v601_v58  ;;  %v603_v60 = vpop.f32.mrb[90].mxu0  ;;  %2820 = vmatmul.mubr.bf16.gmra.mrb[104].mxu1 %v1423_v53 }
 0x1df   :  { %v1063_v62 = vmul.f32 %v603_v60, %v603_v60  ;;  %v605_v2 = vpop.f32.mrb[91].mxu0 }
 0x1e0   :  { %v1318_v7 = vadd.f32 %v1190_v59, %v1062_v57  ;;  %v1191_v10 = vmul.f32 %v605_v2, %v605_v2 }
 0x1e2   :  { %v1319_v11 = vadd.f32 %v1191_v10, %v1063_v62 }
 0x1e4   :  { %v609_v14 = vpop.f32.mrb[92].mxu0  ;;  %v1424_v17 = vpack.c.bf16 %v1319_v11, %v1318_v7 }
 0x1e5   :  { %v1064_v20 = vmul.f32 %v609_v14, %v609_v14  ;;  %v611_v21 = vpop.f32.mrb[93].mxu0 }
 0x1e6   :  { %v1192_v24 = vmul.f32 %v611_v21, %v611_v21  ;;  %v613_v26 = vpop.f32.mrb[94].mxu0  ;;  %2823 = vmatprep.mubr.bf16.mxu1 %v1424_v17 }
 0x1e7   :  { %v1065_v28 = vmul.f32 %v613_v26, %v613_v26  ;;  %v615_v0 = vpop.f32.mrb[95].mxu0 }
 0x1e8   :  { %v1320_v31 = vadd.f32 %v1192_v24, %v1064_v20  ;;  %v1193_v35 = vmul.f32 %v615_v0, %v615_v0 }
 0x1ea   :  { %v1321_v36 = vadd.f32 %v1193_v35, %v1065_v28 }
 0x1ec   :  { %v619_v40 = vpop.f32.mrb[96].mxu0  ;;  %v1425_v41 = vpack.c.bf16 %v1321_v36, %v1320_v31 }
 0x1ed   :  { %v1066_v43 = vmul.f32 %v619_v40, %v619_v40  ;;  %v621_v45 = vpop.f32.mrb[97].mxu0 }
 0x1ee   :  { %v1194_v49 = vmul.f32 %v621_v45, %v621_v45  ;;  %v623_v50 = vpop.f32.mrb[98].mxu0  ;;  %2824 = vmatmul.mubr.bf16.gmra.mrb[108].mxu1 %v1425_v41 }
 0x1ef   :  { %v1067_v51 = vmul.f32 %v623_v50, %v623_v50  ;;  %v625_v53 = vpop.f32.mrb[99].mxu0 }
 0x1f0   :  { %v1322_v58 = vadd.f32 %v1194_v49, %v1066_v43  ;;  %v1195_v59 = vmul.f32 %v625_v53, %v625_v53 }
 0x1f2   :  { %v1323_v60 = vadd.f32 %v1195_v59, %v1067_v51 }
 0x1f4   :  { %v629_v62 = vpop.f32.mrb[100].mxu0  ;;  %v1426_v2 = vpack.c.bf16 %v1323_v60, %v1322_v58 }
 0x1f5   :  { %v1068_v7 = vmul.f32 %v629_v62, %v629_v62  ;;  %v631_v10 = vpop.f32.mrb[101].mxu0 }
 0x1f6   :  { %v1196_v11 = vmul.f32 %v631_v10, %v631_v10  ;;  %v633_v14 = vpop.f32.mrb[102].mxu0  ;;  %2827 = vmatprep.mubr.bf16.mxu1 %v1426_v2 }
 0x1f7   :  { %v1069_v17 = vmul.f32 %v633_v14, %v633_v14  ;;  %v635_v20 = vpop.f32.mrb[103].mxu0 }
 0x1f8   :  { %v1324_v24 = vadd.f32 %v1196_v11, %v1068_v7  ;;  %v1197_v26 = vmul.f32 %v635_v20, %v635_v20 }
 0x1fa   :  { %v1325_v28 = vadd.f32 %v1197_v26, %v1069_v17 }
 0x1fc   :  { %v639_v0 = vpop.f32.mrb[104].mxu0  ;;  %v1427_v31 = vpack.c.bf16 %v1325_v28, %v1324_v24 }
 0x1fd   :  { %v1070_v35 = vmul.f32 %v639_v0, %v639_v0  ;;  %v641_v36 = vpop.f32.mrb[105].mxu0 }
 0x1fe   :  { %v1198_v40 = vmul.f32 %v641_v36, %v641_v36  ;;  %v643_v41 = vpop.f32.mrb[106].mxu0  ;;  %2828 = vmatmul.mubr.bf16.gmra.mrb[112].mxu1 %v1427_v31 }
 0x1ff   :  { %v1071_v43 = vmul.f32 %v643_v41, %v643_v41  ;;  %v645_v45 = vpop.f32.mrb[107].mxu0 }
 0x200   :  { %v1326_v50 = vadd.f32 %v1198_v40, %v1070_v35  ;;  %v1199_v51 = vmul.f32 %v645_v45, %v645_v45 }
 0x202   :  { %v1327_v53 = vadd.f32 %v1199_v51, %v1071_v43 }
 0x204   :  { %v649_v58 = vpop.f32.mrb[108].mxu0  ;;  %v1428_v59 = vpack.c.bf16 %v1327_v53, %v1326_v50 }
 0x205   :  { %v1072_v60 = vmul.f32 %v649_v58, %v649_v58  ;;  %v651_v62 = vpop.f32.mrb[109].mxu0 }
 0x206   :  { %v1200_v2 = vmul.f32 %v651_v62, %v651_v62  ;;  %v653_v7 = vpop.f32.mrb[110].mxu0  ;;  %2831 = vmatprep.mubr.bf16.mxu1 %v1428_v59 }
 0x207   :  { %v1073_v10 = vmul.f32 %v653_v7, %v653_v7  ;;  %v655_v11 = vpop.f32.mrb[111].mxu0 }
 0x208   :  { %v1328_v17 = vadd.f32 %v1200_v2, %v1072_v60  ;;  %v1201_v20 = vmul.f32 %v655_v11, %v655_v11 }
 0x20a   :  { %v1329_v24 = vadd.f32 %v1201_v20, %v1073_v10 }
 0x20c   :  { %v659_v26 = vpop.f32.mrb[112].mxu0  ;;  %v1429_v28 = vpack.c.bf16 %v1329_v24, %v1328_v17 }
 0x20d   :  { %v1074_v0 = vmul.f32 %v659_v26, %v659_v26  ;;  %v661_v31 = vpop.f32.mrb[113].mxu0 }
 0x20e   :  { %v1202_v35 = vmul.f32 %v661_v31, %v661_v31  ;;  %v663_v36 = vpop.f32.mrb[114].mxu0  ;;  %2832 = vmatmul.mubr.bf16.gmra.mrb[116].mxu1 %v1429_v28 }
 0x20f   :  { %v1075_v40 = vmul.f32 %v663_v36, %v663_v36  ;;  %v665_v41 = vpop.f32.mrb[115].mxu0 }
 0x210   :  { %v1330_v45 = vadd.f32 %v1202_v35, %v1074_v0  ;;  %v1203_v50 = vmul.f32 %v665_v41, %v665_v41 }
 0x211   :  { %v3532_v51 = vpop.f32.mrb[64].mxu1 }
 0x212   :  { %v1331_v53 = vadd.f32 %v1203_v50, %v1075_v40  ;;  %v3534_v58 = vpop.f32.mrb[65].mxu1 }
 0x213   :  { %v3536_v59 = vpop.f32.mrb[66].mxu1 }
 0x214   :  { %v669_v60 = vpop.f32.mrb[116].mxu0  ;;  %v3538_v62 = vpop.f32.mrb[67].mxu1  ;;  %v1430_v2 = vpack.c.bf16 %v1331_v53, %v1330_v45 }
 0x215   :  { %v1076_v7 = vmul.f32 %v669_v60, %v669_v60  ;;  %v671_v10 = vpop.f32.mrb[117].mxu0 }
 0x216   :  { %v1204_v11 = vmul.f32 %v671_v10, %v671_v10  ;;  %v673_v17 = vpop.f32.mrb[118].mxu0  ;;  %2835 = vmatprep.mubr.bf16.mxu1 %v1430_v2 }
 0x217   :  { %v1077_v20 = vmul.f32 %v673_v17, %v673_v17  ;;  %v675_v24 = vpop.f32.mrb[119].mxu0 }
 0x218   :  { %v1332_v28 = vadd.f32 %v1204_v11, %v1076_v7  ;;  %v1205_v0 = vmul.f32 %v675_v24, %v675_v24 }
 0x21a   :  { %v1333_v31 = vadd.f32 %v1205_v0, %v1077_v20 }
 0x21c   :  { %v679_v35 = vpop.f32.mrb[120].mxu0  ;;  %v1431_v36 = vpack.c.bf16 %v1333_v31, %v1332_v28 }
 0x21d   :  { %v1078_v40 = vmul.f32 %v679_v35, %v679_v35  ;;  %v681_v41 = vpop.f32.mrb[121].mxu0 }
 0x21e   :  { %v1206_v50 = vmul.f32 %v681_v41, %v681_v41  ;;  %v683_v43 = vpop.f32.mrb[122].mxu0  ;;  %2836 = vmatmul.mubr.bf16.gmra.mrb[120].mxu1 %v1431_v36 }
 0x21f   :  { %v1079_v45 = vmul.f32 %v683_v43, %v683_v43  ;;  %v685_v53 = vpop.f32.mrb[123].mxu0 }
 0x220   :  { %v1334_v2 = vadd.f32 %v1206_v50, %v1078_v40  ;;  %v1207_v10 = vmul.f32 %v685_v53, %v685_v53 }
 0x221   :  { %v3544_v17 = vpop.f32.mrb[68].mxu1 }
 0x222   :  { %v1335_v26 = vadd.f32 %v1207_v10, %v1079_v45  ;;  %v3546_v7 = vpop.f32.mrb[69].mxu1 }
 0x223   :  { %v3548_v11 = vpop.f32.mrb[70].mxu1 }
 0x224   :  { %v689_v20 = vpop.f32.mrb[124].mxu0  ;;  %v1432_v24 = vpack.c.bf16 %v1335_v26, %v1334_v2  ;;  %v3550_v0 = vpop.f32.mrb[71].mxu1 }
 0x225   :  { %v1080_v28 = vmul.f32 %v689_v20, %v689_v20  ;;  %v691_v31 = vpop.f32.mrb[125].mxu0 }
 0x226   :  { %v1208_v43 = vmul.f32 %v691_v31, %v691_v31  ;;  %v693_v35 = vpop.f32.mrb[126].mxu0  ;;  %2839 = vmatprep.mubr.bf16.mxu1 %v1432_v24 }
 0x227   :  { %v1081_v36 = vmul.f32 %v693_v35, %v693_v35  ;;  %v695_v41 = vpop.f32.mrb[127].mxu0 }
 0x228   :  { %v1336_v50 = vadd.f32 %v1208_v43, %v1080_v28  ;;  %v1209_v45 = vmul.f32 %v695_v41, %v695_v41 }
 0x22a   :  { %v1337_v53 = vadd.f32 %v1209_v45, %v1081_v36 }
 0x22c   :  { %v699_v10 = vpop.f32.mrb[128].mxu0  ;;  %v1433_v60 = vpack.c.bf16 %v1337_v53, %v1336_v50 }
 0x22d   :  { %v1082_v14 = vmul.f32 %v699_v10, %v699_v10  ;;  %v701_v49 = vpop.f32.mrb[129].mxu0 }
 0x22e   :  { %v1210_v26 = vmul.f32 %v701_v49, %v701_v49  ;;  %v703_v2 = vpop.f32.mrb[130].mxu0  ;;  %2840 = vmatmul.mubr.bf16.gmra.mrb[124].mxu1 %v1433_v60 }
 0x22f   :  { %v1083_v20 = vmul.f32 %v703_v2, %v703_v2  ;;  %v705_v21 = vpop.f32.mrb[131].mxu0 }
 0x230   :  { %v1338_v31 = vadd.f32 %v1210_v26, %v1082_v14  ;;  %v1211_v35 = vmul.f32 %v705_v21, %v705_v21 }
 0x231   :  { %v3556_v57 = vpop.f32.mrb[72].mxu1 }
 0x232   :  { %v1339_v40 = vadd.f32 %v1211_v35, %v1083_v20  ;;  %v3558_v28 = vpop.f32.mrb[73].mxu1 }
 0x233   :  { %v3560_v43 = vpop.f32.mrb[74].mxu1 }
 0x234   :  { %v709_v36 = vpop.f32.mrb[132].mxu0  ;;  %v1434_v41 = vpack.c.bf16 %v1339_v40, %v1338_v31  ;;  %v3562_v49 = vpop.f32.mrb[75].mxu1 }
 0x235   :  { %v1084_v50 = vmul.f32 %v709_v36, %v709_v36  ;;  %3955 = vst [vmem:[#allocation12_spill] sm:$0xff] %v3562_v49  ;;  %v711_v60 = vpop.f32.mrb[133].mxu0 }
 0x236   :  { %v1212_v45 = vmul.f32 %v711_v60, %v711_v60  ;;  %v713_v53 = vpop.f32.mrb[134].mxu0  ;;  %2843 = vmatprep.mubr.bf16.mxu1 %v1434_v41 }
 0x237   :  { %v1085_v10 = vmul.f32 %v713_v53, %v713_v53  ;;  %v715_v2 = vpop.f32.mrb[135].mxu0 }
 0x238   :  { %v1340_v14 = vadd.f32 %v1212_v45, %v1084_v50  ;;  %v1213_v26 = vmul.f32 %v715_v2, %v715_v2 }
 0x23a   :  { %v1341_v20 = vadd.f32 %v1213_v26, %v1085_v10 }
 0x23c   :  { %v719_v35 = vpop.f32.mrb[136].mxu0  ;;  %v1435_v24 = vpack.c.bf16 %v1341_v20, %v1340_v14 }
 0x23d   :  { %v1086_v29 = vmul.f32 %v719_v35, %v719_v35  ;;  %v721_v3 = vpop.f32.mrb[137].mxu0 }
 0x23e   :  { %v1214_v40 = vmul.f32 %v721_v3, %v721_v3  ;;  %v723_v31 = vpop.f32.mrb[138].mxu0  ;;  %2844 = vmatmul.mubr.bf16.gmra.mrb[128].mxu1 %v1435_v24 }
 0x23f   :  { %v1087_v36 = vmul.f32 %v723_v31, %v723_v31  ;;  %v725_v44 = vpop.f32.mrb[139].mxu0 }
 0x240   :  { %v1342_v60 = vadd.f32 %v1214_v40, %v1086_v29  ;;  %v1215_v53 = vmul.f32 %v725_v44, %v725_v44 }
 0x241   :  { %v3568_v22 = vpop.f32.mrb[76].mxu1 }
 0x242   :  { %3956 = vst [vmem:[#allocation13_spill] sm:$0xff] %v3568_v22  ;;  %v1343_v21 = vadd.f32 %v1215_v53, %v1087_v36  ;;  %v3570_v50 = vpop.f32.mrb[77].mxu1 }
 0x243   :  { %3957 = vst [vmem:[#allocation14_spill] sm:$0xff] %v3570_v50  ;;  %v3572_v45 = vpop.f32.mrb[78].mxu1 }
 0x244   :  { %3958 = vst [vmem:[#allocation15_spill] sm:$0xff] %v3572_v45  ;;  %v729_v10 = vpop.f32.mrb[140].mxu0  ;;  %v1436_v2 = vpack.c.bf16 %v1343_v21, %v1342_v60  ;;  %v3574_v3 = vpop.f32.mrb[79].mxu1 }
 0x245   :  { %v1088_v14 = vmul.f32 %v729_v10, %v729_v10  ;;  %3959 = vst [vmem:[#allocation16_spill] sm:$0xff] %v3574_v3  ;;  %v731_v24 = vpop.f32.mrb[141].mxu0 }
 0x246   :  { %v1216_v26 = vmul.f32 %v731_v24, %v731_v24  ;;  %v733_v20 = vpop.f32.mrb[142].mxu0  ;;  %2847 = vmatprep.mubr.bf16.mxu1 %v1436_v2 }
 0x247   :  { %v1089_v35 = vmul.f32 %v733_v20, %v733_v20  ;;  %v735_v31 = vpop.f32.mrb[143].mxu0 }
 0x248   :  { %v1344_v29 = vadd.f32 %v1216_v26, %v1088_v14  ;;  %v1217_v40 = vmul.f32 %v735_v31, %v735_v31 }
 0x24a   :  { %v1345_v36 = vadd.f32 %v1217_v40, %v1089_v35 }
 0x24c   :  { %v739_v53 = vpop.f32.mrb[144].mxu0  ;;  %v1437_v41 = vpack.c.bf16 %v1345_v36, %v1344_v29 }
 0x24d   :  { %v1090_v45 = vmul.f32 %v739_v53, %v739_v53  ;;  %v741_v50 = vpop.f32.mrb[145].mxu0 }
 0x24e   :  { %v1218_v21 = vmul.f32 %v741_v50, %v741_v50  ;;  %v743_v60 = vpop.f32.mrb[146].mxu0  ;;  %2848 = vmatmul.mubr.bf16.gmra.mrb[132].mxu1 %v1437_v41 }
 0x24f   :  { %v1091_v10 = vmul.f32 %v743_v60, %v743_v60  ;;  %v745_v3 = vpop.f32.mrb[147].mxu0 }
 0x250   :  { %v1346_v24 = vadd.f32 %v1218_v21, %v1090_v45  ;;  %v1219_v22 = vmul.f32 %v745_v3, %v745_v3 }
 0x251   :  { %v3578_v2 = vpop.f32.mrb[80].mxu1 }
 0x252   :  { %3960 = vst [vmem:[#allocation17_spill] sm:$0xff] %v3578_v2  ;;  %v1347_v20 = vadd.f32 %v1219_v22, %v1091_v10  ;;  %v3580_v49 = vpop.f32.mrb[81].mxu1 }
 0x253   :  { %3961 = vst [vmem:[#allocation18_spill] sm:$0xff] %v3580_v49  ;;  %v3582_v44 = vpop.f32.mrb[82].mxu1 }
 0x254   :  { %3962 = vst [vmem:[#allocation19_spill] sm:$0xff] %v3582_v44  ;;  %v749_v14 = vpop.f32.mrb[148].mxu0  ;;  %v1438_v26 = vpack.c.bf16 %v1347_v20, %v1346_v24  ;;  %v3584_v31 = vpop.f32.mrb[83].mxu1 }
 0x255   :  { %v1092_v35 = vmul.f32 %v749_v14, %v749_v14  ;;  %3963 = vst [vmem:[#allocation20_spill] sm:$0xff] %v3584_v31  ;;  %v751_v29 = vpop.f32.mrb[149].mxu0 }
 0x256   :  { %v1220_v50 = vmul.f32 %v751_v29, %v751_v29  ;;  %v753_v40 = vpop.f32.mrb[150].mxu0  ;;  %2851 = vmatprep.mubr.bf16.mxu1 %v1438_v26 }
 0x257   :  { %v1093_v41 = vmul.f32 %v753_v40, %v753_v40  ;;  %v755_v36 = vpop.f32.mrb[151].mxu0 }
 0x258   :  { %v1348_v45 = vadd.f32 %v1220_v50, %v1092_v35  ;;  %v1221_v3 = vmul.f32 %v755_v36, %v755_v36 }
 0x25a   :  { %v1349_v53 = vadd.f32 %v1221_v3, %v1093_v41 }
 0x25c   :  { %v759_v21 = vpop.f32.mrb[152].mxu0  ;;  %v1439_v22 = vpack.c.bf16 %v1349_v53, %v1348_v45 }
 0x25d   :  { %v1094_v60 = vmul.f32 %v759_v21, %v759_v21  ;;  %v761_v10 = vpop.f32.mrb[153].mxu0 }
 0x25e   :  { %v1222_v49 = vmul.f32 %v761_v10, %v761_v10  ;;  %v763_v44 = vpop.f32.mrb[154].mxu0  ;;  %2852 = vmatmul.mubr.bf16.gmra.mrb[136].mxu1 %v1439_v22 }
 0x25f   :  { %v1095_v24 = vmul.f32 %v763_v44, %v763_v44  ;;  %v765_v20 = vpop.f32.mrb[155].mxu0 }
 0x260   :  { %v1350_v14 = vadd.f32 %v1222_v49, %v1094_v60  ;;  %v1223_v31 = vmul.f32 %v765_v20, %v765_v20 }
 0x261   :  { %v3586_v2 = vpop.f32.mrb[84].mxu1 }
 0x262   :  { %3964 = vst [vmem:[#allocation21_spill] sm:$0xff] %v3586_v2  ;;  %v1351_v29 = vadd.f32 %v1223_v31, %v1095_v24  ;;  %v3588_v26 = vpop.f32.mrb[85].mxu1 }
 0x263   :  { %3965 = vst [vmem:[#allocation22_spill] sm:$0xff] %v3588_v26  ;;  %v3590_v40 = vpop.f32.mrb[86].mxu1 }
 0x264   :  { %3966 = vst [vmem:[#allocation23_spill] sm:$0xff] %v3590_v40  ;;  %v769_v35 = vpop.f32.mrb[156].mxu0  ;;  %v1440_v50 = vpack.c.bf16 %v1351_v29, %v1350_v14  ;;  %v3592_v36 = vpop.f32.mrb[87].mxu1 }
 0x265   :  { %v1096_v41 = vmul.f32 %v769_v35, %v769_v35  ;;  %3967 = vst [vmem:[#allocation24_spill] sm:$0xff] %v3592_v36  ;;  %v771_v45 = vpop.f32.mrb[157].mxu0 }
 0x266   :  { %v1224_v3 = vmul.f32 %v771_v45, %v771_v45  ;;  %v773_v53 = vpop.f32.mrb[158].mxu0  ;;  %2855 = vmatprep.mubr.bf16.mxu1 %v1440_v50 }
 0x267   :  { %v1097_v44 = vmul.f32 %v773_v53, %v773_v53  ;;  %v775_v21 = vpop.f32.mrb[159].mxu0 }
 0x268   :  { %v1352_v49 = vadd.f32 %v1224_v3, %v1096_v41  ;;  %v1225_v22 = vmul.f32 %v775_v21, %v775_v21 }
 0x26a   :  { %v1353_v60 = vadd.f32 %v1225_v22, %v1097_v44 }
 0x26c   :  { %v779_v10 = vpop.f32.mrb[160].mxu0  ;;  %v1441_v31 = vpack.c.bf16 %v1353_v60, %v1352_v49 }
 0x26d   :  { %v1098_v24 = vmul.f32 %v779_v10, %v779_v10  ;;  %v781_v20 = vpop.f32.mrb[161].mxu0 }
 0x26e   :  { %v1226_v26 = vmul.f32 %v781_v20, %v781_v20  ;;  %v783_v40 = vpop.f32.mrb[162].mxu0  ;;  %2856 = vmatmul.mubr.bf16.gmra.mrb[140].mxu1 %v1441_v31 }
 0x26f   :  { %v1099_v14 = vmul.f32 %v783_v40, %v783_v40  ;;  %v785_v29 = vpop.f32.mrb[163].mxu0 }
 0x270   :  { %v1354_v35 = vadd.f32 %v1226_v26, %v1098_v24  ;;  %v1227_v36 = vmul.f32 %v785_v29, %v785_v29 }
 0x271   :  { %v3594_v2 = vpop.f32.mrb[88].mxu1 }
 0x272   :  { %3968 = vst [vmem:[#allocation25_spill] sm:$0xff] %v3594_v2  ;;  %v1355_v45 = vadd.f32 %v1227_v36, %v1099_v14  ;;  %v3596_v50 = vpop.f32.mrb[89].mxu1 }
 0x273   :  { %3969 = vst [vmem:[#allocation26_spill] sm:$0xff] %v3596_v50  ;;  %v3598_v53 = vpop.f32.mrb[90].mxu1 }
 0x274   :  { %3970 = vst [vmem:[#allocation27_spill] sm:$0xff] %v3598_v53  ;;  %v789_v41 = vpop.f32.mrb[164].mxu0  ;;  %v1442_v3 = vpack.c.bf16 %v1355_v45, %v1354_v35  ;;  %v3600_v21 = vpop.f32.mrb[91].mxu1 }
 0x275   :  { %v1100_v44 = vmul.f32 %v789_v41, %v789_v41  ;;  %3971 = vst [vmem:[#allocation28_spill] sm:$0xff] %v3600_v21  ;;  %v791_v49 = vpop.f32.mrb[165].mxu0 }
 0x276   :  { %v1228_v22 = vmul.f32 %v791_v49, %v791_v49  ;;  %v793_v60 = vpop.f32.mrb[166].mxu0  ;;  %2859 = vmatprep.mubr.bf16.mxu1 %v1442_v3 }
 0x277   :  { %v1101_v40 = vmul.f32 %v793_v60, %v793_v60  ;;  %v795_v10 = vpop.f32.mrb[167].mxu0 }
 0x278   :  { %v1356_v26 = vadd.f32 %v1228_v22, %v1100_v44  ;;  %v1229_v31 = vmul.f32 %v795_v10, %v795_v10 }
 0x27a   :  { %v1357_v24 = vadd.f32 %v1229_v31, %v1101_v40 }
 0x27c   :  { %v799_v20 = vpop.f32.mrb[168].mxu0  ;;  %v1443_v36 = vpack.c.bf16 %v1357_v24, %v1356_v26 }
 0x27d   :  { %v1102_v14 = vmul.f32 %v799_v20, %v799_v20  ;;  %v801_v29 = vpop.f32.mrb[169].mxu0 }
 0x27e   :  { %v1230_v50 = vmul.f32 %v801_v29, %v801_v29  ;;  %v803_v53 = vpop.f32.mrb[170].mxu0  ;;  %2860 = vmatmul.mubr.bf16.gmra.mrb[144].mxu1 %v1443_v36 }
 0x27f   :  { %v1103_v35 = vmul.f32 %v803_v53, %v803_v53  ;;  %v805_v45 = vpop.f32.mrb[171].mxu0 }
 0x280   :  { %v1358_v41 = vadd.f32 %v1230_v50, %v1102_v14  ;;  %v1231_v21 = vmul.f32 %v805_v45, %v805_v45 }
 0x281   :  { %v3602_v2 = vpop.f32.mrb[92].mxu1 }
 0x282   :  { %3972 = vst [vmem:[#allocation29_spill] sm:$0xff] %v3602_v2  ;;  %v1359_v49 = vadd.f32 %v1231_v21, %v1103_v35  ;;  %v3604_v3 = vpop.f32.mrb[93].mxu1 }
 0x283   :  { %3973 = vst [vmem:[#allocation30_spill] sm:$0xff] %v3604_v3  ;;  %v3606_v60 = vpop.f32.mrb[94].mxu1 }
 0x284   :  { %3974 = vst [vmem:[#allocation31_spill] sm:$0xff] %v3606_v60  ;;  %v809_v44 = vpop.f32.mrb[172].mxu0  ;;  %v1444_v22 = vpack.c.bf16 %v1359_v49, %v1358_v41  ;;  %v3608_v10 = vpop.f32.mrb[95].mxu1 }
 0x285   :  { %v1104_v40 = vmul.f32 %v809_v44, %v809_v44  ;;  %3975 = vst [vmem:[#allocation32_spill] sm:$0xff] %v3608_v10  ;;  %v811_v26 = vpop.f32.mrb[173].mxu0 }
 0x286   :  { %v1232_v31 = vmul.f32 %v811_v26, %v811_v26  ;;  %v813_v24 = vpop.f32.mrb[174].mxu0  ;;  %2863 = vmatprep.mubr.bf16.mxu1 %v1444_v22 }
 0x287   :  { %v1105_v53 = vmul.f32 %v813_v24, %v813_v24  ;;  %v815_v20 = vpop.f32.mrb[175].mxu0 }
 0x288   :  { %v1360_v50 = vadd.f32 %v1232_v31, %v1104_v40  ;;  %v1233_v36 = vmul.f32 %v815_v20, %v815_v20 }
 0x28a   :  { %v1361_v14 = vadd.f32 %v1233_v36, %v1105_v53 }
 0x28c   :  { %v819_v29 = vpop.f32.mrb[176].mxu0  ;;  %v1445_v21 = vpack.c.bf16 %v1361_v14, %v1360_v50 }
 0x28d   :  { %v1106_v35 = vmul.f32 %v819_v29, %v819_v29  ;;  %v821_v45 = vpop.f32.mrb[177].mxu0 }
 0x28e   :  { %v1234_v3 = vmul.f32 %v821_v45, %v821_v45  ;;  %v823_v60 = vpop.f32.mrb[178].mxu0  ;;  %2864 = vmatmul.mubr.bf16.gmra.mrb[148].mxu1 %v1445_v21 }
 0x28f   :  { %v1107_v41 = vmul.f32 %v823_v60, %v823_v60  ;;  %v825_v49 = vpop.f32.mrb[179].mxu0 }
 0x290   :  { %v1362_v44 = vadd.f32 %v1234_v3, %v1106_v35  ;;  %v1235_v10 = vmul.f32 %v825_v49, %v825_v49 }
 0x291   :  { %v3610_v2 = vpop.f32.mrb[96].mxu1 }
 0x292   :  { %3976 = vst [vmem:[#allocation33_spill] sm:$0xff] %v3610_v2  ;;  %v1363_v26 = vadd.f32 %v1235_v10, %v1107_v41  ;;  %v3612_v22 = vpop.f32.mrb[97].mxu1 }
 0x293   :  { %3977 = vst [vmem:[#allocation34_spill] sm:$0xff] %v3612_v22  ;;  %v3614_v24 = vpop.f32.mrb[98].mxu1 }
 0x294   :  { %3978 = vst [vmem:[#allocation35_spill] sm:$0xff] %v3614_v24  ;;  %v829_v40 = vpop.f32.mrb[180].mxu0  ;;  %v1446_v31 = vpack.c.bf16 %v1363_v26, %v1362_v44  ;;  %v3616_v20 = vpop.f32.mrb[99].mxu1 }
 0x295   :  { %v1108_v53 = vmul.f32 %v829_v40, %v829_v40  ;;  %3979 = vst [vmem:[#allocation36_spill] sm:$0xff] %v3616_v20  ;;  %v831_v50 = vpop.f32.mrb[181].mxu0 }
 0x296   :  { %v1236_v36 = vmul.f32 %v831_v50, %v831_v50  ;;  %v833_v14 = vpop.f32.mrb[182].mxu0  ;;  %2867 = vmatprep.mubr.bf16.mxu1 %v1446_v31 }
 0x297   :  { %v1109_v60 = vmul.f32 %v833_v14, %v833_v14  ;;  %v835_v29 = vpop.f32.mrb[183].mxu0 }
 0x298   :  { %v1364_v3 = vadd.f32 %v1236_v36, %v1108_v53  ;;  %v1237_v21 = vmul.f32 %v835_v29, %v835_v29 }
 0x29a   :  { %v1365_v35 = vadd.f32 %v1237_v21, %v1109_v60 }
 0x29c   :  { %v839_v45 = vpop.f32.mrb[184].mxu0  ;;  %v1447_v10 = vpack.c.bf16 %v1365_v35, %v1364_v3 }
 0x29d   :  { %v1110_v41 = vmul.f32 %v839_v45, %v839_v45  ;;  %v841_v49 = vpop.f32.mrb[185].mxu0 }
 0x29e   :  { %v1238_v22 = vmul.f32 %v841_v49, %v841_v49  ;;  %v843_v24 = vpop.f32.mrb[186].mxu0  ;;  %2868 = vmatmul.mubr.bf16.gmra.mrb[152].mxu1 %v1447_v10 }
 0x29f   :  { %v1111_v44 = vmul.f32 %v843_v24, %v843_v24  ;;  %v845_v26 = vpop.f32.mrb[187].mxu0 }
 0x2a0   :  { %v1366_v40 = vadd.f32 %v1238_v22, %v1110_v41  ;;  %v1239_v20 = vmul.f32 %v845_v26, %v845_v26 }
 0x2a1   :  { %v3618_v2 = vpop.f32.mrb[100].mxu1 }
 0x2a2   :  { %v1367_v50 = vadd.f32 %v1239_v20, %v1111_v44  ;;  %v3620_v31 = vpop.f32.mrb[101].mxu1  ;;  %v3980_v20 = vpack.c.bf16 %v3437_v56, %v3435_v48  ;;  %v3983_v48 = vpack.c.bf16 %v3451_v47, %v3449_v38  ;;  %v3984_v56 = vpack.c.bf16 %v3455_v63, %v3453_v54 }
 0x2a3   :  { %v3622_v14 = vpop.f32.mrb[102].mxu1  ;;  %v3988_v38 = vpack.c.bf16 %v3473_v18, %v3471_v8 }
 0x2a4   :  { %v849_v53 = vpop.f32.mrb[188].mxu0  ;;  %v1448_v36 = vpack.c.bf16 %v1367_v50, %v1366_v40  ;;  %v3624_v29 = vpop.f32.mrb[103].mxu1 }
 0x2a5   :  { %v1112_v60 = vmul.f32 %v849_v53, %v849_v53  ;;  %v851_v3 = vpop.f32.mrb[189].mxu0  ;;  %v3981_v53 = vpack.c.bf16 %v3442_v13, %v3440_v4  ;;  %v3985_v13 = vpack.c.bf16 %v3460_v23, %v3458_v12  ;;  %v3989_v23 = vpack.c.bf16 %v3478_v37, %v3476_v32 }
 0x2a6   :  { %v1240_v21 = vmul.f32 %v851_v3, %v851_v3  ;;  %v853_v35 = vpop.f32.mrb[190].mxu0  ;;  %2871 = vmatprep.mubr.bf16.mxu1 %v1448_v36  ;;  %v3982_v36 = vpack.c.bf16 %v3446_v27, %v3444_v19  ;;  %v3986_v19 = vpack.c.bf16 %v3464_v39, %v3462_v30  ;;  %v3987_v27 = vpack.c.bf16 %v3469_v1, %v3467_v52 }
 0x2a7   :  { %v1113_v24 = vmul.f32 %v853_v35, %v853_v35  ;;  %v855_v45 = vpop.f32.mrb[191].mxu0  ;;  %v3990_v30 = vpack.c.bf16 %v3483_v6, %v3480_v61  ;;  %v3991_v39 = vpack.c.bf16 %v3488_v42, %v3485_v34  ;;  %v3992_v52 = vpack.c.bf16 %v3493_v16, %v3490_v9 }
 0x2a8   :  { %v1368_v22 = vadd.f32 %v1240_v21, %v1112_v60  ;;  %v1241_v10 = vmul.f32 %v855_v45, %v855_v45  ;;  %v3993_v37 = vpack.c.bf16 %v3498_v55, %v3495_v46  ;;  %v3994_v61 = vpack.c.bf16 %v3503_v33, %v3500_v25 }
 0x2a9   :  { %v3995_v6 = vpack.c.bf16 %v3508_v15, %v3505_v5  ;;  %v1573_v33 = vadd.f32 1e-05, %v3532_v51  ;;  %v1565_v5 = vadd.f32 1e-05, %v3534_v58  ;;  %v1576_v15 = vadd.f32 1e-05, %v3536_v59 }
 0x2aa   :  { %v1369_v41 = vadd.f32 %v1241_v10, %v1113_v24  ;;  %v1568_v24 = vadd.f32 1e-05, %v3538_v62  ;;  %v1581_v62 = vadd.f32 1e-05, %v3546_v7 }
 0x2ab   :  { %2964 = vlog2.f32 %v1573_v33 }
 0x2ac   :  { %v1449_v49 = vpack.c.bf16 %v1369_v41, %v1368_v22  ;;  %2966 = vlog2.f32 %v1565_v5 }
 0x2ad   :  { %2968 = vlog2.f32 %v1576_v15 }
 0x2ae   :  { %2872 = vmatmul.mubr.bf16.gmra.mrb[156].mxu1 %v1449_v49  ;;  %2970 = vlog2.f32 %v1568_v24 }
 0x2af   :  { %2875 = vmatprep.mubr.bf16.mxu1 %v3980_v20 }
 0x2b1   :  { %v3629_v44 = vpop.f32.mrb[104].mxu1 }
 0x2b2   :  { %v3631_v26 = vpop.f32.mrb[105].mxu1 }
 0x2b3   :  { %v3633_v40 = vpop.f32.mrb[106].mxu1 }
 0x2b4   :  { %v3635_v50 = vpop.f32.mrb[107].mxu1 }
 0x2b5   :  { %v2965_v58 = vpop.eup %2964 }
 0x2b6   :  { %2876 = vmatmul.mubr.bf16.gmra.mrb[160].mxu1 %v3981_v53  ;;  %v2967_v59 = vpop.eup %2966 }
 0x2b7   :  { %2879 = vmatprep.mubr.bf16.mxu1 %v3982_v36  ;;  %v1589_v36 = vadd.f32 1e-05, %v3544_v17 }
 0x2be   :  { %2880 = vmatmul.mubr.bf16.gmra.mrb[164].mxu1 %v3983_v48  ;;  %v1592_v48 = vadd.f32 1e-05, %v3548_v11 }
 0x2bf   :  { %2883 = vmatprep.mubr.bf16.mxu1 %v3984_v56  ;;  %v1584_v56 = vadd.f32 1e-05, %v3550_v0 }
 0x2c1   :  { %v3649_v60 = vpop.f32.mrb[108].mxu1 }
 0x2c2   :  { %v3651_v3 = vpop.f32.mrb[109].mxu1 }
 0x2c3   :  { %v3653_v21 = vpop.f32.mrb[110].mxu1 }
 0x2c4   :  { %v3655_v4 = vpop.f32.mrb[111].mxu1 }
 0x2c6   :  { %2884 = vmatmul.mubr.bf16.gmra.mrb[168].mxu1 %v3985_v13  ;;  %v2969_v13 = vpop.eup %2968 }
 0x2c7   :  { %2887 = vmatprep.mubr.bf16.mxu1 %v3986_v19  ;;  %v2080_v19 = vmul.f32 0.6931472, %v2965_v58 }
 0x2ce   :  { %2888 = vmatmul.mubr.bf16.gmra.mrb[172].mxu1 %v3987_v27  ;;  %v2076_v27 = vmul.f32 0.6931472, %v2967_v59 }
 0x2cf   :  { %2891 = vmatprep.mubr.bf16.mxu1 %v3988_v38  ;;  %v2971_v38 = vpop.eup %2970 }
 0x2d1   :  { %v3669_v47 = vpop.f32.mrb[112].mxu1 }
 0x2d2   :  { %v3671_v54 = vpop.f32.mrb[113].mxu1 }
 0x2d3   :  { %v3673_v63 = vpop.f32.mrb[114].mxu1 }
 0x2d4   :  { %v3675_v12 = vpop.f32.mrb[115].mxu1 }
 0x2d6   :  { %2892 = vmatmul.mubr.bf16.gmra.mrb[176].mxu1 %v3989_v23 }
 0x2d7   :  { %2895 = vmatprep.mubr.bf16.mxu1 %v3990_v30 }
 0x2de   :  { %2896 = vmatmul.mubr.bf16.gmra.mrb[180].mxu1 %v3991_v39  ;;  %v2082_v39 = vmul.f32 0.6931472, %v2969_v13 }
 0x2df   :  { %2899 = vmatprep.mubr.bf16.mxu1 %v3992_v52  ;;  %v2333_v52 = vmul.f32 0.4342945, %v2080_v19 }
 0x2e1   :  { %v3689_v1 = vpop.f32.mrb[116].mxu1 }
 0x2e2   :  { %v3691_v8 = vpop.f32.mrb[117].mxu1 }
 0x2e3   :  { %v3693_v18 = vpop.f32.mrb[118].mxu1 }
 0x2e4   :  { %v3695_v32 = vpop.f32.mrb[119].mxu1 }
 0x2e6   :  { %2900 = vmatmul.mubr.bf16.gmra.mrb[184].mxu1 %v3993_v37  ;;  %v2331_v37 = vmul.f32 0.4342945, %v2076_v27  ;;  %v1597_v27 = vadd.f32 1e-05, %v3558_v28 }
 0x2e7   :  { %2903 = vmatprep.mubr.bf16.mxu1 %v3994_v61 }
 0x2ee   :  { %2904 = vmatmul.mubr.bf16.gmra.mrb[188].mxu1 %v3995_v6  ;;  %v2078_v6 = vmul.f32 0.6931472, %v2971_v38 }
 0x2f0   :  { %v2332_v58 = vmul.f32 0.4342945, %v2078_v6 }
 0x2f1   :  { %v3706_v34 = vpop.f32.mrb[120].mxu1 }
 0x2f2   :  { %v3708_v42 = vpop.f32.mrb[121].mxu1 }
 0x2f3   :  { %v3710_v9 = vpop.f32.mrb[122].mxu1 }
 0x2f4   :  { %v3712_v16 = vpop.f32.mrb[123].mxu1 }
 0x301   :  { %v3714_v35 = vpop.f32.mrb[124].mxu1 }
 0x302   :  { %v3716_v46 = vpop.f32.mrb[125].mxu1 }
 0x303   :  { %3996 = vst [vmem:[#allocation37_spill] sm:$0xff] %v3716_v46  ;;  %v3718_v55 = vpop.f32.mrb[126].mxu1 }
 0x304   :  { %3997 = vst [vmem:[#allocation38_spill] sm:$0xff] %v3718_v55  ;;  %v3720_v25 = vpop.f32.mrb[127].mxu1 }
 0x305   :  { %3998 = vst [vmem:[#allocation39_spill] sm:$0xff] %v3720_v25 }
 0x311   :  { %v2845_v45 = vpop.f32.mrb[128].mxu1 }
 0x312   :  { %v1829_v22 = vadd.f32 1e-05, %v2845_v45  ;;  %v1820_v10 = vpop.f32.mrb[129].mxu1  ;;  %v2334_v45 = vmul.f32 0.4342945, %v2082_v39 }
 0x313   :  { %v1821_v41 = vadd.f32 1e-05, %v1820_v10  ;;  %v2846_v49 = vpop.f32.mrb[130].mxu1  ;;  %v1608_v39 = vadd.f32 1e-05, %v3560_v43  ;;  %v4000_v43 = vld [vmem:[#allocation13_spill] sm:$0xff] }
 0x314   :  { %2972 = vlog2.f32 %v1829_v22  ;;  %v1832_v20 = vadd.f32 1e-05, %v2846_v49  ;;  %v1823_v53 = vpop.f32.mrb[131].mxu1 }
 0x315   :  { %2974 = vlog2.f32 %v1821_v41  ;;  %v1824_v51 = vadd.f32 1e-05, %v1823_v53 }
 0x316   :  { %2976 = vlog2.f32 %v1832_v20 }
 0x317   :  { %2978 = vlog2.f32 %v1824_v51 }
 0x318   :  { %2980 = vlog2.f32 %v1589_v36 }
 0x319   :  { %2982 = vlog2.f32 %v1581_v62 }
 0x31a   :  { %2984 = vlog2.f32 %v1592_v48  ;;  %v1605_v48 = vadd.f32 1e-05, %v3556_v57 }
 0x31b   :  { %2986 = vlog2.f32 %v1584_v56 }
 0x31e   :  { %v2973_v23 = vpop.eup %2972 }
 0x31f   :  { %v2975_v30 = vpop.eup %2974  ;;  %v2208_v17 = vmul.f32 0.6931472, %v2973_v23 }
 0x320   :  { %v2204_v61 = vmul.f32 0.6931472, %v2975_v30  ;;  %v2977_v7 = vpop.eup %2976 }
 0x321   :  { %v2397_v11 = vmul.f32 0.4342945, %v2208_v17  ;;  %v2849_v33 = vpop.f32.mrb[132].mxu1  ;;  %v2979_v0 = vpop.eup %2978  ;;  %v2210_v15 = vmul.f32 0.6931472, %v2977_v7  ;;  %v3999_v7 = vld [vmem:[#allocation12_spill] sm:$0xff] }
 0x322   :  { %v2395_v5 = vmul.f32 0.4342945, %v2204_v61  ;;  %v1845_v24 = vadd.f32 1e-05, %v2849_v33  ;;  %v2206_v10 = vmul.f32 0.6931472, %v2979_v0  ;;  %v2981_v62 = vpop.eup %2980 }
 0x323   :  { %v2461_v22 = vsub.f32 %v2333_v52, %v2397_v11  ;;  %v1836_v41 = vpop.f32.mrb[133].mxu1  ;;  %v2398_v20 = vmul.f32 0.4342945, %v2210_v15  ;;  %v2983_v19 = vpop.eup %2982  ;;  %v2088_v61 = vmul.f32 0.6931472, %v2981_v62 }
 0x324   :  { %v2459_v49 = vsub.f32 %v2331_v37, %v2395_v5  ;;  %2988 = vlog2.f32 %v1845_v24  ;;  %v1837_v53 = vadd.f32 1e-05, %v1836_v41  ;;  %v2850_v51 = vpop.f32.mrb[134].mxu1  ;;  %v2396_v36 = vmul.f32 0.4342945, %v2206_v10  ;;  %v2985_v30 = vpop.eup %2984 }
 0x325   :  { %v1848_v59 = vadd.f32 1e-05, %v2850_v51  ;;  %v2462_v56 = vsub.f32 %v2334_v45, %v2398_v20  ;;  %v1839_v13 = vpop.f32.mrb[135].mxu1  ;;  %v2987_v17 = vpop.eup %2986  ;;  %v1600_v57 = vadd.f32 1e-05, %v3999_v7 }
 0x326   :  { %2990 = vlog2.f32 %v1837_v53  ;;  %v2460_v38 = vsub.f32 %v2332_v58, %v2396_v36  ;;  %v1840_v23 = vadd.f32 1e-05, %v1839_v13  ;;  %v2523_v52 = vand.u32 2147483647, %v2459_v49  ;;  %v4001_v36 = vld [vmem:[#allocation14_spill] sm:$0xff] }
 0x327   :  { %2992 = vlog2.f32 %v1848_v59  ;;  %v2084_v6 = vmul.f32 0.6931472, %v2983_v19  ;;  %v2525_v11 = vand.u32 2147483647, %v2461_v22  ;;  %v2090_v0 = vmul.f32 0.6931472, %v2985_v30 }
 0x328   :  { %v2524_v37 = vand.u32 2147483647, %v2460_v38  ;;  %2994 = vlog2.f32 %v1840_v23  ;;  %v2086_v28 = vmul.f32 0.6931472, %v2987_v17  ;;  %v2526_v5 = vand.u32 2147483647, %v2462_v56 }
 0x329   :  { %2996 = vlog2.f32 %v1605_v48  ;;  %v1621_v45 = vadd.f32 1e-05, %v4000_v43  ;;  %v2337_v10 = vmul.f32 0.4342945, %v2088_v61  ;;  %v2335_v41 = vmul.f32 0.4342945, %v2084_v6 }
 0x32a   :  { %2998 = vlog2.f32 %v1597_v27  ;;  %v2587_v33 = vadd.f32 %v2524_v37, %v2523_v52  ;;  %v3735_v51 = vmul.f32 0.4342945, %v2090_v0  ;;  %v2336_v58 = vmul.f32 0.4342945, %v2086_v28  ;;  %v4002_v6 = vld [vmem:[#allocation15_spill] sm:$0xff] }
 0x32b   :  { %3000 = vlog2.f32 %v1608_v39  ;;  %v1613_v22 = vadd.f32 1e-05, %v4001_v36 }
 0x32c   :  { %v2588_v15 = vadd.f32 %v2587_v33, %v2525_v11  ;;  %3002 = vlog2.f32 %v1600_v57  ;;  %v1624_v11 = vadd.f32 1e-05, %v4002_v6  ;;  %v4003_v33 = vld [vmem:[#allocation16_spill] sm:$0xff] }
 0x32d   :  { %3004 = vlog2.f32 %v1621_v45  ;;  %v1616_v0 = vadd.f32 1e-05, %v4003_v33 }
 0x32e   :  { %v2989_v24 = vpop.eup %2988  ;;  %v2589_v20 = vadd.f32 %v2588_v15, %v2526_v5 }
 0x32f   :  { %v2216_v49 = vmul.f32 0.6931472, %v2989_v24 }
 0x330   :  { %v2991_v53 = vpop.eup %2990 }
 0x331   :  { %v2993_v59 = vpop.eup %2992  ;;  %v2401_v62 = vmul.f32 0.4342945, %v2216_v49  ;;  %v2212_v48 = vmul.f32 0.6931472, %v2991_v53  ;;  %v2853_v13 = vpop.f32.mrb[136].mxu1  ;;  %v4004_v49 = vld [vmem:[#allocation17_spill] sm:$0xff] }
 0x332   :  { %v2218_v56 = vmul.f32 0.6931472, %v2993_v59  ;;  %v1861_v19 = vadd.f32 1e-05, %v2853_v13  ;;  %v1852_v27 = vpop.f32.mrb[137].mxu1  ;;  %v2995_v38 = vpop.eup %2994 }
 0x333   :  { %v2465_v23 = vsub.f32 %v2337_v10, %v2401_v62  ;;  %v2399_v30 = vmul.f32 0.4342945, %v2212_v48  ;;  %v1853_v39 = vadd.f32 1e-05, %v1852_v27  ;;  %v2854_v17 = vpop.f32.mrb[138].mxu1  ;;  %v2997_v52 = vpop.eup %2996  ;;  %v4005_v48 = vld [vmem:[#allocation18_spill] sm:$0xff] }
 0x334   :  { %v2402_v37 = vmul.f32 0.4342945, %v2218_v56  ;;  %v2214_v61 = vmul.f32 0.6931472, %v2995_v38  ;;  %3006 = vlog2.f32 %v1861_v19  ;;  %v1864_v7 = vadd.f32 1e-05, %v2854_v17  ;;  %v2999_v57 = vpop.eup %2998 }
 0x335   :  { %v2463_v28 = vsub.f32 %v2335_v41, %v2399_v30  ;;  %3008 = vlog2.f32 %v1853_v39  ;;  %v1855_v5 = vpop.f32.mrb[139].mxu1  ;;  %v3001_v15 = vpop.eup %3000  ;;  %v2096_v10 = vmul.f32 0.6931472, %v2997_v52  ;;  %v1637_v53 = vadd.f32 1e-05, %v4004_v49  ;;  %v4006_v19 = vld [vmem:[#allocation19_spill] sm:$0xff] }
 0x336   :  { %v2466_v24 = vsub.f32 %v3735_v51, %v2402_v37  ;;  %v2400_v43 = vmul.f32 0.4342945, %v2214_v61  ;;  %3010 = vlog2.f32 %v1864_v7  ;;  %v1856_v45 = vadd.f32 1e-05, %v1855_v5  ;;  %v3003_v59 = vpop.eup %3002  ;;  %v4007_v51 = vld [vmem:[#allocation20_spill] sm:$0xff] }
 0x337   :  { %3012 = vlog2.f32 %v1613_v22  ;;  %v2527_v36 = vand.u32 2147483647, %v2463_v28  ;;  %v2092_v62 = vmul.f32 0.6931472, %v2999_v57  ;;  %v1629_v13 = vadd.f32 1e-05, %v4005_v48  ;;  %v3005_v37 = vpop.eup %3004 }
 0x338   :  { %v2464_v56 = vsub.f32 %v2336_v58, %v2400_v43  ;;  %3014 = vlog2.f32 %v1856_v45  ;;  %v2098_v41 = vmul.f32 0.6931472, %v3001_v15  ;;  %v1640_v27 = vadd.f32 1e-05, %v4006_v19  ;;  %v4008_v22 = vld [vmem:[#allocation21_spill] sm:$0xff] }
 0x339   :  { %3016 = vlog2.f32 %v1624_v11  ;;  %v2590_v38 = vadd.f32 %v2589_v20, %v2527_v36  ;;  %v1632_v30 = vadd.f32 1e-05, %v4007_v51  ;;  %v2094_v17 = vmul.f32 0.6931472, %v3003_v59  ;;  %v4009_v11 = vld [vmem:[#allocation22_spill] sm:$0xff]  ;;  %v4012_v59 = vld [vmem:[#allocation25_spill] sm:$0xff] }
 0x33a   :  { %3018 = vlog2.f32 %v1616_v0  ;;  %v2528_v39 = vand.u32 2147483647, %v2464_v56  ;;  %v1653_v52 = vadd.f32 1e-05, %v4008_v22  ;;  %v3746_v61 = vmul.f32 0.4342945, %v2096_v10 }
 0x33b   :  { %3020 = vlog2.f32 %v1637_v53  ;;  %v2529_v7 = vand.u32 2147483647, %v2465_v23  ;;  %v2339_v57 = vmul.f32 0.4342945, %v2092_v62  ;;  %v3748_v6 = vmul.f32 0.4342945, %v2098_v41 }
 0x33c   :  { %3022 = vlog2.f32 %v1629_v13  ;;  %v2591_v58 = vadd.f32 %v2590_v38, %v2528_v39  ;;  %v1645_v20 = vadd.f32 1e-05, %v4009_v11  ;;  %v4010_v0 = vld [vmem:[#allocation23_spill] sm:$0xff]  ;;  %v2530_v5 = vand.u32 2147483647, %v2466_v24  ;;  %v4011_v23 = vld [vmem:[#allocation24_spill] sm:$0xff] }
 0x33d   :  { %3024 = vlog2.f32 %v1640_v27  ;;  %v1656_v28 = vadd.f32 1e-05, %v4010_v0  ;;  %v2340_v45 = vmul.f32 0.4342945, %v2094_v17  ;;  %v2104_v49 = vmul.f32 0.6931472, %v3005_v37 }
 0x33e   :  { %v3007_v33 = vpop.eup %3006  ;;  %3026 = vlog2.f32 %v1632_v30  ;;  %v2592_v15 = vadd.f32 %v2591_v58, %v2529_v7  ;;  %v1648_v36 = vadd.f32 1e-05, %v4011_v23  ;;  %v1669_v62 = vadd.f32 1e-05, %v4012_v59 }
 0x33f   :  { %v3009_v43 = vpop.eup %3008  ;;  %3028 = vlog2.f32 %v1653_v52  ;;  %v2224_v10 = vmul.f32 0.6931472, %v3007_v33  ;;  %v3755_v58 = vmul.f32 0.4342945, %v2104_v49 }
 0x340   :  { %v3011_v53 = vpop.eup %3010  ;;  %v2220_v48 = vmul.f32 0.6931472, %v3009_v43  ;;  %v2593_v13 = vadd.f32 %v2592_v15, %v2530_v5  ;;  %3030 = vlog2.f32 %v1645_v20  ;;  %v4013_v5 = vld [vmem:[#allocation26_spill] sm:$0xff] }
 0x341   :  { %v3013_v56 = vpop.eup %3012  ;;  %v2405_v41 = vmul.f32 0.4342945, %v2224_v10  ;;  %v2226_v19 = vmul.f32 0.6931472, %v3011_v53  ;;  %v2857_v27 = vpop.f32.mrb[140].mxu1  ;;  %3032 = vlog2.f32 %v1656_v28 }
 0x342   :  { %v3015_v38 = vpop.eup %3014  ;;  %v2403_v24 = vmul.f32 0.4342945, %v2220_v48  ;;  %v1877_v51 = vadd.f32 1e-05, %v2857_v27  ;;  %v1868_v30 = vpop.f32.mrb[141].mxu1 }
 0x343   :  { %v3017_v39 = vpop.eup %3016  ;;  %v2469_v17 = vsub.f32 %v3746_v61, %v2405_v41  ;;  %v2406_v22 = vmul.f32 0.4342945, %v2226_v19  ;;  %v2222_v52 = vmul.f32 0.6931472, %v3015_v38  ;;  %v1869_v37 = vadd.f32 1e-05, %v1868_v30 }
 0x344   :  { %v3019_v7 = vpop.eup %3018  ;;  %v2100_v11 = vmul.f32 0.6931472, %v3013_v56  ;;  %v2467_v33 = vsub.f32 %v2339_v57, %v2403_v24  ;;  %3034 = vlog2.f32 %v1877_v51  ;;  %v2858_v20 = vpop.f32.mrb[142].mxu1  ;;  %v1661_v15 = vadd.f32 1e-05, %v4013_v5  ;;  %v4014_v56 = vld [vmem:[#allocation27_spill] sm:$0xff] }
 0x345   :  { %v3021_v0 = vpop.eup %3020  ;;  %v2470_v28 = vsub.f32 %v3748_v6, %v2406_v22  ;;  %v2404_v43 = vmul.f32 0.4342945, %v2222_v52  ;;  %3036 = vlog2.f32 %v1869_v37  ;;  %v1871_v10 = vpop.f32.mrb[143].mxu1  ;;  %v1880_v23 = vadd.f32 1e-05, %v2858_v20  ;;  %v4015_v38 = vld [vmem:[#allocation28_spill] sm:$0xff] }
 0x346   :  { %v3023_v53 = vpop.eup %3022  ;;  %3038 = vlog2.f32 %v1648_v36  ;;  %v2531_v61 = vand.u32 2147483647, %v2467_v33  ;;  %v1872_v59 = vadd.f32 1e-05, %v1871_v10  ;;  %v2106_v49 = vmul.f32 0.6931472, %v3017_v39 }
 0x347   :  { %v3025_v48 = vpop.eup %3024  ;;  %3040 = vlog2.f32 %v1669_v62  ;;  %v1672_v57 = vadd.f32 1e-05, %v4014_v56  ;;  %v2468_v41 = vsub.f32 %v2340_v45, %v2404_v43  ;;  %v2102_v27 = vmul.f32 0.6931472, %v3019_v7  ;;  %v4016_v22 = vld [vmem:[#allocation29_spill] sm:$0xff] }
 0x348   :  { %v3027_v19 = vpop.eup %3026  ;;  %v1664_v24 = vadd.f32 1e-05, %v4015_v38  ;;  %v2594_v51 = vadd.f32 %v2593_v13, %v2531_v61  ;;  %3042 = vlog2.f32 %v1880_v23  ;;  %v2112_v30 = vmul.f32 0.6931472, %v3021_v0 }
 0x349   :  { %v3029_v6 = vpop.eup %3028  ;;  %v1685_v52 = vadd.f32 1e-05, %v4016_v22  ;;  %v2532_v36 = vand.u32 2147483647, %v2468_v41  ;;  %3044 = vlog2.f32 %v1872_v59  ;;  %v2343_v37 = vmul.f32 0.4342945, %v2100_v11 }
 0x34a   :  { %v2108_v33 = vmul.f32 0.6931472, %v3023_v53  ;;  %v2114_v20 = vmul.f32 0.6931472, %v3025_v48  ;;  %3046 = vlog2.f32 %v1661_v15  ;;  %v3031_v62 = vpop.eup %3030  ;;  %v2110_v39 = vmul.f32 0.6931472, %v3027_v19 }
 0x34b   :  { %3048 = vlog2.f32 %v1672_v57  ;;  %v2533_v45 = vand.u32 2147483647, %v2469_v17  ;;  %v2595_v5 = vadd.f32 %v2594_v51, %v2532_v36  ;;  %v3033_v7 = vpop.eup %3032  ;;  %v3762_v43 = vmul.f32 0.4342945, %v2106_v49  ;;  %v4017_v59 = vld [vmem:[#allocation30_spill] sm:$0xff]  ;;  %v4018_v49 = vld [vmem:[#allocation31_spill] sm:$0xff] }
 0x34c   :  { %v3764_v13 = vmul.f32 0.4342945, %v2102_v27  ;;  %v2120_v10 = vmul.f32 0.6931472, %v3029_v6  ;;  %3050 = vlog2.f32 %v1664_v24  ;;  %v3766_v0 = vmul.f32 0.4342945, %v2112_v30 }
 0x34d   :  { %3052 = vlog2.f32 %v1685_v52  ;;  %v2534_v61 = vand.u32 2147483647, %v2470_v28  ;;  %v2596_v11 = vadd.f32 %v2595_v5, %v2533_v45  ;;  %v3768_v23 = vmul.f32 0.4342945, %v2108_v33 }
 0x34e   :  { %v3035_v53 = vpop.eup %3034  ;;  %v3770_v15 = vmul.f32 0.4342945, %v2114_v20  ;;  %v1677_v17 = vadd.f32 1e-05, %v4017_v59  ;;  %v3773_v56 = vmul.f32 0.4342945, %v2110_v39 }
 0x34f   :  { %v3037_v48 = vpop.eup %3036  ;;  %v1688_v57 = vadd.f32 1e-05, %v4018_v49  ;;  %v2232_v41 = vmul.f32 0.6931472, %v3035_v53  ;;  %v2597_v19 = vadd.f32 %v2596_v11, %v2534_v61  ;;  %v3776_v38 = vmul.f32 0.4342945, %v2120_v10 }
 0x350   :  { %v3039_v27 = vpop.eup %3038  ;;  %v2116_v24 = vmul.f32 0.6931472, %v3031_v62  ;;  %v2228_v28 = vmul.f32 0.6931472, %v3037_v48  ;;  %v2122_v6 = vmul.f32 0.6931472, %v3033_v7  ;;  %3054 = vlog2.f32 %v1677_v17 }
 0x351   :  { %v3041_v51 = vpop.eup %3040  ;;  %v2409_v30 = vmul.f32 0.4342945, %v2232_v41  ;;  %v2861_v22 = vpop.f32.mrb[144].mxu1  ;;  %3056 = vlog2.f32 %v1688_v57  ;;  %v2118_v49 = vmul.f32 0.6931472, %v3039_v27 }
 0x352   :  { %v3043_v52 = vpop.eup %3042  ;;  %v2407_v36 = vmul.f32 0.4342945, %v2228_v28  ;;  %v1893_v33 = vadd.f32 1e-05, %v2861_v22  ;;  %v1884_v20 = vpop.f32.mrb[145].mxu1  ;;  %v4019_v22 = vld [vmem:[#allocation32_spill] sm:$0xff] }
 0x353   :  { %v3045_v39 = vpop.eup %3044  ;;  %v2473_v45 = vsub.f32 %v3755_v58, %v2409_v30  ;;  %v2234_v5 = vmul.f32 0.6931472, %v3043_v52  ;;  %v1885_v61 = vadd.f32 1e-05, %v1884_v20  ;;  %v2862_v11 = vpop.f32.mrb[146].mxu1  ;;  %v4020_v52 = vld [vmem:[#allocation33_spill] sm:$0xff] }
 0x354   :  { %v3047_v10 = vpop.eup %3046  ;;  %v2471_v53 = vsub.f32 %v2343_v37, %v2407_v36  ;;  %v2230_v62 = vmul.f32 0.6931472, %v3045_v39  ;;  %3058 = vlog2.f32 %v1893_v33  ;;  %v1896_v59 = vadd.f32 1e-05, %v2862_v11  ;;  %v1887_v7 = vpop.f32.mrb[147].mxu1  ;;  %v4021_v33 = vld [vmem:[#allocation34_spill] sm:$0xff] }
 0x355   :  { %v3049_v48 = vpop.eup %3048  ;;  %v2410_v41 = vmul.f32 0.4342945, %v2234_v5  ;;  %3060 = vlog2.f32 %v1885_v61  ;;  %v1888_v17 = vadd.f32 1e-05, %v1887_v7  ;;  %v1680_v25 = vadd.f32 1e-05, %v4019_v22 }
 0x356   :  { %v3051_v28 = vpop.eup %3050  ;;  %v2535_v57 = vand.u32 2147483647, %v2471_v53  ;;  %v2408_v55 = vmul.f32 0.4342945, %v2230_v62  ;;  %3062 = vlog2.f32 %v1896_v59  ;;  %v2128_v30 = vmul.f32 0.6931472, %v3041_v51 }
 0x357   :  { %v3053_v58 = vpop.eup %3052  ;;  %v1701_v20 = vadd.f32 1e-05, %v4020_v52  ;;  %v2474_v37 = vsub.f32 %v3762_v43, %v2410_v41  ;;  %3064 = vlog2.f32 %v1888_v17  ;;  %v2124_v36 = vmul.f32 0.6931472, %v3047_v10  ;;  %v4022_v7 = vld [vmem:[#allocation35_spill] sm:$0xff]  ;;  %v4023_v62 = vld [vmem:[#allocation36_spill] sm:$0xff] }
 0x358   :  { %v1693_v39 = vadd.f32 1e-05, %v4021_v33  ;;  %v2598_v27 = vadd.f32 %v2597_v19, %v2535_v57  ;;  %v2472_v5 = vsub.f32 %v3764_v13, %v2408_v55  ;;  %v2130_v61 = vmul.f32 0.6931472, %v3049_v48 }
 0x359   :  { %v2126_v11 = vmul.f32 0.6931472, %v3051_v28  ;;  %v1704_v22 = vadd.f32 1e-05, %v4022_v7  ;;  %v2136_v53 = vmul.f32 0.6931472, %v3053_v58  ;;  %3066 = vlog2.f32 %v1680_v25 }
 0x35a   :  { %v1696_v59 = vadd.f32 1e-05, %v4023_v62  ;;  %v2536_v51 = vand.u32 2147483647, %v2472_v5  ;;  %v3786_v46 = vmul.f32 0.4342945, %v2116_v24  ;;  %3068 = vlog2.f32 %v1701_v20  ;;  %v3055_v10 = vpop.eup %3054 }
 0x35b   :  { %v3788_v52 = vmul.f32 0.4342945, %v2122_v6  ;;  %v3790_v43 = vmul.f32 0.4342945, %v2118_v49  ;;  %v3792_v19 = vmul.f32 0.4342945, %v2128_v30  ;;  %3070 = vlog2.f32 %v1693_v39  ;;  %v3057_v48 = vpop.eup %3056 }
 0x35c   :  { %v2537_v55 = vand.u32 2147483647, %v2473_v45  ;;  %v2599_v13 = vadd.f32 %v2598_v27, %v2536_v51  ;;  %v3794_v41 = vmul.f32 0.4342945, %v2124_v36  ;;  %v3796_v25 = vmul.f32 0.4342945, %v2130_v61 }
 0x35d   :  { %v3798_v17 = vmul.f32 0.4342945, %v2126_v11  ;;  %3072 = vlog2.f32 %v1704_v22  ;;  %v3800_v6 = vmul.f32 0.4342945, %v2136_v53  ;;  %v2538_v49 = vand.u32 2147483647, %v2474_v37 }
 0x35e   :  { %v3059_v24 = vpop.eup %3058  ;;  %3074 = vlog2.f32 %v1696_v59  ;;  %v2600_v28 = vadd.f32 %v2599_v13, %v2537_v55  ;;  %v2132_v58 = vmul.f32 0.6931472, %v3055_v10  ;;  %v1717_v30 = vadd.f32 1e-05, %v3618_v2 }
 0x35f   :  { %v3061_v57 = vpop.eup %3060  ;;  %v2240_v45 = vmul.f32 0.6931472, %v3059_v24  ;;  %v2138_v33 = vmul.f32 0.6931472, %v3057_v48  ;;  %v1709_v36 = vadd.f32 1e-05, %v3620_v31 }
 0x360   :  { %v3063_v20 = vpop.eup %3062  ;;  %v2236_v39 = vmul.f32 0.6931472, %v3061_v57  ;;  %v2601_v27 = vadd.f32 %v2600_v28, %v2538_v49  ;;  %3076 = vlog2.f32 %v1717_v30  ;;  %v1720_v37 = vadd.f32 1e-05, %v3622_v14 }
 0x361   :  { %v3065_v5 = vpop.eup %3064  ;;  %v2413_v61 = vmul.f32 0.4342945, %v2240_v45  ;;  %v2242_v11 = vmul.f32 0.6931472, %v3063_v20  ;;  %v2865_v7 = vpop.f32.mrb[148].mxu1 }
 0x362   :  { %v2411_v22 = vmul.f32 0.4342945, %v2236_v39  ;;  %v2238_v53 = vmul.f32 0.6931472, %v3065_v5  ;;  %v1909_v62 = vadd.f32 1e-05, %v2865_v7 }
 0x363   :  { %v2477_v59 = vsub.f32 %v3766_v0, %v2413_v61  ;;  %v2414_v2 = vmul.f32 0.4342945, %v2242_v11  ;;  %v1900_v51 = vpop.f32.mrb[149].mxu1  ;;  %v3067_v10 = vpop.eup %3066  ;;  %v1712_v49 = vadd.f32 1e-05, %v3624_v29 }
 0x364   :  { %v2475_v55 = vsub.f32 %v3768_v23, %v2411_v22  ;;  %v2412_v31 = vmul.f32 0.4342945, %v2238_v53  ;;  %3078 = vlog2.f32 %v1909_v62  ;;  %v1901_v13 = vadd.f32 1e-05, %v1900_v51  ;;  %v2866_v48 = vpop.f32.mrb[150].mxu1  ;;  %v3069_v24 = vpop.eup %3068 }
 0x365   :  { %3080 = vlog2.f32 %v1709_v36  ;;  %v2478_v28 = vsub.f32 %v3770_v15, %v2414_v2  ;;  %v1912_v57 = vadd.f32 1e-05, %v2866_v48  ;;  %v1903_v30 = vpop.f32.mrb[151].mxu1  ;;  %v3071_v14 = vpop.eup %3070  ;;  %v3810_v23 = vmul.f32 0.4342945, %v2132_v58 }
 0x366   :  { %v2539_v45 = vand.u32 2147483647, %v2475_v55  ;;  %v2476_v0 = vsub.f32 %v3773_v56, %v2412_v31  ;;  %3082 = vlog2.f32 %v1901_v13  ;;  %v1904_v20 = vadd.f32 1e-05, %v1903_v30 }
 0x367   :  { %v3073_v39 = vpop.eup %3072  ;;  %v2134_v5 = vmul.f32 0.6931472, %v3067_v10  ;;  %v1733_v61 = vadd.f32 1e-05, %v3629_v44  ;;  %3084 = vlog2.f32 %v1912_v57  ;;  %v1725_v29 = vadd.f32 1e-05, %v3631_v26 }
 0x368   :  { %v3075_v36 = vpop.eup %3074  ;;  %v2602_v11 = vadd.f32 %v2601_v27, %v2539_v45  ;;  %v2540_v15 = vand.u32 2147483647, %v2476_v0  ;;  %3086 = vlog2.f32 %v1904_v20  ;;  %v2144_v7 = vmul.f32 0.6931472, %v3069_v24 }
 0x369   :  { %v2140_v22 = vmul.f32 0.6931472, %v3071_v14  ;;  %3088 = vlog2.f32 %v1720_v37  ;;  %v1736_v56 = vadd.f32 1e-05, %v3633_v40  ;;  %v1728_v53 = vadd.f32 1e-05, %v3635_v50 }
 0x36a   :  { %3090 = vlog2.f32 %v1712_v49  ;;  %v2541_v58 = vand.u32 2147483647, %v2477_v59  ;;  %v2603_v62 = vadd.f32 %v2602_v11, %v2540_v15  ;;  %v2146_v2 = vmul.f32 0.6931472, %v3073_v39  ;;  %v3077_v55 = vpop.eup %3076 }
 0x36b   :  { %v2142_v51 = vmul.f32 0.6931472, %v3075_v36  ;;  %3092 = vlog2.f32 %v1733_v61  ;;  %v1749_v44 = vadd.f32 1e-05, %v3649_v60  ;;  %v1741_v26 = vadd.f32 1e-05, %v3651_v3 }
 0x36c   :  { %3094 = vlog2.f32 %v1725_v29  ;;  %v2542_v27 = vand.u32 2147483647, %v2478_v28  ;;  %v2604_v10 = vadd.f32 %v2603_v62, %v2541_v58  ;;  %v3818_v31 = vmul.f32 0.4342945, %v2138_v33 }
 0x36d   :  { %v3820_v37 = vmul.f32 0.4342945, %v2134_v5  ;;  %3096 = vlog2.f32 %v1736_v56  ;;  %v1752_v40 = vadd.f32 1e-05, %v3653_v21  ;;  %v3823_v59 = vmul.f32 0.4342945, %v2144_v7 }
 0x36e   :  { %v3079_v50 = vpop.eup %3078  ;;  %3098 = vlog2.f32 %v1728_v53  ;;  %v1744_v13 = vadd.f32 1e-05, %v3655_v4  ;;  %v2605_v60 = vadd.f32 %v2604_v10, %v2542_v27  ;;  %v3826_v24 = vmul.f32 0.4342945, %v2140_v22 }
 0x36f   :  { %v3081_v48 = vpop.eup %3080  ;;  %v3828_v3 = vmul.f32 0.4342945, %v2146_v2  ;;  %3100 = vlog2.f32 %v1749_v44  ;;  %v2248_v33 = vmul.f32 0.6931472, %v3079_v50  ;;  %v3830_v28 = vmul.f32 0.4342945, %v2142_v51 }
 0x370   :  { %v3083_v49 = vpop.eup %3082  ;;  %v2152_v57 = vmul.f32 0.6931472, %v3077_v55  ;;  %3102 = vlog2.f32 %v1741_v26  ;;  %v1765_v21 = vadd.f32 1e-05, %v3669_v47  ;;  %v2148_v58 = vmul.f32 0.6931472, %v3081_v48 }
 0x371   :  { %v3085_v30 = vpop.eup %3084  ;;  %3104 = vlog2.f32 %v1752_v40  ;;  %v2417_v14 = vmul.f32 0.4342945, %v2248_v33  ;;  %v2244_v45 = vmul.f32 0.6931472, %v3083_v49  ;;  %v2869_v4 = vpop.f32.mrb[152].mxu1 }
 0x372   :  { %v3087_v0 = vpop.eup %3086  ;;  %3106 = vlog2.f32 %v1744_v13  ;;  %v2250_v20 = vmul.f32 0.6931472, %v3085_v30  ;;  %v1925_v39 = vadd.f32 1e-05, %v2869_v4  ;;  %v1916_v5 = vpop.f32.mrb[153].mxu1 }
 0x373   :  { %v3089_v61 = vpop.eup %3088  ;;  %v2481_v36 = vsub.f32 %v3776_v38, %v2417_v14  ;;  %v2415_v29 = vmul.f32 0.4342945, %v2244_v45  ;;  %v2246_v11 = vmul.f32 0.6931472, %v3087_v0  ;;  %v1917_v15 = vadd.f32 1e-05, %v1916_v5 }
 0x374   :  { %v3091_v7 = vpop.eup %3090  ;;  %v3834_v22 = vmul.f32 0.4342945, %v2152_v57  ;;  %v2418_v47 = vmul.f32 0.4342945, %v2250_v20  ;;  %3108 = vlog2.f32 %v1925_v39  ;;  %v2870_v56 = vpop.f32.mrb[154].mxu1 }
 0x375   :  { %v3093_v53 = vpop.eup %3092  ;;  %v2479_v62 = vsub.f32 %v3786_v46, %v2415_v29  ;;  %v2416_v2 = vmul.f32 0.4342945, %v2246_v11  ;;  %3110 = vlog2.f32 %v1917_v15  ;;  %v1919_v51 = vpop.f32.mrb[155].mxu1  ;;  %v1757_v26 = vadd.f32 1e-05, %v3671_v54 }
 0x376   :  { %v3095_v44 = vpop.eup %3094  ;;  %v2482_v38 = vsub.f32 %v3788_v52, %v2418_v47  ;;  %v1928_v27 = vadd.f32 1e-05, %v2870_v56  ;;  %v1920_v10 = vadd.f32 1e-05, %v1919_v51  ;;  %3112 = vlog2.f32 %v1765_v21 }
 0x377   :  { %v3097_v55 = vpop.eup %3096  ;;  %v1768_v40 = vadd.f32 1e-05, %v3673_v63  ;;  %v2543_v50 = vand.u32 2147483647, %v2479_v62  ;;  %v2480_v13 = vsub.f32 %v3790_v43, %v2416_v2  ;;  %v2154_v33 = vmul.f32 0.6931472, %v3089_v61 }
 0x378   :  { %v3099_v48 = vpop.eup %3098  ;;  %v2150_v46 = vmul.f32 0.6931472, %v3091_v7  ;;  %v1760_v49 = vadd.f32 1e-05, %v3675_v12  ;;  %3114 = vlog2.f32 %v1928_v27  ;;  %v2160_v30 = vmul.f32 0.6931472, %v3093_v53 }
 0x379   :  { %v3101_v57 = vpop.eup %3100  ;;  %v2606_v54 = vadd.f32 %v2605_v60, %v2543_v50  ;;  %v2544_v14 = vand.u32 2147483647, %v2480_v13  ;;  %3116 = vlog2.f32 %v1920_v10  ;;  %v2156_v45 = vmul.f32 0.6931472, %v3095_v44 }
 0x37a   :  { %v3103_v52 = vpop.eup %3102  ;;  %v2162_v4 = vmul.f32 0.6931472, %v3097_v55  ;;  %3118 = vlog2.f32 %v1757_v26  ;;  %v1781_v63 = vadd.f32 1e-05, %v3689_v1  ;;  %v2158_v0 = vmul.f32 0.6931472, %v3099_v48 }
 0x37b   :  { %v3105_v21 = vpop.eup %3104  ;;  %3120 = vlog2.f32 %v1768_v40  ;;  %v2545_v43 = vand.u32 2147483647, %v2481_v36  ;;  %v2607_v20 = vadd.f32 %v2606_v54, %v2544_v14  ;;  %v3843_v5 = vmul.f32 0.4342945, %v2148_v58 }
 0x37c   :  { %v3107_v39 = vpop.eup %3106  ;;  %v3845_v12 = vmul.f32 0.4342945, %v2154_v33  ;;  %v2168_v61 = vmul.f32 0.6931472, %v3101_v57  ;;  %3122 = vlog2.f32 %v1760_v49  ;;  %v3847_v60 = vmul.f32 0.4342945, %v2150_v46 }
 0x37d   :  { %v3849_v29 = vmul.f32 0.4342945, %v2160_v30  ;;  %v2546_v11 = vand.u32 2147483647, %v2482_v38  ;;  %v2608_v15 = vadd.f32 %v2607_v20, %v2545_v43  ;;  %v3851_v1 = vmul.f32 0.4342945, %v2156_v45 }
 0x37e   :  { %v3109_v7 = vpop.eup %3108  ;;  %v3853_v47 = vmul.f32 0.4342945, %v2162_v4  ;;  %3124 = vlog2.f32 %v1781_v63  ;;  %v1773_v36 = vadd.f32 1e-05, %v3691_v8  ;;  %v3856_v53 = vmul.f32 0.4342945, %v2158_v0 }
 0x37f   :  { %v3111_v56 = vpop.eup %3110  ;;  %v1784_v58 = vadd.f32 1e-05, %v3693_v18  ;;  %v2256_v62 = vmul.f32 0.6931472, %v3109_v7  ;;  %v2609_v2 = vadd.f32 %v2608_v15, %v2546_v11  ;;  %v3859_v51 = vmul.f32 0.4342945, %v2168_v61 }
 0x380   :  { %v2164_v44 = vmul.f32 0.6931472, %v3103_v52  ;;  %v2252_v26 = vmul.f32 0.6931472, %v3111_v56  ;;  %v3113_v38 = vpop.eup %3112  ;;  %v2170_v27 = vmul.f32 0.6931472, %v3105_v21  ;;  %3126 = vlog2.f32 %v1773_v36 }
 0x381   :  { %v2421_v10 = vmul.f32 0.4342945, %v2256_v62  ;;  %v2873_v55 = vpop.f32.mrb[156].mxu1  ;;  %3128 = vlog2.f32 %v1784_v58  ;;  %v2166_v43 = vmul.f32 0.6931472, %v3107_v39 }
 0x382   :  { %v3115_v40 = vpop.eup %3114  ;;  %v2419_v50 = vmul.f32 0.4342945, %v2252_v26  ;;  %v1941_v13 = vadd.f32 1e-05, %v2873_v55  ;;  %v1932_v8 = vpop.f32.mrb[157].mxu1 }
 0x383   :  { %v3117_v48 = vpop.eup %3116  ;;  %v2485_v33 = vsub.f32 %v3792_v19, %v2421_v10  ;;  %v2258_v18 = vmul.f32 0.6931472, %v3115_v40  ;;  %v1933_v46 = vadd.f32 1e-05, %v1932_v8  ;;  %v2874_v49 = vpop.f32.mrb[158].mxu1 }
 0x384   :  { %v3119_v57 = vpop.eup %3118  ;;  %v2483_v30 = vsub.f32 %v3794_v41, %v2419_v50  ;;  %v2254_v54 = vmul.f32 0.6931472, %v3117_v48  ;;  %3130 = vlog2.f32 %v1941_v13  ;;  %v1944_v14 = vadd.f32 1e-05, %v2874_v49  ;;  %v1935_v52 = vpop.f32.mrb[159].mxu1 }
 0x385   :  { %v3121_v45 = vpop.eup %3120  ;;  %v3863_v4 = vmul.f32 0.4342945, %v2164_v44  ;;  %v2422_v63 = vmul.f32 0.4342945, %v2258_v18  ;;  %3132 = vlog2.f32 %v1933_v46  ;;  %v1936_v21 = vadd.f32 1e-05, %v1935_v52 }
 0x386   :  { %v3123_v0 = vpop.eup %3122  ;;  %v2547_v20 = vand.u32 2147483647, %v2483_v30  ;;  %v2420_v19 = vmul.f32 0.4342945, %v2254_v54  ;;  %3134 = vlog2.f32 %v1944_v14  ;;  %v3865_v61 = vmul.f32 0.4342945, %v2170_v27 }
 0x387   :  { %v1776_v11 = vadd.f32 1e-05, %v3695_v32  ;;  %v2486_v41 = vsub.f32 %v3796_v25, %v2422_v63  ;;  %3136 = vlog2.f32 %v1936_v21  ;;  %v2176_v7 = vmul.f32 0.6931472, %v3113_v38 }
 0x388   :  { %v3125_v15 = vpop.eup %3124  ;;  %v2172_v36 = vmul.f32 0.6931472, %v3119_v57  ;;  %v2610_v56 = vadd.f32 %v2609_v2, %v2547_v20  ;;  %v2484_v58 = vsub.f32 %v3798_v17, %v2420_v19  ;;  %v2178_v62 = vmul.f32 0.6931472, %v3121_v45 }
 0x389   :  { %v2174_v44 = vmul.f32 0.6931472, %v3123_v0  ;;  %v2877_v26 = vpop.f32.mrb[160].mxu1  ;;  %v2184_v40 = vmul.f32 0.6931472, %v3125_v15  ;;  %3138 = vlog2.f32 %v1776_v11 }
 0x38a   :  { %v2548_v39 = vand.u32 2147483647, %v2484_v58  ;;  %v1957_v10 = vadd.f32 1e-05, %v2877_v26  ;;  %v1948_v55 = vpop.f32.mrb[161].mxu1  ;;  %v3127_v32 = vpop.eup %3126 }
 0x38b   :  { %v1949_v27 = vadd.f32 1e-05, %v1948_v55  ;;  %v2878_v50 = vpop.f32.mrb[162].mxu1  ;;  %v2549_v13 = vand.u32 2147483647, %v2485_v33  ;;  %v3129_v48 = vpop.eup %3128 }
 0x38c   :  { %v2611_v25 = vadd.f32 %v2610_v56, %v2548_v39  ;;  %3140 = vlog2.f32 %v1957_v10  ;;  %v1960_v8 = vadd.f32 1e-05, %v2878_v50  ;;  %v1951_v38 = vpop.f32.mrb[163].mxu1  ;;  %v3870_v2 = vmul.f32 0.4342945, %v2166_v43 }
 0x38d   :  { %v3872_v17 = vmul.f32 0.4342945, %v2176_v7  ;;  %3142 = vlog2.f32 %v1949_v27  ;;  %v1952_v18 = vadd.f32 1e-05, %v1951_v38  ;;  %v3874_v49 = vmul.f32 0.4342945, %v2172_v36 }
 0x38e   :  { %v3131_v46 = vpop.eup %3130  ;;  %v2550_v57 = vand.u32 2147483647, %v2486_v41  ;;  %v2612_v30 = vadd.f32 %v2611_v25, %v2549_v13  ;;  %3144 = vlog2.f32 %v1960_v8  ;;  %v3876_v14 = vmul.f32 0.4342945, %v2178_v62 }
 0x38f   :  { %v3133_v54 = vpop.eup %3132  ;;  %v3878_v33 = vmul.f32 0.4342945, %v2174_v44  ;;  %v2264_v52 = vmul.f32 0.6931472, %v3131_v46  ;;  %3146 = vlog2.f32 %v1952_v18  ;;  %v3880_v63 = vmul.f32 0.4342945, %v2184_v40 }
 0x390   :  { %v3135_v45 = vpop.eup %3134  ;;  %v2180_v21 = vmul.f32 0.6931472, %v3127_v32  ;;  %v2260_v0 = vmul.f32 0.6931472, %v3133_v54  ;;  %v2613_v43 = vadd.f32 %v2612_v30, %v2550_v57  ;;  %v2186_v56 = vmul.f32 0.6931472, %v3129_v48 }
 0x391   :  { %v3137_v20 = vpop.eup %3136  ;;  %v2425_v19 = vmul.f32 0.4342945, %v2264_v52  ;;  %v2266_v11 = vmul.f32 0.6931472, %v3135_v45  ;;  %v2881_v15 = vpop.f32.mrb[164].mxu1 }
 0x392   :  { %v2423_v41 = vmul.f32 0.4342945, %v2260_v0  ;;  %v2262_v7 = vmul.f32 0.6931472, %v3137_v20  ;;  %v1973_v36 = vadd.f32 1e-05, %v2881_v15 }
 0x393   :  { %v2489_v58 = vsub.f32 %v3800_v6, %v2425_v19  ;;  %v2426_v62 = vmul.f32 0.4342945, %v2266_v11  ;;  %v1964_v44 = vpop.f32.mrb[165].mxu1  ;;  %v3139_v40 = vpop.eup %3138  ;;  %v1797_v27 = vadd.f32 1e-05, %v3706_v34 }
 0x394   :  { %v2487_v26 = vsub.f32 %v3810_v23, %v2423_v41  ;;  %v2424_v39 = vmul.f32 0.4342945, %v2262_v7  ;;  %3148 = vlog2.f32 %v1973_v36  ;;  %v1965_v10 = vadd.f32 1e-05, %v1964_v44  ;;  %v2882_v55 = vpop.f32.mrb[166].mxu1 }
 0x395   :  { %v2490_v50 = vsub.f32 %v3818_v31, %v2426_v62  ;;  %v1976_v32 = vadd.f32 1e-05, %v2882_v55  ;;  %v1967_v13 = vpop.f32.mrb[167].mxu1  ;;  %v3887_v18 = vmul.f32 0.4342945, %v2180_v21 }
 0x396   :  { %v3141_v25 = vpop.eup %3140  ;;  %v2551_v8 = vand.u32 2147483647, %v2487_v26  ;;  %v2488_v38 = vsub.f32 %v3820_v37, %v2424_v39  ;;  %3150 = vlog2.f32 %v1965_v10  ;;  %v1968_v6 = vadd.f32 1e-05, %v1967_v13 }
 0x397   :  { %v3143_v48 = vpop.eup %3142  ;;  %v2553_v23 = vand.u32 2147483647, %v2489_v58  ;;  %v2272_v46 = vmul.f32 0.6931472, %v3141_v25  ;;  %3152 = vlog2.f32 %v1976_v32  ;;  %v2554_v15 = vand.u32 2147483647, %v2490_v50 }
 0x398   :  { %v3145_v57 = vpop.eup %3144  ;;  %v2614_v30 = vadd.f32 %v2613_v43, %v2551_v8  ;;  %v2552_v54 = vand.u32 2147483647, %v2488_v38  ;;  %v2268_v34 = vmul.f32 0.6931472, %v3143_v48  ;;  %3154 = vlog2.f32 %v1968_v6 }
 0x399   :  { %v3147_v31 = vpop.eup %3146  ;;  %v2429_v52 = vmul.f32 0.4342945, %v2272_v46  ;;  %v2274_v45 = vmul.f32 0.6931472, %v3145_v57  ;;  %v2885_v0 = vpop.f32.mrb[168].mxu1  ;;  %3156 = vlog2.f32 %v1797_v27 }
 0x39a   :  { %v2615_v20 = vadd.f32 %v2614_v30, %v2552_v54  ;;  %v2427_v19 = vmul.f32 0.4342945, %v2268_v34  ;;  %v2270_v37 = vmul.f32 0.6931472, %v3147_v31  ;;  %v1989_v11 = vadd.f32 1e-05, %v2885_v0 }
 0x39b   :  { %v2493_v21 = vsub.f32 %v3823_v59, %v2429_v52  ;;  %v2430_v41 = vmul.f32 0.4342945, %v2274_v45  ;;  %v1980_v7 = vpop.f32.mrb[169].mxu1  ;;  %v3891_v44 = vmul.f32 0.6931472, %v3139_v40 }
 0x39c   :  { %v2616_v36 = vadd.f32 %v2615_v20, %v2553_v23  ;;  %v2491_v43 = vsub.f32 %v3826_v24, %v2427_v19  ;;  %v2428_v58 = vmul.f32 0.4342945, %v2270_v37  ;;  %3158 = vlog2.f32 %v1989_v11  ;;  %v2886_v62 = vpop.f32.mrb[170].mxu1 }
 0x39d   :  { %v2494_v26 = vsub.f32 %v3828_v3, %v2430_v41  ;;  %v1981_v39 = vadd.f32 1e-05, %v1980_v7  ;;  %v1992_v10 = vadd.f32 1e-05, %v2886_v62  ;;  %v3895_v27 = vadd.f32 1e-05, %v3708_v42 }
 0x39e   :  { %v3149_v55 = vpop.eup %3148  ;;  %v2555_v50 = vand.u32 2147483647, %v2491_v43  ;;  %v2617_v59 = vadd.f32 %v2616_v36, %v2554_v15  ;;  %v2492_v32 = vsub.f32 %v3830_v28, %v2428_v58  ;;  %v1983_v13 = vpop.f32.mrb[171].mxu1  ;;  %v3898_v25 = vmul.f32 0.4342945, %v2186_v56 }
 0x39f   :  { %v2280_v24 = vmul.f32 0.6931472, %v3149_v55  ;;  %3160 = vlog2.f32 %v1981_v39  ;;  %v1984_v8 = vadd.f32 1e-05, %v1983_v13  ;;  %v2557_v38 = vand.u32 2147483647, %v2493_v21 }
 0x3a0   :  { %v3151_v40 = vpop.eup %3150  ;;  %v2618_v6 = vadd.f32 %v2617_v59, %v2555_v50  ;;  %v2556_v3 = vand.u32 2147483647, %v2492_v32  ;;  %3162 = vlog2.f32 %v1992_v10  ;;  %v2558_v0 = vand.u32 2147483647, %v2494_v26 }
 0x3a1   :  { %v3153_v48 = vpop.eup %3152  ;;  %v2433_v23 = vmul.f32 0.4342945, %v2280_v24  ;;  %v2276_v46 = vmul.f32 0.6931472, %v3151_v40  ;;  %3164 = vlog2.f32 %v1984_v8  ;;  %v2889_v42 = vpop.f32.mrb[172].mxu1 }
 0x3a2   :  { %v3155_v57 = vpop.eup %3154  ;;  %v2619_v30 = vadd.f32 %v2618_v6, %v2556_v3  ;;  %v2282_v54 = vmul.f32 0.6931472, %v3153_v48  ;;  %v2005_v28 = vadd.f32 1e-05, %v2889_v42  ;;  %v1996_v34 = vpop.f32.mrb[173].mxu1 }
 0x3a3   :  { %v2497_v56 = vsub.f32 %v3834_v22, %v2433_v23  ;;  %v2431_v31 = vmul.f32 0.4342945, %v2276_v46  ;;  %v2278_v52 = vmul.f32 0.6931472, %v3155_v57  ;;  %v1997_v45 = vadd.f32 1e-05, %v1996_v34  ;;  %v3157_v11 = vpop.eup %3156 }
 0x3a4   :  { %v2620_v20 = vadd.f32 %v2619_v30, %v2557_v38  ;;  %v2434_v19 = vmul.f32 0.4342945, %v2282_v54  ;;  %3166 = vlog2.f32 %v2005_v28  ;;  %v2890_v37 = vpop.f32.mrb[174].mxu1  ;;  %v3902_v15 = vadd.f32 1e-05, %v3710_v9 }
 0x3a5   :  { %v2495_v21 = vsub.f32 %v3843_v5, %v2431_v31  ;;  %v2432_v41 = vmul.f32 0.4342945, %v2278_v52  ;;  %3168 = vlog2.f32 %v1997_v45  ;;  %v1999_v7 = vpop.f32.mrb[175].mxu1  ;;  %v2008_v58 = vadd.f32 1e-05, %v2890_v37 }
 0x3a6   :  { %v3159_v36 = vpop.eup %3158  ;;  %v2621_v43 = vadd.f32 %v2620_v20, %v2558_v0  ;;  %v2498_v22 = vsub.f32 %v3845_v12, %v2434_v19  ;;  %v2000_v62 = vadd.f32 1e-05, %v1999_v7  ;;  %v3907_v26 = vadd.f32 1e-05, %v3712_v16 }
 0x3a7   :  { %v2559_v39 = vand.u32 2147483647, %v2495_v21  ;;  %v2496_v10 = vsub.f32 %v3847_v60, %v2432_v41  ;;  %v2288_v55 = vmul.f32 0.6931472, %v3159_v36  ;;  %v3910_v9 = vmul.f32 0.6931472, %v3157_v11 }
 0x3a8   :  { %v3913_v5 = vadd.f32 1e-05, %v3714_v35  ;;  %v2561_v50 = vand.u32 2147483647, %v2497_v56  ;;  %3170 = vlog2.f32 %v2008_v58  ;;  %v2562_v30 = vand.u32 2147483647, %v2498_v22 }
 0x3a9   :  { %v3161_v59 = vpop.eup %3160  ;;  %v2622_v32 = vadd.f32 %v2621_v43, %v2559_v39  ;;  %v2560_v13 = vand.u32 2147483647, %v2496_v10  ;;  %v2437_v12 = vmul.f32 0.4342945, %v2288_v55  ;;  %3172 = vlog2.f32 %v2000_v62  ;;  %v2893_v24 = vpop.f32.mrb[176].mxu1  ;;  %v4025_v36 = vld [vmem:[#allocation38_spill] sm:$0xff] }
 0x3aa   :  { %v3163_v8 = vpop.eup %3162  ;;  %v2284_v16 = vmul.f32 0.6931472, %v3161_v59  ;;  %v2021_v40 = vadd.f32 1e-05, %v2893_v24  ;;  %v2012_v38 = vpop.f32.mrb[177].mxu1 }
 0x3ab   :  { %v3165_v6 = vpop.eup %3164  ;;  %v2623_v60 = vadd.f32 %v2622_v32, %v2560_v13  ;;  %v2501_v3 = vsub.f32 %v3849_v29, %v2437_v12  ;;  %v2290_v48 = vmul.f32 0.6931472, %v3163_v8  ;;  %v2013_v23 = vadd.f32 1e-05, %v2012_v38  ;;  %v2894_v35 = vpop.f32.mrb[178].mxu1  ;;  %v4024_v29 = vld [vmem:[#allocation37_spill] sm:$0xff] }
 0x3ac   :  { %v2435_v46 = vmul.f32 0.4342945, %v2284_v16  ;;  %v2286_v42 = vmul.f32 0.6931472, %v3165_v6  ;;  %3174 = vlog2.f32 %v2021_v40  ;;  %v2024_v57 = vadd.f32 1e-05, %v2894_v35 }
 0x3ad   :  { %v2624_v54 = vadd.f32 %v2623_v60, %v2561_v50  ;;  %v2438_v28 = vmul.f32 0.4342945, %v2290_v48  ;;  %3176 = vlog2.f32 %v2013_v23  ;;  %v2015_v34 = vpop.f32.mrb[179].mxu1  ;;  %v1805_v20 = vadd.f32 1e-05, %v4024_v29 }
 0x3ae   :  { %v3167_v56 = vpop.eup %3166  ;;  %v2499_v31 = vsub.f32 %v3851_v1, %v2435_v46  ;;  %v2436_v52 = vmul.f32 0.4342945, %v2286_v42  ;;  %3178 = vlog2.f32 %v2024_v57  ;;  %v2016_v45 = vadd.f32 1e-05, %v2015_v34 }
 0x3af   :  { %v3169_v0 = vpop.eup %3168  ;;  %v2625_v19 = vadd.f32 %v2624_v54, %v2562_v30  ;;  %v2502_v37 = vsub.f32 %v3853_v47, %v2438_v28  ;;  %v2296_v11 = vmul.f32 0.6931472, %v3167_v56  ;;  %v1816_v43 = vadd.f32 1e-05, %v4025_v36 }
 0x3b0   :  { %v2563_v21 = vand.u32 2147483647, %v2499_v31  ;;  %v2500_v41 = vsub.f32 %v3856_v53, %v2436_v52  ;;  %v2292_v7 = vmul.f32 0.6931472, %v3169_v0  ;;  %3180 = vlog2.f32 %v2016_v45 }
 0x3b1   :  { %3182 = vlog2.f32 %v3895_v27  ;;  %v2441_v1 = vmul.f32 0.4342945, %v2296_v11  ;;  %v2897_v22 = vpop.f32.mrb[180].mxu1  ;;  %v2565_v47 = vand.u32 2147483647, %v2501_v3 }
 0x3b2   :  { %v3171_v58 = vpop.eup %3170  ;;  %v2626_v62 = vadd.f32 %v2625_v19, %v2563_v21  ;;  %v2564_v39 = vand.u32 2147483647, %v2500_v41  ;;  %v2439_v10 = vmul.f32 0.4342945, %v2292_v7  ;;  %v2037_v55 = vadd.f32 1e-05, %v2897_v22 }
 0x3b3   :  { %v3173_v50 = vpop.eup %3172  ;;  %3184 = vlog2.f32 %v3902_v15  ;;  %v2505_v59 = vsub.f32 %v3859_v51, %v2441_v1  ;;  %v2298_v53 = vmul.f32 0.6931472, %v3171_v58  ;;  %v2028_v32 = vpop.f32.mrb[181].mxu1  ;;  %v2566_v8 = vand.u32 2147483647, %v2502_v37  ;;  %v4026_v51 = vld [vmem:[#allocation39_spill] sm:$0xff] }
 0x3b4   :  { %v2627_v13 = vadd.f32 %v2626_v62, %v2564_v39  ;;  %v2503_v27 = vsub.f32 %v3863_v4, %v2439_v10  ;;  %v2294_v12 = vmul.f32 0.6931472, %v3173_v50  ;;  %3186 = vlog2.f32 %v2037_v55  ;;  %v2898_v24 = vpop.f32.mrb[182].mxu1 }
 0x3b5   :  { %3188 = vlog2.f32 %v3907_v26  ;;  %v2442_v16 = vmul.f32 0.4342945, %v2298_v53  ;;  %v2029_v40 = vadd.f32 1e-05, %v2028_v32  ;;  %v2040_v3 = vadd.f32 1e-05, %v2898_v24 }
 0x3b6   :  { %v3175_v38 = vpop.eup %3174  ;;  %v2628_v6 = vadd.f32 %v2627_v13, %v2565_v47  ;;  %v2567_v60 = vand.u32 2147483647, %v2503_v27  ;;  %v2440_v15 = vmul.f32 0.4342945, %v2294_v12  ;;  %v1808_v23 = vadd.f32 1e-05, %v4026_v51 }
 0x3b7   :  { %v3177_v48 = vpop.eup %3176  ;;  %v2506_v35 = vsub.f32 %v3865_v61, %v2442_v16  ;;  %v2304_v46 = vmul.f32 0.6931472, %v3175_v38  ;;  %3190 = vlog2.f32 %v2029_v40  ;;  %v2031_v4 = vpop.f32.mrb[183].mxu1  ;;  %v2569_v54 = vand.u32 2147483647, %v2505_v59 }
 0x3b8   :  { %v3179_v42 = vpop.eup %3178  ;;  %v2629_v57 = vadd.f32 %v2628_v6, %v2566_v8  ;;  %v2504_v26 = vsub.f32 %v3870_v2, %v2440_v15  ;;  %v2300_v30 = vmul.f32 0.6931472, %v3177_v48  ;;  %3192 = vlog2.f32 %v2040_v3 }
 0x3b9   :  { %3194 = vlog2.f32 %v3913_v5  ;;  %v2445_v28 = vmul.f32 0.4342945, %v2304_v46  ;;  %v2306_v34 = vmul.f32 0.6931472, %v3179_v42  ;;  %v2032_v0 = vadd.f32 1e-05, %v2031_v4 }
 0x3ba   :  { %v3181_v56 = vpop.eup %3180  ;;  %v2630_v31 = vadd.f32 %v2629_v57, %v2567_v60  ;;  %v2568_v52 = vand.u32 2147483647, %v2504_v26  ;;  %v2443_v45 = vmul.f32 0.4342945, %v2300_v30  ;;  %3196 = vlog2.f32 %v1805_v20  ;;  %v2901_v11 = vpop.f32.mrb[184].mxu1 }
 0x3bb   :  { %v3183_v61 = vpop.eup %3182  ;;  %v2509_v29 = vsub.f32 %v3872_v17, %v2445_v28  ;;  %v2446_v19 = vmul.f32 0.4342945, %v2306_v34  ;;  %v2302_v37 = vmul.f32 0.6931472, %v3181_v56  ;;  %3198 = vlog2.f32 %v2032_v0  ;;  %v2044_v41 = vpop.f32.mrb[185].mxu1 }
 0x3bc   :  { %v2631_v2 = vadd.f32 %v2630_v31, %v2568_v52  ;;  %v2507_v21 = vsub.f32 %v3874_v49, %v2443_v45  ;;  %v2053_v5 = vadd.f32 1e-05, %v2901_v11  ;;  %3200 = vlog2.f32 %v1816_v43  ;;  %v2902_v17 = vpop.f32.mrb[186].mxu1 }
 0x3bd   :  { %v3185_v7 = vpop.eup %3184  ;;  %v2510_v36 = vsub.f32 %v3876_v14, %v2446_v19  ;;  %v2444_v1 = vmul.f32 0.4342945, %v2302_v37  ;;  %v2045_v22 = vadd.f32 1e-05, %v2044_v41  ;;  %v2570_v62 = vand.u32 2147483647, %v2506_v35 }
 0x3be   :  { %v3187_v58 = vpop.eup %3186  ;;  %v2632_v20 = vadd.f32 %v2631_v2, %v2569_v54  ;;  %v2571_v39 = vand.u32 2147483647, %v2507_v21  ;;  %3202 = vlog2.f32 %v2053_v5  ;;  %v2188_v55 = vmul.f32 0.6931472, %v3183_v61  ;;  %v2047_v47 = vpop.f32.mrb[187].mxu1 }
 0x3bf   :  { %v3189_v10 = vpop.eup %3188  ;;  %v2508_v50 = vsub.f32 %v3878_v33, %v2444_v1  ;;  %v2312_v49 = vmul.f32 0.6931472, %v3187_v58  ;;  %3204 = vlog2.f32 %v2045_v22  ;;  %v2573_v59 = vand.u32 2147483647, %v2509_v29 }
 0x3c0   :  { %v2633_v53 = vadd.f32 %v2632_v20, %v2570_v62  ;;  %v2056_v43 = vadd.f32 1e-05, %v2902_v17  ;;  %v2048_v32 = vadd.f32 1e-05, %v2047_v47  ;;  %3206 = vlog2.f32 %v1808_v23 }
 0x3c1   :  { %v3191_v14 = vpop.eup %3190  ;;  %v2572_v13 = vand.u32 2147483647, %v2508_v50  ;;  %v2449_v27 = vmul.f32 0.4342945, %v2312_v49  ;;  %v2905_v12 = vpop.f32.mrb[188].mxu1 }
 0x3c2   :  { %v3193_v24 = vpop.eup %3192  ;;  %v2634_v8 = vadd.f32 %v2633_v53, %v2571_v39  ;;  %v2308_v16 = vmul.f32 0.6931472, %v3191_v14  ;;  %3208 = vlog2.f32 %v2056_v43  ;;  %v2069_v40 = vadd.f32 1e-05, %v2905_v12  ;;  %v2060_v38 = vpop.f32.mrb[189].mxu1 }
 0x3c3   :  { %v3195_v6 = vpop.eup %3194  ;;  %v2513_v33 = vsub.f32 %v3880_v63, %v2449_v27  ;;  %v2314_v60 = vmul.f32 0.6931472, %v3193_v24  ;;  %3210 = vlog2.f32 %v2048_v32  ;;  %v2061_v15 = vadd.f32 1e-05, %v2060_v38  ;;  %v2906_v3 = vpop.f32.mrb[190].mxu1 }
 0x3c4   :  { %v2635_v48 = vadd.f32 %v2634_v8, %v2572_v13  ;;  %v2447_v51 = vmul.f32 0.4342945, %v2308_v16  ;;  %3212 = vlog2.f32 %v2069_v40  ;;  %v2072_v23 = vadd.f32 1e-05, %v2906_v3  ;;  %v2063_v35 = vpop.f32.mrb[191].mxu1  ;;  %v3197_v46 = vpop.eup %3196 }
 0x3c5   :  { %v2194_v4 = vmul.f32 0.6931472, %v3185_v7  ;;  %v2450_v42 = vmul.f32 0.4342945, %v2314_v60  ;;  %3214 = vlog2.f32 %v2061_v15  ;;  %v2064_v57 = vadd.f32 1e-05, %v2063_v35  ;;  %v3199_v26 = vpop.eup %3198 }
 0x3c6   :  { %v2574_v30 = vand.u32 2147483647, %v2510_v36  ;;  %v2636_v54 = vadd.f32 %v2635_v48, %v2573_v59  ;;  %v2511_v28 = vsub.f32 %v3887_v18, %v2447_v51  ;;  %3216 = vlog2.f32 %v2072_v23  ;;  %v3201_v63 = vpop.eup %3200 }
 0x3c7   :  { %v2190_v34 = vmul.f32 0.6931472, %v3189_v10  ;;  %v2514_v56 = vsub.f32 %v3898_v25, %v2450_v42  ;;  %v2310_v31 = vmul.f32 0.6931472, %v3199_v26  ;;  %3218 = vlog2.f32 %v2064_v57 }
 0x3c8   :  { %v3203_v52 = vpop.eup %3202  ;;  %v2200_v45 = vmul.f32 0.6931472, %v3195_v6  ;;  %v2575_v0 = vand.u32 2147483647, %v2511_v28  ;;  %v2637_v61 = vadd.f32 %v2636_v54, %v2574_v30  ;;  %v2384_v19 = vmul.f32 0.4342945, %v3891_v44 }
 0x3c9   :  { %v3205_v29 = vpop.eup %3204  ;;  %v2448_v37 = vmul.f32 0.4342945, %v2310_v31  ;;  %v2320_v11 = vmul.f32 0.6931472, %v3203_v52  ;;  %v2389_v2 = vmul.f32 0.4342945, %v3910_v9 }
 0x3ca   :  { %v2387_v21 = vmul.f32 0.4342945, %v2188_v55  ;;  %v2638_v18 = vadd.f32 %v2637_v61, %v2575_v0  ;;  %v2316_v5 = vmul.f32 0.6931472, %v3205_v29  ;;  %v3207_v41 = vpop.eup %3206  ;;  %v2390_v7 = vmul.f32 0.4342945, %v2194_v4 }
 0x3cb   :  { %v2388_v36 = vmul.f32 0.4342945, %v2190_v34  ;;  %v2512_v25 = vsub.f32 %v2384_v19, %v2448_v37  ;;  %v2453_v1 = vmul.f32 0.4342945, %v2320_v11  ;;  %v2393_v58 = vmul.f32 0.4342945, %v2200_v45 }
 0x3cc   :  { %v3209_v22 = vpop.eup %3208  ;;  %v2196_v62 = vmul.f32 0.6931472, %v3197_v46  ;;  %v2451_v20 = vmul.f32 0.4342945, %v2316_v5  ;;  %v2202_v17 = vmul.f32 0.6931472, %v3201_v63 }
 0x3cd   :  { %v3211_v39 = vpop.eup %3210  ;;  %v2576_v10 = vand.u32 2147483647, %v2512_v25  ;;  %v2517_v44 = vsub.f32 %v2389_v2, %v2453_v1  ;;  %v2322_v50 = vmul.f32 0.6931472, %v3209_v22  ;;  %v2198_v47 = vmul.f32 0.6931472, %v3207_v41 }
 0x3ce   :  { %v3213_v49 = vpop.eup %3212  ;;  %v2577_v9 = vand.u32 2147483647, %v2513_v33  ;;  %v2515_v55 = vsub.f32 %v2387_v21, %v2451_v20  ;;  %v2318_v59 = vmul.f32 0.6931472, %v3211_v39  ;;  %v2578_v43 = vand.u32 2147483647, %v2514_v56 }
 0x3cf   :  { %v3215_v53 = vpop.eup %3214  ;;  %v2639_v32 = vadd.f32 %v2638_v18, %v2576_v10  ;;  %v2454_v14 = vmul.f32 0.4342945, %v2322_v50  ;;  %v2328_v13 = vmul.f32 0.6931472, %v3213_v49  ;;  %v2391_v15 = vmul.f32 0.4342945, %v2196_v62 }
 0x3d0   :  { %v3217_v27 = vpop.eup %3216  ;;  %v2579_v12 = vand.u32 2147483647, %v2515_v55  ;;  %v2452_v24 = vmul.f32 0.4342945, %v2318_v59  ;;  %v2324_v8 = vmul.f32 0.6931472, %v3215_v53 }
 0x3d1   :  { %v3219_v16 = vpop.eup %3218  ;;  %v2640_v40 = vadd.f32 %v2639_v32, %v2577_v9  ;;  %v2518_v38 = vsub.f32 %v2390_v7, %v2454_v14  ;;  %v2457_v6 = vmul.f32 0.4342945, %v2328_v13  ;;  %v2330_v60 = vmul.f32 0.6931472, %v3217_v27 }
 0x3d2   :  { %v2516_v3 = vsub.f32 %v2388_v36, %v2452_v24  ;;  %v2455_v48 = vmul.f32 0.4342945, %v2324_v8  ;;  %v2326_v33 = vmul.f32 0.6931472, %v3219_v16  ;;  %v2394_v51 = vmul.f32 0.4342945, %v2202_v17 }
 0x3d3   :  { %v2641_v23 = vadd.f32 %v2640_v40, %v2578_v43  ;;  %v2521_v35 = vsub.f32 %v2393_v58, %v2457_v6  ;;  %v2458_v46 = vmul.f32 0.4342945, %v2330_v60  ;;  %v2392_v4 = vmul.f32 0.4342945, %v2198_v47 }
 0x3d4   :  { %v2580_v42 = vand.u32 2147483647, %v2516_v3  ;;  %v2519_v57 = vsub.f32 %v2391_v15, %v2455_v48  ;;  %v2456_v26 = vmul.f32 0.4342945, %v2326_v33  ;;  %v2581_v63 = vand.u32 2147483647, %v2517_v44 }
 0x3d5   :  { %v2642_v30 = vadd.f32 %v2641_v23, %v2579_v12  ;;  %v2522_v54 = vsub.f32 %v2394_v51, %v2458_v46  ;;  %v2582_v56 = vand.u32 2147483647, %v2518_v38  ;;  %v2585_v29 = vand.u32 2147483647, %v2521_v35 }
 0x3d6   :  { %v2520_v28 = vsub.f32 %v2392_v4, %v2456_v26  ;;  %v2583_v52 = vand.u32 2147483647, %v2519_v57 }
 0x3d7   :  { %v2643_v34 = vadd.f32 %v2642_v30, %v2580_v42  ;;  %v2586_v37 = vand.u32 2147483647, %v2522_v54 }
 0x3d8   :  { %v2584_v0 = vand.u32 2147483647, %v2520_v28 }
 0x3d9   :  { %v2644_v31 = vadd.f32 %v2643_v34, %v2581_v63 }
 0x3db   :  { %v2645_v45 = vadd.f32 %v2644_v31, %v2582_v56 }
 0x3dd   :  { %v2646_v61 = vadd.f32 %v2645_v45, %v2583_v52 }
 0x3df   :  { %v2647_v19 = vadd.f32 %v2646_v61, %v2584_v0 }
 0x3e1   :  { %v2648_v11 = vadd.f32 %v2647_v19, %v2585_v29 }
 0x3e3   :  { %v2649_v2 = vadd.f32 %v2648_v11, %v2586_v37 }
 0x3e5   :  { %2650 = vst [vmem:[#allocation8] sm:$0xff] %v2649_v2 }
 0x3e6   :  { %3297 = shalt.err (!%p3294_p0)
}
 0x3e7   :  { %s3298_s27 = scalar_lea.hbm %s3954_s3, 128 }
 0x3e8   :  { %p3299_p1 = scmp.ne.s32.totalorder %s3954_s3, %s3298_s27  ;;  %p3302_p2 = scmp.lt.u32.totalorder %s3298_s27, %s3954_s3 }
 0x3ea   :  { %p3304_p3 = pnand %p3302_p2, %p3299_p1 }
 0x3ec   :  { %3307 = shalt.err (!%p3304_p3)
}
 0x3ed   :  { %2660 = dma.vmem_to_hbm [thread:$0]  %s2658_s23, 128, %s3954_s3, [#allocation4]  }
 0x3ee   :  { %3312 = dma.done.wait [#allocation4], 128  }
 0x3ef   :  { %3313 = vsyncadd [#allocation4], 4294967168 }
 0x3f0   :  { %2664 = vsyncpa [#allocation3], 1 }
 0x3f1   :  { %2665 = vsyncpa [#allocation6], 1 }
 0x3f2   :  { %2666 = vsyncpa [#allocation4], 1 }

</bundles_post_ra>
